<compile_context>
chip_gen: v7x
topology: tpu7x:2x2x1
jax: 0.10.0
libtpu: 0.0.40
codegen_flags: <defaults>
</compile_context>

<pallas_src>
import math

import jax
import jax.numpy as jnp
from jax.experimental import pallas as pl
from jax.experimental.pallas import tpu as pltpu


def make_msda_kernel(TLq, S, C, M, P, D, H, W):
    """Builds the per-(batch, Lq-tile) kernel with static shape constants closed over."""
    MP = M * P
    f32 = jnp.float32

    def kernel(q_ref, x_ref, rp_ref,
               wv_ref, bv_ref,
               wcomb_ref, bcomb_ref,
               wout_ref, bout_ref,
               o_ref,
               value_vmem, slab_vmem):
        # --- value projection: compute once per batch, cache in VMEM scratch ---
        @pl.when(pl.program_id(1) == 0)
        def _():
            value_vmem[...] = (
                jnp.dot(x_ref[0], wv_ref[...], preferred_element_type=f32)
                + bv_ref[...])                                          # (S, C)

        q = q_ref[0]          # (TLq, C)
        rp = rp_ref[0]        # (TLq, 2)  reference points (x, y) in [0, 1]

        # --- fused sampling-offset-x | offset-y | attention-logits projection ---
        proj = jnp.dot(q, wcomb_ref[...], preferred_element_type=f32) + bcomb_ref[...]
        offx = proj[:, 0 * MP:1 * MP]        # (TLq, M*P)
        offy = proj[:, 1 * MP:2 * MP]        # (TLq, M*P)
        logits = proj[:, 2 * MP:3 * MP]      # (TLq, M*P)

        refx = rp[:, 0:1]                    # (TLq, 1)
        refy = rp[:, 1:2]                    # (TLq, 1)
        value = value_vmem[...]              # (S, C)

        for h in range(M):
            # softmax over the P sampling points of this head (n_levels == 1)
            lh = logits[:, h * P:(h + 1) * P]
            eh = jnp.exp(lh - jnp.max(lh, axis=-1, keepdims=True))
            ah = eh * pl.reciprocal(jnp.sum(eh, axis=-1, keepdims=True), approx=True)

            ox = offx[:, h * P:(h + 1) * P]
            oy = offy[:, h * P:(h + 1) * P]
            # sampling_locations = ref + offset / [W, H];
            # grid_sample(align_corners=False): pixel = loc * size - 0.5
            ix = (refx + ox * (1.0 / W)) * W - 0.5
            iy = (refy + oy * (1.0 / H)) * H - 0.5
            x0f = jnp.floor(ix)
            y0f = jnp.floor(iy)
            fx = ix - x0f
            fy = iy - y0f
            x0 = x0f.astype(jnp.int32)
            y0 = y0f.astype(jnp.int32)

            # Build all 4 bilinear corners for all P points at once: (TLq, 4*P).
            idx_parts, wgt_parts = [], []
            for dy in (0, 1):
                wy = fy if dy == 1 else (1.0 - fy)
                yi = y0 + dy
                for dx in (0, 1):
                    wx = fx if dx == 1 else (1.0 - fx)
                    xi = x0 + dx
                    valid = (xi >= 0) & (xi < W) & (yi >= 0) & (yi < H)
                    wgt_parts.append(jnp.where(valid, wx * wy * ah, 0.0))
                    idx_parts.append(jnp.clip(yi * W + xi, 0, S - 1))
            idx_all = jnp.concatenate(idx_parts, axis=-1)   # (TLq, 4*P) int32
            wgt_all = jnp.concatenate(wgt_parts, axis=-1)   # (TLq, 4*P) f32

            # One broadcast compare + weighted reduce -> (TLq, S) sampling matrix.
            iota_s = jax.lax.broadcasted_iota(jnp.int32, (TLq, 4 * P, S), 2)
            onehot = (iota_s == idx_all[:, :, None]).astype(f32)
            samp = jnp.sum(onehot * wgt_all[:, :, None], axis=1)        # (TLq, S)

            vh = value[:, h * D:(h + 1) * D]                            # (S, D)
            slab_vmem[:, h * D:(h + 1) * D] = jnp.dot(
                samp, vh, preferred_element_type=f32)                   # (TLq, D)

        # output projection from the head slab
        o_ref[0] = (jnp.dot(slab_vmem[...], wout_ref[...],
                            preferred_element_type=f32) + bout_ref[...])

    return kernel


def ms_deform_attn_pallas(query, reference_points, input_flatten, spatial_shape, params,
                          *, n_heads, n_points, lq_tile=128):
    (Wv, bv, Wox, box, Woy, boy, Wa, ba, Wout, bout) = params
    N, Lq, C = query.shape
    S = input_flatten.shape[1]
    H, W = spatial_shape
    M, P = n_heads, n_points
    D = C // M
    MP = M * P

    rp = reference_points.reshape(N, Lq, 2).astype(jnp.float32)   # n_levels == 1

    # Fuse the three narrow projections into one MXU matmul: (C, 3*M*P).
    Wcomb = jnp.concatenate([Wox, Woy, Wa], axis=1)
    bcomb = jnp.concatenate([box, boy, ba], axis=1)

    TLq = Lq if Lq <= lq_tile else lq_tile
    n_lq_tiles = pl.cdiv(Lq, TLq)

    weights = [Wv, bv, Wcomb, bcomb, Wout, bout]
    kernel = make_msda_kernel(TLq, S, C, M, P, D, H, W)

    in_specs = [
        pl.BlockSpec((1, TLq, C), lambda b, l: (b, l, 0)),   # query tile
        pl.BlockSpec((1, S, C), lambda b, l: (b, 0, 0)),     # input_flatten (resident per batch)
        pl.BlockSpec((1, TLq, 2), lambda b, l: (b, l, 0)),   # reference points tile
    ] + [pl.BlockSpec(w.shape, lambda b, l: (0, 0)) for w in weights]

    flops = int(2 * N * S * C * C            # value_proj (once per batch)
                + 2 * N * Lq * C * (3 * MP)  # fused offset/attention projection
                + 2 * N * Lq * S * C         # per-head sampling matmuls
                + 2 * N * Lq * C * C)        # output_proj
    transcendentals = int(N * Lq * M * (P + 1))
    bytes_accessed = int(4 * (query.size + input_flatten.size + rp.size
                              + N * Lq * C + sum(w.size for w in weights)))

    return pl.pallas_call(
        kernel,
        out_shape=jax.ShapeDtypeStruct((N, Lq, C), jnp.float32),
        grid=(N, n_lq_tiles),
        in_specs=in_specs,
        out_specs=pl.BlockSpec((1, TLq, C), lambda b, l: (b, l, 0)),
        scratch_shapes=[pltpu.VMEM((S, C), jnp.float32),    # cached value projection
                        pltpu.VMEM((TLq, C), jnp.float32)], # per-head output slab
        compiler_params=pltpu.CompilerParams(
            dimension_semantics=("parallel", "arbitrary"),
            vmem_limit_bytes=48 * 1024 * 1024),
        cost_estimate=pl.CostEstimate(flops=flops,
                                      transcendentals=transcendentals,
                                      bytes_accessed=bytes_accessed),
    )(query, input_flatten, rp, *weights)


def init_params(key, d_model, n_heads, n_levels, n_points):
    """Deterministic init matching MSDeformAttn._reset_parameters (weights stored (in, out))."""
    C, M, L, P = d_model, n_heads, n_levels, n_points
    k1, k2 = jax.random.split(key)

    def xavier(k, shape):
        a = math.sqrt(6.0 / (shape[0] + shape[1]))
        return jax.random.uniform(k, shape, jnp.float32, -a, a)

    Wv = xavier(k1, (C, C))
    bv = jnp.zeros((1, C), jnp.float32)
    Wout = xavier(k2, (C, C))
    bout = jnp.zeros((1, C), jnp.float32)

    # sampling_offsets: zero weight, directional-grid bias
    thetas = jnp.arange(M, dtype=jnp.float32) * (2.0 * math.pi / M)
    grid = jnp.stack([jnp.cos(thetas), jnp.sin(thetas)], axis=-1)           # (M, 2)
    grid = grid / jnp.max(jnp.abs(grid), axis=-1, keepdims=True)
    grid = jnp.tile(grid[:, None, None, :], (1, L, P, 1))                   # (M, L, P, 2)
    grid = grid * jnp.arange(1, P + 1, dtype=jnp.float32)[None, None, :, None]
    bo = grid.reshape(M * L * P, 2)
    Wox = jnp.zeros((C, M * L * P), jnp.float32)
    Woy = jnp.zeros((C, M * L * P), jnp.float32)
    box = bo[:, 0].reshape(1, -1)
    boy = bo[:, 1].reshape(1, -1)

    # attention_weights: zero weight, zero bias (uniform after softmax)
    Wa = jnp.zeros((C, M * L * P), jnp.float32)
    ba = jnp.zeros((1, M * L * P), jnp.float32)
    return (Wv, bv, Wox, box, Woy, boy, Wa, ba, Wout, bout)


def msda_reference(query, reference_points, input_flatten, spatial_shape, params,
                   *, n_heads, n_points):
    """Pure-JAX reference reproducing the PyTorch forward (for verification)."""
    Wv, bv, Wox, box, Woy, boy, Wa, ba, Wout, bout = params
    N, Lq, C = query.shape
    S = input_flatten.shape[1]
    H, W = spatial_shape
    M, P = n_heads, n_points
    D = C // M
    hp = jax.lax.Precision.HIGHEST

    value = (jnp.dot(input_flatten, Wv, precision=hp) + bv).reshape(N, S, M, D)
    offx = (jnp.dot(query, Wox, precision=hp) + box).reshape(N, Lq, M, P)
    offy = (jnp.dot(query, Woy, precision=hp) + boy).reshape(N, Lq, M, P)
    a = jax.nn.softmax((jnp.dot(query, Wa, precision=hp) + ba).reshape(N, Lq, M, P), axis=-1)

    rp = reference_points.reshape(N, Lq, 2)
    locx = rp[:, :, None, None, 0] + offx / W
    locy = rp[:, :, None, None, 1] + offy / H
    ix = locx * W - 0.5
    iy = locy * H - 0.5
    x0 = jnp.floor(ix)
    y0 = jnp.floor(iy)
    fx = ix - x0
    fy = iy - y0
    x0i = x0.astype(jnp.int32)
    y0i = y0.astype(jnp.int32)

    acc = jnp.zeros((N, Lq, M, D), jnp.float32)
    n_idx = jnp.arange(N)[:, None, None, None]
    m_idx = jnp.arange(M)[None, None, :, None]
    for dy in (0, 1):
        for dx in (0, 1):
            xi = x0i + dx
            yi = y0i + dy
            wx = fx if dx == 1 else 1.0 - fx
            wy = fy if dy == 1 else 1.0 - fy
            valid = (xi >= 0) & (xi < W) & (yi >= 0) & (yi < H)
            wgt = jnp.where(valid, wx * wy * a, 0.0)               # (N, Lq, M, P)
            idx = jnp.clip(yi * W + xi, 0, S - 1)                  # (N, Lq, M, P)
            sampled = value[n_idx, idx, m_idx, :]                  # (N, Lq, M, P, D)
            acc = acc + jnp.sum(wgt[..., None] * sampled, axis=3)
    out = acc.reshape(N, Lq, M * D)
    return jnp.dot(out, Wout, precision=hp) + bout


if __name__ == "__main__":
    d_model, n_heads, n_levels, n_points = 32, 4, 1, 4
    N, Lq = 2, 8
    H, W = 8, 8
    S = H * W

    key = jax.random.PRNGKey(0)
    kq, kx, kr, kp, ka = jax.random.split(key, 5)
    query = jax.random.normal(kq, (N, Lq, d_model), jnp.float32)
    input_flatten = jax.random.normal(kx, (N, S, d_model), jnp.float32)
    reference_points = jax.random.uniform(kr, (N, Lq, n_levels, 2), dtype=jnp.float32)

    params = init_params(kp, d_model, n_heads, n_levels, n_points)
    # Perturb the attention-weight projection (zero at PyTorch init) so the per-head
    # softmax path is exercised with non-uniform, query-dependent weights.
    Wv, bv, Wox, box, Woy, boy, Wa, ba, Wout, bout = params
    Wa = Wa + 0.5 * jax.random.normal(ka, Wa.shape, jnp.float32)
    params = (Wv, bv, Wox, box, Woy, boy, Wa, ba, Wout, bout)

    out = ms_deform_attn_pallas(query, reference_points, input_flatten, (H, W), params,
                                n_heads=n_heads, n_points=n_points)
    out = jax.block_until_ready(out)

    ref = msda_reference(query, reference_points, input_flatten, (H, W), params,
                         n_heads=n_heads, n_points=n_points)
    assert out.shape == (N, Lq, d_model)
    max_err = float(jnp.max(jnp.abs(out - ref)))
    assert jnp.allclose(out, ref, atol=1e-2, rtol=1e-2), f"max abs err {max_err}"
    print("KERNEL_OK")
</pallas_src>

<mosaic_0001>
module attributes {stable_mosaic.version = 11 : i64} {
  func.func @kernel(%arg0: i32, %arg1: i32, %arg2: memref<1x8x32xf32, #tpu.memory_space<vmem>>, %arg3: memref<1x64x32xf32, #tpu.memory_space<vmem>>, %arg4: memref<1x8x2xf32, #tpu.memory_space<vmem>>, %arg5: memref<32x32xf32, #tpu.memory_space<vmem>>, %arg6: memref<1x32xf32, #tpu.memory_space<vmem>>, %arg7: memref<32x48xf32, #tpu.memory_space<vmem>>, %arg8: memref<1x48xf32, #tpu.memory_space<vmem>>, %arg9: memref<32x32xf32, #tpu.memory_space<vmem>>, %arg10: memref<1x32xf32, #tpu.memory_space<vmem>>, %arg11: memref<1x8x32xf32, #tpu.memory_space<vmem>>, %arg12: memref<64x32xf32, #tpu.memory_space<vmem>>, %arg13: memref<8x32xf32, #tpu.memory_space<vmem>>) attributes {dimension_semantics = [#tpu.dimension_semantics<parallel>, #tpu.dimension_semantics<arbitrary>], iteration_bounds = array<i64: 2, 1>, scalar_prefetch = 0 : i64, scratch_operands = 2 : i64, tpu.core_type = #tpu.core_type<tc>, window_params = [{transform_indices = @transform_0, window_bounds = array<i64: 1, 8, 32>}, {transform_indices = @transform_1, window_bounds = array<i64: 1, 64, 32>}, {transform_indices = @transform_2, window_bounds = array<i64: 1, 8, 2>}, {pipeline_mode = #tpu.pipeline_mode<synchronous>, transform_indices = @transform_3, window_bounds = array<i64: 32, 32>}, {pipeline_mode = #tpu.pipeline_mode<synchronous>, transform_indices = @transform_4, window_bounds = array<i64: 1, 32>}, {pipeline_mode = #tpu.pipeline_mode<synchronous>, transform_indices = @transform_5, window_bounds = array<i64: 32, 48>}, {pipeline_mode = #tpu.pipeline_mode<synchronous>, transform_indices = @transform_6, window_bounds = array<i64: 1, 48>}, {pipeline_mode = #tpu.pipeline_mode<synchronous>, transform_indices = @transform_7, window_bounds = array<i64: 32, 32>}, {pipeline_mode = #tpu.pipeline_mode<synchronous>, transform_indices = @transform_8, window_bounds = array<i64: 1, 32>}, {transform_indices = @transform_9, window_bounds = array<i64: 1, 8, 32>}]} {
    %c0_i32 = arith.constant 0 : i32
    %0 = arith.cmpi eq, %arg1, %c0_i32 : i32
    %1 = arith.extui %0 : i1 to i32
    %c0_i32_0 = arith.constant 0 : i32
    %2 = arith.cmpi ne, %1, %c0_i32_0 : i32
    scf.if %2 {
      %c0_228 = arith.constant 0 : index
      %c0_229 = arith.constant 0 : index
      %c0_230 = arith.constant 0 : index
      %651 = vector.load %arg3[%c0_228, %c0_229, %c0_230] : memref<1x64x32xf32, #tpu.memory_space<vmem>>, vector<1x64x32xf32>
      %652 = vector.shape_cast %651 : vector<1x64x32xf32> to vector<64x32xf32>
      %c0_231 = arith.constant 0 : index
      %c0_232 = arith.constant 0 : index
      %653 = vector.load %arg5[%c0_231, %c0_232] : memref<32x32xf32, #tpu.memory_space<vmem>>, vector<32x32xf32>
      %cst_233 = arith.constant dense<0.000000e+00> : vector<64x32xf32>
      %654 = tpu.matmul %652, %653, %cst_233 {dimension_numbers = #tpu.dot_dimension_numbers<[1], [0], [0], [1], [0, 0, 1, 1], [], []>} : vector<64x32xf32>, vector<32x32xf32>, vector<64x32xf32> -> vector<64x32xf32>
      %c0_234 = arith.constant 0 : index
      %c0_235 = arith.constant 0 : index
      %655 = vector.load %arg6[%c0_234, %c0_235] : memref<1x32xf32, #tpu.memory_space<vmem>>, vector<1x32xf32>
      %656 = vector.broadcast %655 : vector<1x32xf32> to vector<64x32xf32>
      %657 = arith.addf %654, %656 : vector<64x32xf32>
      %c0_236 = arith.constant 0 : index
      %c0_237 = arith.constant 0 : index
      %658 = vector.load %arg12[%c0_236, %c0_237] : memref<64x32xf32, #tpu.memory_space<vmem>>, vector<64x32xf32>
      tpu.vector_store %arg12[%c0_236, %c0_237], %657 {strides = array<i32>} : memref<64x32xf32, #tpu.memory_space<vmem>>, vector<64x32xf32>,
    } else {
    }
    %c0 = arith.constant 0 : index
    %c0_1 = arith.constant 0 : index
    %c0_2 = arith.constant 0 : index
    %3 = vector.load %arg2[%c0, %c0_1, %c0_2] : memref<1x8x32xf32, #tpu.memory_space<vmem>>, vector<1x8x32xf32>
    %4 = vector.shape_cast %3 : vector<1x8x32xf32> to vector<8x32xf32>
    %c0_3 = arith.constant 0 : index
    %c0_4 = arith.constant 0 : index
    %c0_5 = arith.constant 0 : index
    %5 = vector.load %arg4[%c0_3, %c0_4, %c0_5] : memref<1x8x2xf32, #tpu.memory_space<vmem>>, vector<1x8x2xf32>
    %6 = vector.shape_cast %5 : vector<1x8x2xf32> to vector<8x2xf32>
    %c0_6 = arith.constant 0 : index
    %c0_7 = arith.constant 0 : index
    %7 = vector.load %arg7[%c0_6, %c0_7] : memref<32x48xf32, #tpu.memory_space<vmem>>, vector<32x48xf32>
    %cst = arith.constant dense<0.000000e+00> : vector<8x48xf32>
    %8 = tpu.matmul %4, %7, %cst {dimension_numbers = #tpu.dot_dimension_numbers<[1], [0], [0], [1], [0, 0, 1, 1], [], []>} : vector<8x32xf32>, vector<32x48xf32>, vector<8x48xf32> -> vector<8x48xf32>
    %c0_8 = arith.constant 0 : index
    %c0_9 = arith.constant 0 : index
    %9 = vector.load %arg8[%c0_8, %c0_9] : memref<1x48xf32, #tpu.memory_space<vmem>>, vector<1x48xf32>
    %10 = vector.broadcast %9 : vector<1x48xf32> to vector<8x48xf32>
    %11 = arith.addf %8, %10 : vector<8x48xf32>
    %12 = vector.extract_strided_slice %11 {offsets = [0, 0], sizes = [8, 16], strides = [1, 1]} : vector<8x48xf32> to vector<8x16xf32>
    %13 = vector.extract_strided_slice %11 {offsets = [0, 16], sizes = [8, 16], strides = [1, 1]} : vector<8x48xf32> to vector<8x16xf32>
    %14 = vector.extract_strided_slice %11 {offsets = [0, 32], sizes = [8, 16], strides = [1, 1]} : vector<8x48xf32> to vector<8x16xf32>
    %15 = vector.extract_strided_slice %6 {offsets = [0, 0], sizes = [8, 1], strides = [1, 1]} : vector<8x2xf32> to vector<8x1xf32>
    %16 = vector.extract_strided_slice %6 {offsets = [0, 1], sizes = [8, 1], strides = [1, 1]} : vector<8x2xf32> to vector<8x1xf32>
    %c0_10 = arith.constant 0 : index
    %c0_11 = arith.constant 0 : index
    %17 = vector.load %arg12[%c0_10, %c0_11] : memref<64x32xf32, #tpu.memory_space<vmem>>, vector<64x32xf32>
    %18 = vector.extract_strided_slice %14 {offsets = [0, 0], sizes = [8, 4], strides = [1, 1]} : vector<8x16xf32> to vector<8x4xf32>
    %cst_12 = arith.constant dense<0xFF800000> : vector<8xf32>
    %19 = vector.multi_reduction <maximumf>, %18, %cst_12 [1] : vector<8x4xf32> to vector<8xf32>
    %20 = vector.shape_cast %19 : vector<8xf32> to vector<8x1xf32>
    %21 = vector.broadcast %20 : vector<8x1xf32> to vector<8x4xf32>
    %22 = arith.subf %18, %21 : vector<8x4xf32>
    %23 = math.exp %22 : vector<8x4xf32>
    %cst_13 = arith.constant dense<0.000000e+00> : vector<8xf32>
    %24 = vector.multi_reduction <add>, %23, %cst_13 [1] : vector<8x4xf32> to vector<8xf32>
    %25 = vector.shape_cast %24 : vector<8xf32> to vector<8x1xf32>
    %26 = tpu.reciprocal %25 {approx = true} : vector<8x1xf32> -> vector<8x1xf32>
    %27 = vector.broadcast %26 : vector<8x1xf32> to vector<8x4xf32>
    %28 = arith.mulf %23, %27 : vector<8x4xf32>
    %29 = vector.extract_strided_slice %12 {offsets = [0, 0], sizes = [8, 4], strides = [1, 1]} : vector<8x16xf32> to vector<8x4xf32>
    %30 = vector.extract_strided_slice %13 {offsets = [0, 0], sizes = [8, 4], strides = [1, 1]} : vector<8x16xf32> to vector<8x4xf32>
    %cst_14 = arith.constant 1.250000e-01 : f32
    %31 = vector.broadcast %cst_14 : f32 to vector<8x4xf32>
    %32 = arith.mulf %29, %31 : vector<8x4xf32>
    %33 = vector.broadcast %15 : vector<8x1xf32> to vector<8x4xf32>
    %34 = arith.addf %33, %32 : vector<8x4xf32>
    %cst_15 = arith.constant 8.000000e+00 : f32
    %35 = vector.broadcast %cst_15 : f32 to vector<8x4xf32>
    %36 = arith.mulf %34, %35 : vector<8x4xf32>
    %cst_16 = arith.constant 5.000000e-01 : f32
    %37 = vector.broadcast %cst_16 : f32 to vector<8x4xf32>
    %38 = arith.subf %36, %37 : vector<8x4xf32>
    %cst_17 = arith.constant 1.250000e-01 : f32
    %39 = vector.broadcast %cst_17 : f32 to vector<8x4xf32>
    %40 = arith.mulf %30, %39 : vector<8x4xf32>
    %41 = vector.broadcast %16 : vector<8x1xf32> to vector<8x4xf32>
    %42 = arith.addf %41, %40 : vector<8x4xf32>
    %cst_18 = arith.constant 8.000000e+00 : f32
    %43 = vector.broadcast %cst_18 : f32 to vector<8x4xf32>
    %44 = arith.mulf %42, %43 : vector<8x4xf32>
    %cst_19 = arith.constant 5.000000e-01 : f32
    %45 = vector.broadcast %cst_19 : f32 to vector<8x4xf32>
    %46 = arith.subf %44, %45 : vector<8x4xf32>
    %47 = math.floor %38 : vector<8x4xf32>
    %48 = math.floor %46 : vector<8x4xf32>
    %49 = arith.subf %38, %47 : vector<8x4xf32>
    %50 = arith.subf %46, %48 : vector<8x4xf32>
    %51 = arith.fptosi %47 : vector<8x4xf32> to vector<8x4xi32>
    %52 = arith.fptosi %48 : vector<8x4xf32> to vector<8x4xi32>
    %cst_20 = arith.constant 1.000000e+00 : f32
    %53 = vector.broadcast %cst_20 : f32 to vector<8x4xf32>
    %54 = arith.subf %53, %50 : vector<8x4xf32>
    %c0_i32_21 = arith.constant 0 : i32
    %55 = vector.broadcast %c0_i32_21 : i32 to vector<8x4xi32>
    %56 = arith.addi %52, %55 : vector<8x4xi32>
    %cst_22 = arith.constant 1.000000e+00 : f32
    %57 = vector.broadcast %cst_22 : f32 to vector<8x4xf32>
    %58 = arith.subf %57, %49 : vector<8x4xf32>
    %c0_i32_23 = arith.constant 0 : i32
    %59 = vector.broadcast %c0_i32_23 : i32 to vector<8x4xi32>
    %60 = arith.addi %51, %59 : vector<8x4xi32>
    %c0_i32_24 = arith.constant 0 : i32
    %61 = vector.broadcast %c0_i32_24 : i32 to vector<8x4xi32>
    %62 = arith.cmpi sge, %60, %61 : vector<8x4xi32>
    %c8_i32 = arith.constant 8 : i32
    %63 = vector.broadcast %c8_i32 : i32 to vector<8x4xi32>
    %64 = arith.cmpi slt, %60, %63 : vector<8x4xi32>
    %65 = arith.andi %62, %64 : vector<8x4xi1>
    %c0_i32_25 = arith.constant 0 : i32
    %66 = vector.broadcast %c0_i32_25 : i32 to vector<8x4xi32>
    %67 = arith.cmpi sge, %56, %66 : vector<8x4xi32>
    %68 = arith.andi %65, %67 : vector<8x4xi1>
    %c8_i32_26 = arith.constant 8 : i32
    %69 = vector.broadcast %c8_i32_26 : i32 to vector<8x4xi32>
    %70 = arith.cmpi slt, %56, %69 : vector<8x4xi32>
    %71 = arith.andi %68, %70 : vector<8x4xi1>
    %72 = arith.mulf %58, %54 : vector<8x4xf32>
    %73 = arith.mulf %72, %28 : vector<8x4xf32>
    %cst_27 = arith.constant 0.000000e+00 : f32
    %74 = vector.broadcast %cst_27 : f32 to vector<8x4xf32>
    %75 = arith.select %71, %73, %74 : vector<8x4xi1>, vector<8x4xf32>
    %c8_i32_28 = arith.constant 8 : i32
    %76 = vector.broadcast %c8_i32_28 : i32 to vector<8x4xi32>
    %77 = arith.muli %56, %76 : vector<8x4xi32>
    %78 = arith.addi %77, %60 : vector<8x4xi32>
    %c0_i32_29 = arith.constant 0 : i32
    %c63_i32 = arith.constant 63 : i32
    %79 = vector.broadcast %c0_i32_29 : i32 to vector<8x4xi32>
    %80 = arith.maxsi %79, %78 : vector<8x4xi32>
    %81 = vector.broadcast %c63_i32 : i32 to vector<8x4xi32>
    %82 = arith.minsi %81, %80 : vector<8x4xi32>
    %c1_i32 = arith.constant 1 : i32
    %83 = vector.broadcast %c1_i32 : i32 to vector<8x4xi32>
    %84 = arith.addi %51, %83 : vector<8x4xi32>
    %c0_i32_30 = arith.constant 0 : i32
    %85 = vector.broadcast %c0_i32_30 : i32 to vector<8x4xi32>
    %86 = arith.cmpi sge, %84, %85 : vector<8x4xi32>
    %c8_i32_31 = arith.constant 8 : i32
    %87 = vector.broadcast %c8_i32_31 : i32 to vector<8x4xi32>
    %88 = arith.cmpi slt, %84, %87 : vector<8x4xi32>
    %89 = arith.andi %86, %88 : vector<8x4xi1>
    %c0_i32_32 = arith.constant 0 : i32
    %90 = vector.broadcast %c0_i32_32 : i32 to vector<8x4xi32>
    %91 = arith.cmpi sge, %56, %90 : vector<8x4xi32>
    %92 = arith.andi %89, %91 : vector<8x4xi1>
    %c8_i32_33 = arith.constant 8 : i32
    %93 = vector.broadcast %c8_i32_33 : i32 to vector<8x4xi32>
    %94 = arith.cmpi slt, %56, %93 : vector<8x4xi32>
    %95 = arith.andi %92, %94 : vector<8x4xi1>
    %96 = arith.mulf %49, %54 : vector<8x4xf32>
    %97 = arith.mulf %96, %28 : vector<8x4xf32>
    %cst_34 = arith.constant 0.000000e+00 : f32
    %98 = vector.broadcast %cst_34 : f32 to vector<8x4xf32>
    %99 = arith.select %95, %97, %98 : vector<8x4xi1>, vector<8x4xf32>
    %c8_i32_35 = arith.constant 8 : i32
    %100 = vector.broadcast %c8_i32_35 : i32 to vector<8x4xi32>
    %101 = arith.muli %56, %100 : vector<8x4xi32>
    %102 = arith.addi %101, %84 : vector<8x4xi32>
    %c0_i32_36 = arith.constant 0 : i32
    %c63_i32_37 = arith.constant 63 : i32
    %103 = vector.broadcast %c0_i32_36 : i32 to vector<8x4xi32>
    %104 = arith.maxsi %103, %102 : vector<8x4xi32>
    %105 = vector.broadcast %c63_i32_37 : i32 to vector<8x4xi32>
    %106 = arith.minsi %105, %104 : vector<8x4xi32>
    %c1_i32_38 = arith.constant 1 : i32
    %107 = vector.broadcast %c1_i32_38 : i32 to vector<8x4xi32>
    %108 = arith.addi %52, %107 : vector<8x4xi32>
    %cst_39 = arith.constant 1.000000e+00 : f32
    %109 = vector.broadcast %cst_39 : f32 to vector<8x4xf32>
    %110 = arith.subf %109, %49 : vector<8x4xf32>
    %c0_i32_40 = arith.constant 0 : i32
    %111 = vector.broadcast %c0_i32_40 : i32 to vector<8x4xi32>
    %112 = arith.addi %51, %111 : vector<8x4xi32>
    %c0_i32_41 = arith.constant 0 : i32
    %113 = vector.broadcast %c0_i32_41 : i32 to vector<8x4xi32>
    %114 = arith.cmpi sge, %112, %113 : vector<8x4xi32>
    %c8_i32_42 = arith.constant 8 : i32
    %115 = vector.broadcast %c8_i32_42 : i32 to vector<8x4xi32>
    %116 = arith.cmpi slt, %112, %115 : vector<8x4xi32>
    %117 = arith.andi %114, %116 : vector<8x4xi1>
    %c0_i32_43 = arith.constant 0 : i32
    %118 = vector.broadcast %c0_i32_43 : i32 to vector<8x4xi32>
    %119 = arith.cmpi sge, %108, %118 : vector<8x4xi32>
    %120 = arith.andi %117, %119 : vector<8x4xi1>
    %c8_i32_44 = arith.constant 8 : i32
    %121 = vector.broadcast %c8_i32_44 : i32 to vector<8x4xi32>
    %122 = arith.cmpi slt, %108, %121 : vector<8x4xi32>
    %123 = arith.andi %120, %122 : vector<8x4xi1>
    %124 = arith.mulf %110, %50 : vector<8x4xf32>
    %125 = arith.mulf %124, %28 : vector<8x4xf32>
    %cst_45 = arith.constant 0.000000e+00 : f32
    %126 = vector.broadcast %cst_45 : f32 to vector<8x4xf32>
    %127 = arith.select %123, %125, %126 : vector<8x4xi1>, vector<8x4xf32>
    %c8_i32_46 = arith.constant 8 : i32
    %128 = vector.broadcast %c8_i32_46 : i32 to vector<8x4xi32>
    %129 = arith.muli %108, %128 : vector<8x4xi32>
    %130 = arith.addi %129, %112 : vector<8x4xi32>
    %c0_i32_47 = arith.constant 0 : i32
    %c63_i32_48 = arith.constant 63 : i32
    %131 = vector.broadcast %c0_i32_47 : i32 to vector<8x4xi32>
    %132 = arith.maxsi %131, %130 : vector<8x4xi32>
    %133 = vector.broadcast %c63_i32_48 : i32 to vector<8x4xi32>
    %134 = arith.minsi %133, %132 : vector<8x4xi32>
    %c1_i32_49 = arith.constant 1 : i32
    %135 = vector.broadcast %c1_i32_49 : i32 to vector<8x4xi32>
    %136 = arith.addi %51, %135 : vector<8x4xi32>
    %c0_i32_50 = arith.constant 0 : i32
    %137 = vector.broadcast %c0_i32_50 : i32 to vector<8x4xi32>
    %138 = arith.cmpi sge, %136, %137 : vector<8x4xi32>
    %c8_i32_51 = arith.constant 8 : i32
    %139 = vector.broadcast %c8_i32_51 : i32 to vector<8x4xi32>
    %140 = arith.cmpi slt, %136, %139 : vector<8x4xi32>
    %141 = arith.andi %138, %140 : vector<8x4xi1>
    %c0_i32_52 = arith.constant 0 : i32
    %142 = vector.broadcast %c0_i32_52 : i32 to vector<8x4xi32>
    %143 = arith.cmpi sge, %108, %142 : vector<8x4xi32>
    %144 = arith.andi %141, %143 : vector<8x4xi1>
    %c8_i32_53 = arith.constant 8 : i32
    %145 = vector.broadcast %c8_i32_53 : i32 to vector<8x4xi32>
    %146 = arith.cmpi slt, %108, %145 : vector<8x4xi32>
    %147 = arith.andi %144, %146 : vector<8x4xi1>
    %148 = arith.mulf %49, %50 : vector<8x4xf32>
    %149 = arith.mulf %148, %28 : vector<8x4xf32>
    %cst_54 = arith.constant 0.000000e+00 : f32
    %150 = vector.broadcast %cst_54 : f32 to vector<8x4xf32>
    %151 = arith.select %147, %149, %150 : vector<8x4xi1>, vector<8x4xf32>
    %c8_i32_55 = arith.constant 8 : i32
    %152 = vector.broadcast %c8_i32_55 : i32 to vector<8x4xi32>
    %153 = arith.muli %108, %152 : vector<8x4xi32>
    %154 = arith.addi %153, %136 : vector<8x4xi32>
    %c0_i32_56 = arith.constant 0 : i32
    %c63_i32_57 = arith.constant 63 : i32
    %155 = vector.broadcast %c0_i32_56 : i32 to vector<8x4xi32>
    %156 = arith.maxsi %155, %154 : vector<8x4xi32>
    %157 = vector.broadcast %c63_i32_57 : i32 to vector<8x4xi32>
    %158 = arith.minsi %157, %156 : vector<8x4xi32>
    %159 = tpu.concatenate %82, %106, %134, %158 in 1 : vector<8x4xi32>, vector<8x4xi32>, vector<8x4xi32>, vector<8x4xi32> -> vector<8x16xi32>
    %160 = tpu.concatenate %75, %99, %127, %151 in 1 : vector<8x4xf32>, vector<8x4xf32>, vector<8x4xf32>, vector<8x4xf32> -> vector<8x16xf32>
    %161 = tpu.iota {dimensions = array<i32: 2>} : vector<8x16x64xi32>
    %162 = vector.shape_cast %159 : vector<8x16xi32> to vector<8x16x1xi32>
    %163 = vector.broadcast %162 : vector<8x16x1xi32> to vector<8x16x64xi32>
    %164 = arith.cmpi eq, %161, %163 : vector<8x16x64xi32>
    %165 = arith.extui %164 : vector<8x16x64xi1> to vector<8x16x64xi32>
    %166 = arith.sitofp %165 : vector<8x16x64xi32> to vector<8x16x64xf32>
    %167 = vector.shape_cast %160 : vector<8x16xf32> to vector<8x16x1xf32>
    %168 = vector.broadcast %167 : vector<8x16x1xf32> to vector<8x16x64xf32>
    %169 = arith.mulf %166, %168 : vector<8x16x64xf32>
    %cst_58 = arith.constant dense<0.000000e+00> : vector<8x64xf32>
    %170 = vector.multi_reduction <add>, %169, %cst_58 [1] : vector<8x16x64xf32> to vector<8x64xf32>
    %171 = vector.extract_strided_slice %17 {offsets = [0, 0], sizes = [64, 8], strides = [1, 1]} : vector<64x32xf32> to vector<64x8xf32>
    %cst_59 = arith.constant dense<0.000000e+00> : vector<8x8xf32>
    %172 = tpu.matmul %170, %171, %cst_59 {dimension_numbers = #tpu.dot_dimension_numbers<[1], [0], [0], [1], [0, 0, 1, 1], [], []>} : vector<8x64xf32>, vector<64x8xf32>, vector<8x8xf32> -> vector<8x8xf32>
    %c0_60 = arith.constant 0 : index
    %c0_61 = arith.constant 0 : index
    %173 = vector.load %arg13[%c0_60, %c0_61] : memref<8x32xf32, #tpu.memory_space<vmem>>, vector<8x8xf32>
    tpu.vector_store %arg13[%c0_60, %c0_61], %172 {strides = array<i32>} : memref<8x32xf32, #tpu.memory_space<vmem>>, vector<8x8xf32>,
    %174 = vector.extract_strided_slice %14 {offsets = [0, 4], sizes = [8, 4], strides = [1, 1]} : vector<8x16xf32> to vector<8x4xf32>
    %cst_62 = arith.constant dense<0xFF800000> : vector<8xf32>
    %175 = vector.multi_reduction <maximumf>, %174, %cst_62 [1] : vector<8x4xf32> to vector<8xf32>
    %176 = vector.shape_cast %175 : vector<8xf32> to vector<8x1xf32>
    %177 = vector.broadcast %176 : vector<8x1xf32> to vector<8x4xf32>
    %178 = arith.subf %174, %177 : vector<8x4xf32>
    %179 = math.exp %178 : vector<8x4xf32>
    %cst_63 = arith.constant dense<0.000000e+00> : vector<8xf32>
    %180 = vector.multi_reduction <add>, %179, %cst_63 [1] : vector<8x4xf32> to vector<8xf32>
    %181 = vector.shape_cast %180 : vector<8xf32> to vector<8x1xf32>
    %182 = tpu.reciprocal %181 {approx = true} : vector<8x1xf32> -> vector<8x1xf32>
    %183 = vector.broadcast %182 : vector<8x1xf32> to vector<8x4xf32>
    %184 = arith.mulf %179, %183 : vector<8x4xf32>
    %185 = vector.extract_strided_slice %12 {offsets = [0, 4], sizes = [8, 4], strides = [1, 1]} : vector<8x16xf32> to vector<8x4xf32>
    %186 = vector.extract_strided_slice %13 {offsets = [0, 4], sizes = [8, 4], strides = [1, 1]} : vector<8x16xf32> to vector<8x4xf32>
    %cst_64 = arith.constant 1.250000e-01 : f32
    %187 = vector.broadcast %cst_64 : f32 to vector<8x4xf32>
    %188 = arith.mulf %185, %187 : vector<8x4xf32>
    %189 = vector.broadcast %15 : vector<8x1xf32> to vector<8x4xf32>
    %190 = arith.addf %189, %188 : vector<8x4xf32>
    %cst_65 = arith.constant 8.000000e+00 : f32
    %191 = vector.broadcast %cst_65 : f32 to vector<8x4xf32>
    %192 = arith.mulf %190, %191 : vector<8x4xf32>
    %cst_66 = arith.constant 5.000000e-01 : f32
    %193 = vector.broadcast %cst_66 : f32 to vector<8x4xf32>
    %194 = arith.subf %192, %193 : vector<8x4xf32>
    %cst_67 = arith.constant 1.250000e-01 : f32
    %195 = vector.broadcast %cst_67 : f32 to vector<8x4xf32>
    %196 = arith.mulf %186, %195 : vector<8x4xf32>
    %197 = vector.broadcast %16 : vector<8x1xf32> to vector<8x4xf32>
    %198 = arith.addf %197, %196 : vector<8x4xf32>
    %cst_68 = arith.constant 8.000000e+00 : f32
    %199 = vector.broadcast %cst_68 : f32 to vector<8x4xf32>
    %200 = arith.mulf %198, %199 : vector<8x4xf32>
    %cst_69 = arith.constant 5.000000e-01 : f32
    %201 = vector.broadcast %cst_69 : f32 to vector<8x4xf32>
    %202 = arith.subf %200, %201 : vector<8x4xf32>
    %203 = math.floor %194 : vector<8x4xf32>
    %204 = math.floor %202 : vector<8x4xf32>
    %205 = arith.subf %194, %203 : vector<8x4xf32>
    %206 = arith.subf %202, %204 : vector<8x4xf32>
    %207 = arith.fptosi %203 : vector<8x4xf32> to vector<8x4xi32>
    %208 = arith.fptosi %204 : vector<8x4xf32> to vector<8x4xi32>
    %cst_70 = arith.constant 1.000000e+00 : f32
    %209 = vector.broadcast %cst_70 : f32 to vector<8x4xf32>
    %210 = arith.subf %209, %206 : vector<8x4xf32>
    %c0_i32_71 = arith.constant 0 : i32
    %211 = vector.broadcast %c0_i32_71 : i32 to vector<8x4xi32>
    %212 = arith.addi %208, %211 : vector<8x4xi32>
    %cst_72 = arith.constant 1.000000e+00 : f32
    %213 = vector.broadcast %cst_72 : f32 to vector<8x4xf32>
    %214 = arith.subf %213, %205 : vector<8x4xf32>
    %c0_i32_73 = arith.constant 0 : i32
    %215 = vector.broadcast %c0_i32_73 : i32 to vector<8x4xi32>
    %216 = arith.addi %207, %215 : vector<8x4xi32>
    %c0_i32_74 = arith.constant 0 : i32
    %217 = vector.broadcast %c0_i32_74 : i32 to vector<8x4xi32>
    %218 = arith.cmpi sge, %216, %217 : vector<8x4xi32>
    %c8_i32_75 = arith.constant 8 : i32
    %219 = vector.broadcast %c8_i32_75 : i32 to vector<8x4xi32>
    %220 = arith.cmpi slt, %216, %219 : vector<8x4xi32>
    %221 = arith.andi %218, %220 : vector<8x4xi1>
    %c0_i32_76 = arith.constant 0 : i32
    %222 = vector.broadcast %c0_i32_76 : i32 to vector<8x4xi32>
    %223 = arith.cmpi sge, %212, %222 : vector<8x4xi32>
    %224 = arith.andi %221, %223 : vector<8x4xi1>
    %c8_i32_77 = arith.constant 8 : i32
    %225 = vector.broadcast %c8_i32_77 : i32 to vector<8x4xi32>
    %226 = arith.cmpi slt, %212, %225 : vector<8x4xi32>
    %227 = arith.andi %224, %226 : vector<8x4xi1>
    %228 = arith.mulf %214, %210 : vector<8x4xf32>
    %229 = arith.mulf %228, %184 : vector<8x4xf32>
    %cst_78 = arith.constant 0.000000e+00 : f32
    %230 = vector.broadcast %cst_78 : f32 to vector<8x4xf32>
    %231 = arith.select %227, %229, %230 : vector<8x4xi1>, vector<8x4xf32>
    %c8_i32_79 = arith.constant 8 : i32
    %232 = vector.broadcast %c8_i32_79 : i32 to vector<8x4xi32>
    %233 = arith.muli %212, %232 : vector<8x4xi32>
    %234 = arith.addi %233, %216 : vector<8x4xi32>
    %c0_i32_80 = arith.constant 0 : i32
    %c63_i32_81 = arith.constant 63 : i32
    %235 = vector.broadcast %c0_i32_80 : i32 to vector<8x4xi32>
    %236 = arith.maxsi %235, %234 : vector<8x4xi32>
    %237 = vector.broadcast %c63_i32_81 : i32 to vector<8x4xi32>
    %238 = arith.minsi %237, %236 : vector<8x4xi32>
    %c1_i32_82 = arith.constant 1 : i32
    %239 = vector.broadcast %c1_i32_82 : i32 to vector<8x4xi32>
    %240 = arith.addi %207, %239 : vector<8x4xi32>
    %c0_i32_83 = arith.constant 0 : i32
    %241 = vector.broadcast %c0_i32_83 : i32 to vector<8x4xi32>
    %242 = arith.cmpi sge, %240, %241 : vector<8x4xi32>
    %c8_i32_84 = arith.constant 8 : i32
    %243 = vector.broadcast %c8_i32_84 : i32 to vector<8x4xi32>
    %244 = arith.cmpi slt, %240, %243 : vector<8x4xi32>
    %245 = arith.andi %242, %244 : vector<8x4xi1>
    %c0_i32_85 = arith.constant 0 : i32
    %246 = vector.broadcast %c0_i32_85 : i32 to vector<8x4xi32>
    %247 = arith.cmpi sge, %212, %246 : vector<8x4xi32>
    %248 = arith.andi %245, %247 : vector<8x4xi1>
    %c8_i32_86 = arith.constant 8 : i32
    %249 = vector.broadcast %c8_i32_86 : i32 to vector<8x4xi32>
    %250 = arith.cmpi slt, %212, %249 : vector<8x4xi32>
    %251 = arith.andi %248, %250 : vector<8x4xi1>
    %252 = arith.mulf %205, %210 : vector<8x4xf32>
    %253 = arith.mulf %252, %184 : vector<8x4xf32>
    %cst_87 = arith.constant 0.000000e+00 : f32
    %254 = vector.broadcast %cst_87 : f32 to vector<8x4xf32>
    %255 = arith.select %251, %253, %254 : vector<8x4xi1>, vector<8x4xf32>
    %c8_i32_88 = arith.constant 8 : i32
    %256 = vector.broadcast %c8_i32_88 : i32 to vector<8x4xi32>
    %257 = arith.muli %212, %256 : vector<8x4xi32>
    %258 = arith.addi %257, %240 : vector<8x4xi32>
    %c0_i32_89 = arith.constant 0 : i32
    %c63_i32_90 = arith.constant 63 : i32
    %259 = vector.broadcast %c0_i32_89 : i32 to vector<8x4xi32>
    %260 = arith.maxsi %259, %258 : vector<8x4xi32>
    %261 = vector.broadcast %c63_i32_90 : i32 to vector<8x4xi32>
    %262 = arith.minsi %261, %260 : vector<8x4xi32>
    %c1_i32_91 = arith.constant 1 : i32
    %263 = vector.broadcast %c1_i32_91 : i32 to vector<8x4xi32>
    %264 = arith.addi %208, %263 : vector<8x4xi32>
    %cst_92 = arith.constant 1.000000e+00 : f32
    %265 = vector.broadcast %cst_92 : f32 to vector<8x4xf32>
    %266 = arith.subf %265, %205 : vector<8x4xf32>
    %c0_i32_93 = arith.constant 0 : i32
    %267 = vector.broadcast %c0_i32_93 : i32 to vector<8x4xi32>
    %268 = arith.addi %207, %267 : vector<8x4xi32>
    %c0_i32_94 = arith.constant 0 : i32
    %269 = vector.broadcast %c0_i32_94 : i32 to vector<8x4xi32>
    %270 = arith.cmpi sge, %268, %269 : vector<8x4xi32>
    %c8_i32_95 = arith.constant 8 : i32
    %271 = vector.broadcast %c8_i32_95 : i32 to vector<8x4xi32>
    %272 = arith.cmpi slt, %268, %271 : vector<8x4xi32>
    %273 = arith.andi %270, %272 : vector<8x4xi1>
    %c0_i32_96 = arith.constant 0 : i32
    %274 = vector.broadcast %c0_i32_96 : i32 to vector<8x4xi32>
    %275 = arith.cmpi sge, %264, %274 : vector<8x4xi32>
    %276 = arith.andi %273, %275 : vector<8x4xi1>
    %c8_i32_97 = arith.constant 8 : i32
    %277 = vector.broadcast %c8_i32_97 : i32 to vector<8x4xi32>
    %278 = arith.cmpi slt, %264, %277 : vector<8x4xi32>
    %279 = arith.andi %276, %278 : vector<8x4xi1>
    %280 = arith.mulf %266, %206 : vector<8x4xf32>
    %281 = arith.mulf %280, %184 : vector<8x4xf32>
    %cst_98 = arith.constant 0.000000e+00 : f32
    %282 = vector.broadcast %cst_98 : f32 to vector<8x4xf32>
    %283 = arith.select %279, %281, %282 : vector<8x4xi1>, vector<8x4xf32>
    %c8_i32_99 = arith.constant 8 : i32
    %284 = vector.broadcast %c8_i32_99 : i32 to vector<8x4xi32>
    %285 = arith.muli %264, %284 : vector<8x4xi32>
    %286 = arith.addi %285, %268 : vector<8x4xi32>
    %c0_i32_100 = arith.constant 0 : i32
    %c63_i32_101 = arith.constant 63 : i32
    %287 = vector.broadcast %c0_i32_100 : i32 to vector<8x4xi32>
    %288 = arith.maxsi %287, %286 : vector<8x4xi32>
    %289 = vector.broadcast %c63_i32_101 : i32 to vector<8x4xi32>
    %290 = arith.minsi %289, %288 : vector<8x4xi32>
    %c1_i32_102 = arith.constant 1 : i32
    %291 = vector.broadcast %c1_i32_102 : i32 to vector<8x4xi32>
    %292 = arith.addi %207, %291 : vector<8x4xi32>
    %c0_i32_103 = arith.constant 0 : i32
    %293 = vector.broadcast %c0_i32_103 : i32 to vector<8x4xi32>
    %294 = arith.cmpi sge, %292, %293 : vector<8x4xi32>
    %c8_i32_104 = arith.constant 8 : i32
    %295 = vector.broadcast %c8_i32_104 : i32 to vector<8x4xi32>
    %296 = arith.cmpi slt, %292, %295 : vector<8x4xi32>
    %297 = arith.andi %294, %296 : vector<8x4xi1>
    %c0_i32_105 = arith.constant 0 : i32
    %298 = vector.broadcast %c0_i32_105 : i32 to vector<8x4xi32>
    %299 = arith.cmpi sge, %264, %298 : vector<8x4xi32>
    %300 = arith.andi %297, %299 : vector<8x4xi1>
    %c8_i32_106 = arith.constant 8 : i32
    %301 = vector.broadcast %c8_i32_106 : i32 to vector<8x4xi32>
    %302 = arith.cmpi slt, %264, %301 : vector<8x4xi32>
    %303 = arith.andi %300, %302 : vector<8x4xi1>
    %304 = arith.mulf %205, %206 : vector<8x4xf32>
    %305 = arith.mulf %304, %184 : vector<8x4xf32>
    %cst_107 = arith.constant 0.000000e+00 : f32
    %306 = vector.broadcast %cst_107 : f32 to vector<8x4xf32>
    %307 = arith.select %303, %305, %306 : vector<8x4xi1>, vector<8x4xf32>
    %c8_i32_108 = arith.constant 8 : i32
    %308 = vector.broadcast %c8_i32_108 : i32 to vector<8x4xi32>
    %309 = arith.muli %264, %308 : vector<8x4xi32>
    %310 = arith.addi %309, %292 : vector<8x4xi32>
    %c0_i32_109 = arith.constant 0 : i32
    %c63_i32_110 = arith.constant 63 : i32
    %311 = vector.broadcast %c0_i32_109 : i32 to vector<8x4xi32>
    %312 = arith.maxsi %311, %310 : vector<8x4xi32>
    %313 = vector.broadcast %c63_i32_110 : i32 to vector<8x4xi32>
    %314 = arith.minsi %313, %312 : vector<8x4xi32>
    %315 = tpu.concatenate %238, %262, %290, %314 in 1 : vector<8x4xi32>, vector<8x4xi32>, vector<8x4xi32>, vector<8x4xi32> -> vector<8x16xi32>
    %316 = tpu.concatenate %231, %255, %283, %307 in 1 : vector<8x4xf32>, vector<8x4xf32>, vector<8x4xf32>, vector<8x4xf32> -> vector<8x16xf32>
    %317 = tpu.iota {dimensions = array<i32: 2>} : vector<8x16x64xi32>
    %318 = vector.shape_cast %315 : vector<8x16xi32> to vector<8x16x1xi32>
    %319 = vector.broadcast %318 : vector<8x16x1xi32> to vector<8x16x64xi32>
    %320 = arith.cmpi eq, %317, %319 : vector<8x16x64xi32>
    %321 = arith.extui %320 : vector<8x16x64xi1> to vector<8x16x64xi32>
    %322 = arith.sitofp %321 : vector<8x16x64xi32> to vector<8x16x64xf32>
    %323 = vector.shape_cast %316 : vector<8x16xf32> to vector<8x16x1xf32>
    %324 = vector.broadcast %323 : vector<8x16x1xf32> to vector<8x16x64xf32>
    %325 = arith.mulf %322, %324 : vector<8x16x64xf32>
    %cst_111 = arith.constant dense<0.000000e+00> : vector<8x64xf32>
    %326 = vector.multi_reduction <add>, %325, %cst_111 [1] : vector<8x16x64xf32> to vector<8x64xf32>
    %327 = vector.extract_strided_slice %17 {offsets = [0, 8], sizes = [64, 8], strides = [1, 1]} : vector<64x32xf32> to vector<64x8xf32>
    %cst_112 = arith.constant dense<0.000000e+00> : vector<8x8xf32>
    %328 = tpu.matmul %326, %327, %cst_112 {dimension_numbers = #tpu.dot_dimension_numbers<[1], [0], [0], [1], [0, 0, 1, 1], [], []>} : vector<8x64xf32>, vector<64x8xf32>, vector<8x8xf32> -> vector<8x8xf32>
    %c0_113 = arith.constant 0 : index
    %c8 = arith.constant 8 : index
    %329 = vector.load %arg13[%c0_113, %c8] : memref<8x32xf32, #tpu.memory_space<vmem>>, vector<8x8xf32>
    tpu.vector_store %arg13[%c0_113, %c8], %328 {strides = array<i32>} : memref<8x32xf32, #tpu.memory_space<vmem>>, vector<8x8xf32>,
    %330 = vector.extract_strided_slice %14 {offsets = [0, 8], sizes = [8, 4], strides = [1, 1]} : vector<8x16xf32> to vector<8x4xf32>
    %cst_114 = arith.constant dense<0xFF800000> : vector<8xf32>
    %331 = vector.multi_reduction <maximumf>, %330, %cst_114 [1] : vector<8x4xf32> to vector<8xf32>
    %332 = vector.shape_cast %331 : vector<8xf32> to vector<8x1xf32>
    %333 = vector.broadcast %332 : vector<8x1xf32> to vector<8x4xf32>
    %334 = arith.subf %330, %333 : vector<8x4xf32>
    %335 = math.exp %334 : vector<8x4xf32>
    %cst_115 = arith.constant dense<0.000000e+00> : vector<8xf32>
    %336 = vector.multi_reduction <add>, %335, %cst_115 [1] : vector<8x4xf32> to vector<8xf32>
    %337 = vector.shape_cast %336 : vector<8xf32> to vector<8x1xf32>
    %338 = tpu.reciprocal %337 {approx = true} : vector<8x1xf32> -> vector<8x1xf32>
    %339 = vector.broadcast %338 : vector<8x1xf32> to vector<8x4xf32>
    %340 = arith.mulf %335, %339 : vector<8x4xf32>
    %341 = vector.extract_strided_slice %12 {offsets = [0, 8], sizes = [8, 4], strides = [1, 1]} : vector<8x16xf32> to vector<8x4xf32>
    %342 = vector.extract_strided_slice %13 {offsets = [0, 8], sizes = [8, 4], strides = [1, 1]} : vector<8x16xf32> to vector<8x4xf32>
    %cst_116 = arith.constant 1.250000e-01 : f32
    %343 = vector.broadcast %cst_116 : f32 to vector<8x4xf32>
    %344 = arith.mulf %341, %343 : vector<8x4xf32>
    %345 = vector.broadcast %15 : vector<8x1xf32> to vector<8x4xf32>
    %346 = arith.addf %345, %344 : vector<8x4xf32>
    %cst_117 = arith.constant 8.000000e+00 : f32
    %347 = vector.broadcast %cst_117 : f32 to vector<8x4xf32>
    %348 = arith.mulf %346, %347 : vector<8x4xf32>
    %cst_118 = arith.constant 5.000000e-01 : f32
    %349 = vector.broadcast %cst_118 : f32 to vector<8x4xf32>
    %350 = arith.subf %348, %349 : vector<8x4xf32>
    %cst_119 = arith.constant 1.250000e-01 : f32
    %351 = vector.broadcast %cst_119 : f32 to vector<8x4xf32>
    %352 = arith.mulf %342, %351 : vector<8x4xf32>
    %353 = vector.broadcast %16 : vector<8x1xf32> to vector<8x4xf32>
    %354 = arith.addf %353, %352 : vector<8x4xf32>
    %cst_120 = arith.constant 8.000000e+00 : f32
    %355 = vector.broadcast %cst_120 : f32 to vector<8x4xf32>
    %356 = arith.mulf %354, %355 : vector<8x4xf32>
    %cst_121 = arith.constant 5.000000e-01 : f32
    %357 = vector.broadcast %cst_121 : f32 to vector<8x4xf32>
    %358 = arith.subf %356, %357 : vector<8x4xf32>
    %359 = math.floor %350 : vector<8x4xf32>
    %360 = math.floor %358 : vector<8x4xf32>
    %361 = arith.subf %350, %359 : vector<8x4xf32>
    %362 = arith.subf %358, %360 : vector<8x4xf32>
    %363 = arith.fptosi %359 : vector<8x4xf32> to vector<8x4xi32>
    %364 = arith.fptosi %360 : vector<8x4xf32> to vector<8x4xi32>
    %cst_122 = arith.constant 1.000000e+00 : f32
    %365 = vector.broadcast %cst_122 : f32 to vector<8x4xf32>
    %366 = arith.subf %365, %362 : vector<8x4xf32>
    %c0_i32_123 = arith.constant 0 : i32
    %367 = vector.broadcast %c0_i32_123 : i32 to vector<8x4xi32>
    %368 = arith.addi %364, %367 : vector<8x4xi32>
    %cst_124 = arith.constant 1.000000e+00 : f32
    %369 = vector.broadcast %cst_124 : f32 to vector<8x4xf32>
    %370 = arith.subf %369, %361 : vector<8x4xf32>
    %c0_i32_125 = arith.constant 0 : i32
    %371 = vector.broadcast %c0_i32_125 : i32 to vector<8x4xi32>
    %372 = arith.addi %363, %371 : vector<8x4xi32>
    %c0_i32_126 = arith.constant 0 : i32
    %373 = vector.broadcast %c0_i32_126 : i32 to vector<8x4xi32>
    %374 = arith.cmpi sge, %372, %373 : vector<8x4xi32>
    %c8_i32_127 = arith.constant 8 : i32
    %375 = vector.broadcast %c8_i32_127 : i32 to vector<8x4xi32>
    %376 = arith.cmpi slt, %372, %375 : vector<8x4xi32>
    %377 = arith.andi %374, %376 : vector<8x4xi1>
    %c0_i32_128 = arith.constant 0 : i32
    %378 = vector.broadcast %c0_i32_128 : i32 to vector<8x4xi32>
    %379 = arith.cmpi sge, %368, %378 : vector<8x4xi32>
    %380 = arith.andi %377, %379 : vector<8x4xi1>
    %c8_i32_129 = arith.constant 8 : i32
    %381 = vector.broadcast %c8_i32_129 : i32 to vector<8x4xi32>
    %382 = arith.cmpi slt, %368, %381 : vector<8x4xi32>
    %383 = arith.andi %380, %382 : vector<8x4xi1>
    %384 = arith.mulf %370, %366 : vector<8x4xf32>
    %385 = arith.mulf %384, %340 : vector<8x4xf32>
    %cst_130 = arith.constant 0.000000e+00 : f32
    %386 = vector.broadcast %cst_130 : f32 to vector<8x4xf32>
    %387 = arith.select %383, %385, %386 : vector<8x4xi1>, vector<8x4xf32>
    %c8_i32_131 = arith.constant 8 : i32
    %388 = vector.broadcast %c8_i32_131 : i32 to vector<8x4xi32>
    %389 = arith.muli %368, %388 : vector<8x4xi32>
    %390 = arith.addi %389, %372 : vector<8x4xi32>
    %c0_i32_132 = arith.constant 0 : i32
    %c63_i32_133 = arith.constant 63 : i32
    %391 = vector.broadcast %c0_i32_132 : i32 to vector<8x4xi32>
    %392 = arith.maxsi %391, %390 : vector<8x4xi32>
    %393 = vector.broadcast %c63_i32_133 : i32 to vector<8x4xi32>
    %394 = arith.minsi %393, %392 : vector<8x4xi32>
    %c1_i32_134 = arith.constant 1 : i32
    %395 = vector.broadcast %c1_i32_134 : i32 to vector<8x4xi32>
    %396 = arith.addi %363, %395 : vector<8x4xi32>
    %c0_i32_135 = arith.constant 0 : i32
    %397 = vector.broadcast %c0_i32_135 : i32 to vector<8x4xi32>
    %398 = arith.cmpi sge, %396, %397 : vector<8x4xi32>
    %c8_i32_136 = arith.constant 8 : i32
    %399 = vector.broadcast %c8_i32_136 : i32 to vector<8x4xi32>
    %400 = arith.cmpi slt, %396, %399 : vector<8x4xi32>
    %401 = arith.andi %398, %400 : vector<8x4xi1>
    %c0_i32_137 = arith.constant 0 : i32
    %402 = vector.broadcast %c0_i32_137 : i32 to vector<8x4xi32>
    %403 = arith.cmpi sge, %368, %402 : vector<8x4xi32>
    %404 = arith.andi %401, %403 : vector<8x4xi1>
    %c8_i32_138 = arith.constant 8 : i32
    %405 = vector.broadcast %c8_i32_138 : i32 to vector<8x4xi32>
    %406 = arith.cmpi slt, %368, %405 : vector<8x4xi32>
    %407 = arith.andi %404, %406 : vector<8x4xi1>
    %408 = arith.mulf %361, %366 : vector<8x4xf32>
    %409 = arith.mulf %408, %340 : vector<8x4xf32>
    %cst_139 = arith.constant 0.000000e+00 : f32
    %410 = vector.broadcast %cst_139 : f32 to vector<8x4xf32>
    %411 = arith.select %407, %409, %410 : vector<8x4xi1>, vector<8x4xf32>
    %c8_i32_140 = arith.constant 8 : i32
    %412 = vector.broadcast %c8_i32_140 : i32 to vector<8x4xi32>
    %413 = arith.muli %368, %412 : vector<8x4xi32>
    %414 = arith.addi %413, %396 : vector<8x4xi32>
    %c0_i32_141 = arith.constant 0 : i32
    %c63_i32_142 = arith.constant 63 : i32
    %415 = vector.broadcast %c0_i32_141 : i32 to vector<8x4xi32>
    %416 = arith.maxsi %415, %414 : vector<8x4xi32>
    %417 = vector.broadcast %c63_i32_142 : i32 to vector<8x4xi32>
    %418 = arith.minsi %417, %416 : vector<8x4xi32>
    %c1_i32_143 = arith.constant 1 : i32
    %419 = vector.broadcast %c1_i32_143 : i32 to vector<8x4xi32>
    %420 = arith.addi %364, %419 : vector<8x4xi32>
    %cst_144 = arith.constant 1.000000e+00 : f32
    %421 = vector.broadcast %cst_144 : f32 to vector<8x4xf32>
    %422 = arith.subf %421, %361 : vector<8x4xf32>
    %c0_i32_145 = arith.constant 0 : i32
    %423 = vector.broadcast %c0_i32_145 : i32 to vector<8x4xi32>
    %424 = arith.addi %363, %423 : vector<8x4xi32>
    %c0_i32_146 = arith.constant 0 : i32
    %425 = vector.broadcast %c0_i32_146 : i32 to vector<8x4xi32>
    %426 = arith.cmpi sge, %424, %425 : vector<8x4xi32>
    %c8_i32_147 = arith.constant 8 : i32
    %427 = vector.broadcast %c8_i32_147 : i32 to vector<8x4xi32>
    %428 = arith.cmpi slt, %424, %427 : vector<8x4xi32>
    %429 = arith.andi %426, %428 : vector<8x4xi1>
    %c0_i32_148 = arith.constant 0 : i32
    %430 = vector.broadcast %c0_i32_148 : i32 to vector<8x4xi32>
    %431 = arith.cmpi sge, %420, %430 : vector<8x4xi32>
    %432 = arith.andi %429, %431 : vector<8x4xi1>
    %c8_i32_149 = arith.constant 8 : i32
    %433 = vector.broadcast %c8_i32_149 : i32 to vector<8x4xi32>
    %434 = arith.cmpi slt, %420, %433 : vector<8x4xi32>
    %435 = arith.andi %432, %434 : vector<8x4xi1>
    %436 = arith.mulf %422, %362 : vector<8x4xf32>
    %437 = arith.mulf %436, %340 : vector<8x4xf32>
    %cst_150 = arith.constant 0.000000e+00 : f32
    %438 = vector.broadcast %cst_150 : f32 to vector<8x4xf32>
    %439 = arith.select %435, %437, %438 : vector<8x4xi1>, vector<8x4xf32>
    %c8_i32_151 = arith.constant 8 : i32
    %440 = vector.broadcast %c8_i32_151 : i32 to vector<8x4xi32>
    %441 = arith.muli %420, %440 : vector<8x4xi32>
    %442 = arith.addi %441, %424 : vector<8x4xi32>
    %c0_i32_152 = arith.constant 0 : i32
    %c63_i32_153 = arith.constant 63 : i32
    %443 = vector.broadcast %c0_i32_152 : i32 to vector<8x4xi32>
    %444 = arith.maxsi %443, %442 : vector<8x4xi32>
    %445 = vector.broadcast %c63_i32_153 : i32 to vector<8x4xi32>
    %446 = arith.minsi %445, %444 : vector<8x4xi32>
    %c1_i32_154 = arith.constant 1 : i32
    %447 = vector.broadcast %c1_i32_154 : i32 to vector<8x4xi32>
    %448 = arith.addi %363, %447 : vector<8x4xi32>
    %c0_i32_155 = arith.constant 0 : i32
    %449 = vector.broadcast %c0_i32_155 : i32 to vector<8x4xi32>
    %450 = arith.cmpi sge, %448, %449 : vector<8x4xi32>
    %c8_i32_156 = arith.constant 8 : i32
    %451 = vector.broadcast %c8_i32_156 : i32 to vector<8x4xi32>
    %452 = arith.cmpi slt, %448, %451 : vector<8x4xi32>
    %453 = arith.andi %450, %452 : vector<8x4xi1>
    %c0_i32_157 = arith.constant 0 : i32
    %454 = vector.broadcast %c0_i32_157 : i32 to vector<8x4xi32>
    %455 = arith.cmpi sge, %420, %454 : vector<8x4xi32>
    %456 = arith.andi %453, %455 : vector<8x4xi1>
    %c8_i32_158 = arith.constant 8 : i32
    %457 = vector.broadcast %c8_i32_158 : i32 to vector<8x4xi32>
    %458 = arith.cmpi slt, %420, %457 : vector<8x4xi32>
    %459 = arith.andi %456, %458 : vector<8x4xi1>
    %460 = arith.mulf %361, %362 : vector<8x4xf32>
    %461 = arith.mulf %460, %340 : vector<8x4xf32>
    %cst_159 = arith.constant 0.000000e+00 : f32
    %462 = vector.broadcast %cst_159 : f32 to vector<8x4xf32>
    %463 = arith.select %459, %461, %462 : vector<8x4xi1>, vector<8x4xf32>
    %c8_i32_160 = arith.constant 8 : i32
    %464 = vector.broadcast %c8_i32_160 : i32 to vector<8x4xi32>
    %465 = arith.muli %420, %464 : vector<8x4xi32>
    %466 = arith.addi %465, %448 : vector<8x4xi32>
    %c0_i32_161 = arith.constant 0 : i32
    %c63_i32_162 = arith.constant 63 : i32
    %467 = vector.broadcast %c0_i32_161 : i32 to vector<8x4xi32>
    %468 = arith.maxsi %467, %466 : vector<8x4xi32>
    %469 = vector.broadcast %c63_i32_162 : i32 to vector<8x4xi32>
    %470 = arith.minsi %469, %468 : vector<8x4xi32>
    %471 = tpu.concatenate %394, %418, %446, %470 in 1 : vector<8x4xi32>, vector<8x4xi32>, vector<8x4xi32>, vector<8x4xi32> -> vector<8x16xi32>
    %472 = tpu.concatenate %387, %411, %439, %463 in 1 : vector<8x4xf32>, vector<8x4xf32>, vector<8x4xf32>, vector<8x4xf32> -> vector<8x16xf32>
    %473 = tpu.iota {dimensions = array<i32: 2>} : vector<8x16x64xi32>
    %474 = vector.shape_cast %471 : vector<8x16xi32> to vector<8x16x1xi32>
    %475 = vector.broadcast %474 : vector<8x16x1xi32> to vector<8x16x64xi32>
    %476 = arith.cmpi eq, %473, %475 : vector<8x16x64xi32>
    %477 = arith.extui %476 : vector<8x16x64xi1> to vector<8x16x64xi32>
    %478 = arith.sitofp %477 : vector<8x16x64xi32> to vector<8x16x64xf32>
    %479 = vector.shape_cast %472 : vector<8x16xf32> to vector<8x16x1xf32>
    %480 = vector.broadcast %479 : vector<8x16x1xf32> to vector<8x16x64xf32>
    %481 = arith.mulf %478, %480 : vector<8x16x64xf32>
    %cst_163 = arith.constant dense<0.000000e+00> : vector<8x64xf32>
    %482 = vector.multi_reduction <add>, %481, %cst_163 [1] : vector<8x16x64xf32> to vector<8x64xf32>
    %483 = vector.extract_strided_slice %17 {offsets = [0, 16], sizes = [64, 8], strides = [1, 1]} : vector<64x32xf32> to vector<64x8xf32>
    %cst_164 = arith.constant dense<0.000000e+00> : vector<8x8xf32>
    %484 = tpu.matmul %482, %483, %cst_164 {dimension_numbers = #tpu.dot_dimension_numbers<[1], [0], [0], [1], [0, 0, 1, 1], [], []>} : vector<8x64xf32>, vector<64x8xf32>, vector<8x8xf32> -> vector<8x8xf32>
    %c0_165 = arith.constant 0 : index
    %c16 = arith.constant 16 : index
    %485 = vector.load %arg13[%c0_165, %c16] : memref<8x32xf32, #tpu.memory_space<vmem>>, vector<8x8xf32>
    tpu.vector_store %arg13[%c0_165, %c16], %484 {strides = array<i32>} : memref<8x32xf32, #tpu.memory_space<vmem>>, vector<8x8xf32>,
    %486 = vector.extract_strided_slice %14 {offsets = [0, 12], sizes = [8, 4], strides = [1, 1]} : vector<8x16xf32> to vector<8x4xf32>
    %cst_166 = arith.constant dense<0xFF800000> : vector<8xf32>
    %487 = vector.multi_reduction <maximumf>, %486, %cst_166 [1] : vector<8x4xf32> to vector<8xf32>
    %488 = vector.shape_cast %487 : vector<8xf32> to vector<8x1xf32>
    %489 = vector.broadcast %488 : vector<8x1xf32> to vector<8x4xf32>
    %490 = arith.subf %486, %489 : vector<8x4xf32>
    %491 = math.exp %490 : vector<8x4xf32>
    %cst_167 = arith.constant dense<0.000000e+00> : vector<8xf32>
    %492 = vector.multi_reduction <add>, %491, %cst_167 [1] : vector<8x4xf32> to vector<8xf32>
    %493 = vector.shape_cast %492 : vector<8xf32> to vector<8x1xf32>
    %494 = tpu.reciprocal %493 {approx = true} : vector<8x1xf32> -> vector<8x1xf32>
    %495 = vector.broadcast %494 : vector<8x1xf32> to vector<8x4xf32>
    %496 = arith.mulf %491, %495 : vector<8x4xf32>
    %497 = vector.extract_strided_slice %12 {offsets = [0, 12], sizes = [8, 4], strides = [1, 1]} : vector<8x16xf32> to vector<8x4xf32>
    %498 = vector.extract_strided_slice %13 {offsets = [0, 12], sizes = [8, 4], strides = [1, 1]} : vector<8x16xf32> to vector<8x4xf32>
    %cst_168 = arith.constant 1.250000e-01 : f32
    %499 = vector.broadcast %cst_168 : f32 to vector<8x4xf32>
    %500 = arith.mulf %497, %499 : vector<8x4xf32>
    %501 = vector.broadcast %15 : vector<8x1xf32> to vector<8x4xf32>
    %502 = arith.addf %501, %500 : vector<8x4xf32>
    %cst_169 = arith.constant 8.000000e+00 : f32
    %503 = vector.broadcast %cst_169 : f32 to vector<8x4xf32>
    %504 = arith.mulf %502, %503 : vector<8x4xf32>
    %cst_170 = arith.constant 5.000000e-01 : f32
    %505 = vector.broadcast %cst_170 : f32 to vector<8x4xf32>
    %506 = arith.subf %504, %505 : vector<8x4xf32>
    %cst_171 = arith.constant 1.250000e-01 : f32
    %507 = vector.broadcast %cst_171 : f32 to vector<8x4xf32>
    %508 = arith.mulf %498, %507 : vector<8x4xf32>
    %509 = vector.broadcast %16 : vector<8x1xf32> to vector<8x4xf32>
    %510 = arith.addf %509, %508 : vector<8x4xf32>
    %cst_172 = arith.constant 8.000000e+00 : f32
    %511 = vector.broadcast %cst_172 : f32 to vector<8x4xf32>
    %512 = arith.mulf %510, %511 : vector<8x4xf32>
    %cst_173 = arith.constant 5.000000e-01 : f32
    %513 = vector.broadcast %cst_173 : f32 to vector<8x4xf32>
    %514 = arith.subf %512, %513 : vector<8x4xf32>
    %515 = math.floor %506 : vector<8x4xf32>
    %516 = math.floor %514 : vector<8x4xf32>
    %517 = arith.subf %506, %515 : vector<8x4xf32>
    %518 = arith.subf %514, %516 : vector<8x4xf32>
    %519 = arith.fptosi %515 : vector<8x4xf32> to vector<8x4xi32>
    %520 = arith.fptosi %516 : vector<8x4xf32> to vector<8x4xi32>
    %cst_174 = arith.constant 1.000000e+00 : f32
    %521 = vector.broadcast %cst_174 : f32 to vector<8x4xf32>
    %522 = arith.subf %521, %518 : vector<8x4xf32>
    %c0_i32_175 = arith.constant 0 : i32
    %523 = vector.broadcast %c0_i32_175 : i32 to vector<8x4xi32>
    %524 = arith.addi %520, %523 : vector<8x4xi32>
    %cst_176 = arith.constant 1.000000e+00 : f32
    %525 = vector.broadcast %cst_176 : f32 to vector<8x4xf32>
    %526 = arith.subf %525, %517 : vector<8x4xf32>
    %c0_i32_177 = arith.constant 0 : i32
    %527 = vector.broadcast %c0_i32_177 : i32 to vector<8x4xi32>
    %528 = arith.addi %519, %527 : vector<8x4xi32>
    %c0_i32_178 = arith.constant 0 : i32
    %529 = vector.broadcast %c0_i32_178 : i32 to vector<8x4xi32>
    %530 = arith.cmpi sge, %528, %529 : vector<8x4xi32>
    %c8_i32_179 = arith.constant 8 : i32
    %531 = vector.broadcast %c8_i32_179 : i32 to vector<8x4xi32>
    %532 = arith.cmpi slt, %528, %531 : vector<8x4xi32>
    %533 = arith.andi %530, %532 : vector<8x4xi1>
    %c0_i32_180 = arith.constant 0 : i32
    %534 = vector.broadcast %c0_i32_180 : i32 to vector<8x4xi32>
    %535 = arith.cmpi sge, %524, %534 : vector<8x4xi32>
    %536 = arith.andi %533, %535 : vector<8x4xi1>
    %c8_i32_181 = arith.constant 8 : i32
    %537 = vector.broadcast %c8_i32_181 : i32 to vector<8x4xi32>
    %538 = arith.cmpi slt, %524, %537 : vector<8x4xi32>
    %539 = arith.andi %536, %538 : vector<8x4xi1>
    %540 = arith.mulf %526, %522 : vector<8x4xf32>
    %541 = arith.mulf %540, %496 : vector<8x4xf32>
    %cst_182 = arith.constant 0.000000e+00 : f32
    %542 = vector.broadcast %cst_182 : f32 to vector<8x4xf32>
    %543 = arith.select %539, %541, %542 : vector<8x4xi1>, vector<8x4xf32>
    %c8_i32_183 = arith.constant 8 : i32
    %544 = vector.broadcast %c8_i32_183 : i32 to vector<8x4xi32>
    %545 = arith.muli %524, %544 : vector<8x4xi32>
    %546 = arith.addi %545, %528 : vector<8x4xi32>
    %c0_i32_184 = arith.constant 0 : i32
    %c63_i32_185 = arith.constant 63 : i32
    %547 = vector.broadcast %c0_i32_184 : i32 to vector<8x4xi32>
    %548 = arith.maxsi %547, %546 : vector<8x4xi32>
    %549 = vector.broadcast %c63_i32_185 : i32 to vector<8x4xi32>
    %550 = arith.minsi %549, %548 : vector<8x4xi32>
    %c1_i32_186 = arith.constant 1 : i32
    %551 = vector.broadcast %c1_i32_186 : i32 to vector<8x4xi32>
    %552 = arith.addi %519, %551 : vector<8x4xi32>
    %c0_i32_187 = arith.constant 0 : i32
    %553 = vector.broadcast %c0_i32_187 : i32 to vector<8x4xi32>
    %554 = arith.cmpi sge, %552, %553 : vector<8x4xi32>
    %c8_i32_188 = arith.constant 8 : i32
    %555 = vector.broadcast %c8_i32_188 : i32 to vector<8x4xi32>
    %556 = arith.cmpi slt, %552, %555 : vector<8x4xi32>
    %557 = arith.andi %554, %556 : vector<8x4xi1>
    %c0_i32_189 = arith.constant 0 : i32
    %558 = vector.broadcast %c0_i32_189 : i32 to vector<8x4xi32>
    %559 = arith.cmpi sge, %524, %558 : vector<8x4xi32>
    %560 = arith.andi %557, %559 : vector<8x4xi1>
    %c8_i32_190 = arith.constant 8 : i32
    %561 = vector.broadcast %c8_i32_190 : i32 to vector<8x4xi32>
    %562 = arith.cmpi slt, %524, %561 : vector<8x4xi32>
    %563 = arith.andi %560, %562 : vector<8x4xi1>
    %564 = arith.mulf %517, %522 : vector<8x4xf32>
    %565 = arith.mulf %564, %496 : vector<8x4xf32>
    %cst_191 = arith.constant 0.000000e+00 : f32
    %566 = vector.broadcast %cst_191 : f32 to vector<8x4xf32>
    %567 = arith.select %563, %565, %566 : vector<8x4xi1>, vector<8x4xf32>
    %c8_i32_192 = arith.constant 8 : i32
    %568 = vector.broadcast %c8_i32_192 : i32 to vector<8x4xi32>
    %569 = arith.muli %524, %568 : vector<8x4xi32>
    %570 = arith.addi %569, %552 : vector<8x4xi32>
    %c0_i32_193 = arith.constant 0 : i32
    %c63_i32_194 = arith.constant 63 : i32
    %571 = vector.broadcast %c0_i32_193 : i32 to vector<8x4xi32>
    %572 = arith.maxsi %571, %570 : vector<8x4xi32>
    %573 = vector.broadcast %c63_i32_194 : i32 to vector<8x4xi32>
    %574 = arith.minsi %573, %572 : vector<8x4xi32>
    %c1_i32_195 = arith.constant 1 : i32
    %575 = vector.broadcast %c1_i32_195 : i32 to vector<8x4xi32>
    %576 = arith.addi %520, %575 : vector<8x4xi32>
    %cst_196 = arith.constant 1.000000e+00 : f32
    %577 = vector.broadcast %cst_196 : f32 to vector<8x4xf32>
    %578 = arith.subf %577, %517 : vector<8x4xf32>
    %c0_i32_197 = arith.constant 0 : i32
    %579 = vector.broadcast %c0_i32_197 : i32 to vector<8x4xi32>
    %580 = arith.addi %519, %579 : vector<8x4xi32>
    %c0_i32_198 = arith.constant 0 : i32
    %581 = vector.broadcast %c0_i32_198 : i32 to vector<8x4xi32>
    %582 = arith.cmpi sge, %580, %581 : vector<8x4xi32>
    %c8_i32_199 = arith.constant 8 : i32
    %583 = vector.broadcast %c8_i32_199 : i32 to vector<8x4xi32>
    %584 = arith.cmpi slt, %580, %583 : vector<8x4xi32>
    %585 = arith.andi %582, %584 : vector<8x4xi1>
    %c0_i32_200 = arith.constant 0 : i32
    %586 = vector.broadcast %c0_i32_200 : i32 to vector<8x4xi32>
    %587 = arith.cmpi sge, %576, %586 : vector<8x4xi32>
    %588 = arith.andi %585, %587 : vector<8x4xi1>
    %c8_i32_201 = arith.constant 8 : i32
    %589 = vector.broadcast %c8_i32_201 : i32 to vector<8x4xi32>
    %590 = arith.cmpi slt, %576, %589 : vector<8x4xi32>
    %591 = arith.andi %588, %590 : vector<8x4xi1>
    %592 = arith.mulf %578, %518 : vector<8x4xf32>
    %593 = arith.mulf %592, %496 : vector<8x4xf32>
    %cst_202 = arith.constant 0.000000e+00 : f32
    %594 = vector.broadcast %cst_202 : f32 to vector<8x4xf32>
    %595 = arith.select %591, %593, %594 : vector<8x4xi1>, vector<8x4xf32>
    %c8_i32_203 = arith.constant 8 : i32
    %596 = vector.broadcast %c8_i32_203 : i32 to vector<8x4xi32>
    %597 = arith.muli %576, %596 : vector<8x4xi32>
    %598 = arith.addi %597, %580 : vector<8x4xi32>
    %c0_i32_204 = arith.constant 0 : i32
    %c63_i32_205 = arith.constant 63 : i32
    %599 = vector.broadcast %c0_i32_204 : i32 to vector<8x4xi32>
    %600 = arith.maxsi %599, %598 : vector<8x4xi32>
    %601 = vector.broadcast %c63_i32_205 : i32 to vector<8x4xi32>
    %602 = arith.minsi %601, %600 : vector<8x4xi32>
    %c1_i32_206 = arith.constant 1 : i32
    %603 = vector.broadcast %c1_i32_206 : i32 to vector<8x4xi32>
    %604 = arith.addi %519, %603 : vector<8x4xi32>
    %c0_i32_207 = arith.constant 0 : i32
    %605 = vector.broadcast %c0_i32_207 : i32 to vector<8x4xi32>
    %606 = arith.cmpi sge, %604, %605 : vector<8x4xi32>
    %c8_i32_208 = arith.constant 8 : i32
    %607 = vector.broadcast %c8_i32_208 : i32 to vector<8x4xi32>
    %608 = arith.cmpi slt, %604, %607 : vector<8x4xi32>
    %609 = arith.andi %606, %608 : vector<8x4xi1>
    %c0_i32_209 = arith.constant 0 : i32
    %610 = vector.broadcast %c0_i32_209 : i32 to vector<8x4xi32>
    %611 = arith.cmpi sge, %576, %610 : vector<8x4xi32>
    %612 = arith.andi %609, %611 : vector<8x4xi1>
    %c8_i32_210 = arith.constant 8 : i32
    %613 = vector.broadcast %c8_i32_210 : i32 to vector<8x4xi32>
    %614 = arith.cmpi slt, %576, %613 : vector<8x4xi32>
    %615 = arith.andi %612, %614 : vector<8x4xi1>
    %616 = arith.mulf %517, %518 : vector<8x4xf32>
    %617 = arith.mulf %616, %496 : vector<8x4xf32>
    %cst_211 = arith.constant 0.000000e+00 : f32
    %618 = vector.broadcast %cst_211 : f32 to vector<8x4xf32>
    %619 = arith.select %615, %617, %618 : vector<8x4xi1>, vector<8x4xf32>
    %c8_i32_212 = arith.constant 8 : i32
    %620 = vector.broadcast %c8_i32_212 : i32 to vector<8x4xi32>
    %621 = arith.muli %576, %620 : vector<8x4xi32>
    %622 = arith.addi %621, %604 : vector<8x4xi32>
    %c0_i32_213 = arith.constant 0 : i32
    %c63_i32_214 = arith.constant 63 : i32
    %623 = vector.broadcast %c0_i32_213 : i32 to vector<8x4xi32>
    %624 = arith.maxsi %623, %622 : vector<8x4xi32>
    %625 = vector.broadcast %c63_i32_214 : i32 to vector<8x4xi32>
    %626 = arith.minsi %625, %624 : vector<8x4xi32>
    %627 = tpu.concatenate %550, %574, %602, %626 in 1 : vector<8x4xi32>, vector<8x4xi32>, vector<8x4xi32>, vector<8x4xi32> -> vector<8x16xi32>
    %628 = tpu.concatenate %543, %567, %595, %619 in 1 : vector<8x4xf32>, vector<8x4xf32>, vector<8x4xf32>, vector<8x4xf32> -> vector<8x16xf32>
    %629 = tpu.iota {dimensions = array<i32: 2>} : vector<8x16x64xi32>
    %630 = vector.shape_cast %627 : vector<8x16xi32> to vector<8x16x1xi32>
    %631 = vector.broadcast %630 : vector<8x16x1xi32> to vector<8x16x64xi32>
    %632 = arith.cmpi eq, %629, %631 : vector<8x16x64xi32>
    %633 = arith.extui %632 : vector<8x16x64xi1> to vector<8x16x64xi32>
    %634 = arith.sitofp %633 : vector<8x16x64xi32> to vector<8x16x64xf32>
    %635 = vector.shape_cast %628 : vector<8x16xf32> to vector<8x16x1xf32>
    %636 = vector.broadcast %635 : vector<8x16x1xf32> to vector<8x16x64xf32>
    %637 = arith.mulf %634, %636 : vector<8x16x64xf32>
    %cst_215 = arith.constant dense<0.000000e+00> : vector<8x64xf32>
    %638 = vector.multi_reduction <add>, %637, %cst_215 [1] : vector<8x16x64xf32> to vector<8x64xf32>
    %639 = vector.extract_strided_slice %17 {offsets = [0, 24], sizes = [64, 8], strides = [1, 1]} : vector<64x32xf32> to vector<64x8xf32>
    %cst_216 = arith.constant dense<0.000000e+00> : vector<8x8xf32>
    %640 = tpu.matmul %638, %639, %cst_216 {dimension_numbers = #tpu.dot_dimension_numbers<[1], [0], [0], [1], [0, 0, 1, 1], [], []>} : vector<8x64xf32>, vector<64x8xf32>, vector<8x8xf32> -> vector<8x8xf32>
    %c0_217 = arith.constant 0 : index
    %c24 = arith.constant 24 : index
    %641 = vector.load %arg13[%c0_217, %c24] : memref<8x32xf32, #tpu.memory_space<vmem>>, vector<8x8xf32>
    tpu.vector_store %arg13[%c0_217, %c24], %640 {strides = array<i32>} : memref<8x32xf32, #tpu.memory_space<vmem>>, vector<8x8xf32>,
    %c0_218 = arith.constant 0 : index
    %c0_219 = arith.constant 0 : index
    %642 = vector.load %arg13[%c0_218, %c0_219] : memref<8x32xf32, #tpu.memory_space<vmem>>, vector<8x32xf32>
    %c0_220 = arith.constant 0 : index
    %c0_221 = arith.constant 0 : index
    %643 = vector.load %arg9[%c0_220, %c0_221] : memref<32x32xf32, #tpu.memory_space<vmem>>, vector<32x32xf32>
    %cst_222 = arith.constant dense<0.000000e+00> : vector<8x32xf32>
    %644 = tpu.matmul %642, %643, %cst_222 {dimension_numbers = #tpu.dot_dimension_numbers<[1], [0], [0], [1], [0, 0, 1, 1], [], []>} : vector<8x32xf32>, vector<32x32xf32>, vector<8x32xf32> -> vector<8x32xf32>
    %c0_223 = arith.constant 0 : index
    %c0_224 = arith.constant 0 : index
    %645 = vector.load %arg10[%c0_223, %c0_224] : memref<1x32xf32, #tpu.memory_space<vmem>>, vector<1x32xf32>
    %646 = vector.broadcast %645 : vector<1x32xf32> to vector<8x32xf32>
    %647 = arith.addf %644, %646 : vector<8x32xf32>
    %c0_225 = arith.constant 0 : index
    %c0_226 = arith.constant 0 : index
    %c0_227 = arith.constant 0 : index
    %648 = vector.load %arg11[%c0_225, %c0_226, %c0_227] : memref<1x8x32xf32, #tpu.memory_space<vmem>>, vector<1x8x32xf32>
    %649 = vector.shape_cast %648 : vector<1x8x32xf32> to vector<8x32xf32>
    %650 = vector.shape_cast %647 : vector<8x32xf32> to vector<1x8x32xf32>
    tpu.vector_store %arg11[%c0_225, %c0_226, %c0_227], %650 {strides = array<i32>} : memref<1x8x32xf32, #tpu.memory_space<vmem>>, vector<1x8x32xf32>,
    return
  }
  func.func @transform_0(%arg0: i32, %arg1: i32) -> (i32, i32, i32) {
    %c0_i32 = arith.constant 0 : i32
    %c0_i32_0 = arith.constant 0 : i32
    return %arg0, %arg1, %c0_i32 : i32, i32, i32
  }
  func.func @transform_1(%arg0: i32, %arg1: i32) -> (i32, i32, i32) {
    %c0_i32 = arith.constant 0 : i32
    %c0_i32_0 = arith.constant 0 : i32
    %c0_i32_1 = arith.constant 0 : i32
    return %arg0, %c0_i32, %c0_i32_0 : i32, i32, i32
  }
  func.func @transform_2(%arg0: i32, %arg1: i32) -> (i32, i32, i32) {
    %c0_i32 = arith.constant 0 : i32
    %c0_i32_0 = arith.constant 0 : i32
    return %arg0, %arg1, %c0_i32 : i32, i32, i32
  }
  func.func @transform_3(%arg0: i32, %arg1: i32) -> (i32, i32) {
    %c0_i32 = arith.constant 0 : i32
    %c0_i32_0 = arith.constant 0 : i32
    %c0_i32_1 = arith.constant 0 : i32
    return %c0_i32, %c0_i32_0 : i32, i32
  }
  func.func @transform_4(%arg0: i32, %arg1: i32) -> (i32, i32) {
    %c0_i32 = arith.constant 0 : i32
    %c0_i32_0 = arith.constant 0 : i32
    %c0_i32_1 = arith.constant 0 : i32
    return %c0_i32, %c0_i32_0 : i32, i32
  }
  func.func @transform_5(%arg0: i32, %arg1: i32) -> (i32, i32) {
    %c0_i32 = arith.constant 0 : i32
    %c0_i32_0 = arith.constant 0 : i32
    %c0_i32_1 = arith.constant 0 : i32
    return %c0_i32, %c0_i32_0 : i32, i32
  }
  func.func @transform_6(%arg0: i32, %arg1: i32) -> (i32, i32) {
    %c0_i32 = arith.constant 0 : i32
    %c0_i32_0 = arith.constant 0 : i32
    %c0_i32_1 = arith.constant 0 : i32
    return %c0_i32, %c0_i32_0 : i32, i32
  }
  func.func @transform_7(%arg0: i32, %arg1: i32) -> (i32, i32) {
    %c0_i32 = arith.constant 0 : i32
    %c0_i32_0 = arith.constant 0 : i32
    %c0_i32_1 = arith.constant 0 : i32
    return %c0_i32, %c0_i32_0 : i32, i32
  }
  func.func @transform_8(%arg0: i32, %arg1: i32) -> (i32, i32) {
    %c0_i32 = arith.constant 0 : i32
    %c0_i32_0 = arith.constant 0 : i32
    %c0_i32_1 = arith.constant 0 : i32
    return %c0_i32, %c0_i32_0 : i32, i32
  }
  func.func @transform_9(%arg0: i32, %arg1: i32) -> (i32, i32, i32) {
    %c0_i32 = arith.constant 0 : i32
    %c0_i32_0 = arith.constant 0 : i32
    return %arg0, %arg1, %c0_i32 : i32, i32, i32
  }
}

</mosaic_0001>

<bundles_post_ra>
// kernel: tpu_custom_call.1
= control target key start
LH: loop header
LB: loop body
LE: loop exit
PB: predicated region body
PF: predicated region fallthrough
CT: control target
= control target key end

     0   :  { %14 = vsyncpa [#allocation5], 0  ;;  %s4876_s0 = inlined_call_operand.vmem [shape: f32[2,8,32], index: 0, kind: input, shape index: {}]   ;;  %s4877_s1 = inlined_call_operand.vmem [shape: f32[2,64,32], index: 1, kind: input, shape index: {}]   ;;  %s4878_s2 = inlined_call_operand.vmem [shape: f32[2,8,2], index: 2, kind: input, shape index: {}]   ;;  %s4879_s3 = inlined_call_operand.vmem [shape: f32[32,32], index: 3, kind: input, shape index: {}]   ;;  %s4880_s4 = inlined_call_operand.vmem [shape: f32[1,32], index: 4, kind: input, shape index: {}]   ;;  %s4881_s5 = inlined_call_operand.vmem [shape: f32[32,48], index: 5, kind: input, shape index: {}]   ;;  %s4882_s6 = inlined_call_operand.vmem [shape: f32[1,48], index: 6, kind: input, shape index: {}]   ;;  %s4883_s7 = inlined_call_operand.vmem [shape: f32[32,32], index: 7, kind: input, shape index: {}]   ;;  %s4884_s8 = inlined_call_operand.vmem [shape: f32[1,32], index: 8, kind: input, shape index: {}]   ;;  %s4885_s9 = inlined_call_operand.hbm [shape: f32[2,8,32], index: 9, kind: output, shape index: {}]  }
   0x1   :  { %16 = vsyncpa [#allocation5 + $0x1], 0  ;;  %s3530_s30 = smov 0   ;;  %s3532_s10 = smov 0  }
   0x2   :  { %s3534_s11 = smov 0   ;;  %s3536_s12 = smov 0  }
   0x3   :  { %s3538_s13 = smov 0   ;;  %s3540_s14 = smov 0  }
   0x4 LB: > { %s2878_s15 = sadd.s32 4294967295, %s3456_s14   ;;  %s2879_s16 = sadd.s32 4294967294, %s3456_s14   ;;  %s3456_s14 = sphi %s3540_s14, %s22_s14   ;;  %s3452_s13 = sphi %s3538_s13, %s5019_s13   ;;  %s3448_s12 = sphi %s3536_s12, %s5018_s12   ;;  %s3444_s11 = sphi %s3534_s11, %s5017_s11   ;;  %s3440_s10 = sphi %s3532_s10, %s5016_s10   ;;  %s3436_s30 = sphi %s3530_s30, %s5015_s30  }
   0x5   : > { %s34_s17 = sadd.s32 1, %s3452_s13  ;;  %s251_s18 = sadd.s32 1, %s3444_s11 }
   0x6   : > { %p36_p0 = scmp.ge.s32.totalorder %s34_s17, 2  ;;  %p261_p1 = scmp.ne.s32.totalorder %s3444_s11, %s3440_s10 }
   0x7   : > { %p262_p2 = scmp.eq.s32.totalorder %s2878_s15, 1  ;;  %p267_p3 = scmp.ne.s32.totalorder %s3440_s10, %s3436_s30 }
   0x8   : > { %s5021_s17 = smov (%p36_p0, %s34_s17), 0  ;;  %p268_p5 = scmp.eq.s32.totalorder %s2879_s16, 1 }
   0x9   : > { %p3570_p4 = por %p262_p2, %p261_p1  ;;  %s246_s20 = ssub.s32 %s3452_s13, %s5021_s17 }
   0xa   : > { %p2882_p6 = scmp.ge.s32.totalorder %s3456_s14, 1  ;;  %p249_p7 = scmp.eq.s32.totalorder %s246_s20, 0 }
   0xb   : > { %p3577_p8 = por %p268_p5, %p267_p3  ;;  %p332_p9 = scmp.lt.s32.totalorder %s3456_s14, 3 }
   0xc   : > { %s3583_s22 = scalar_select %p249_p7, %s3444_s11, %s251_s18  }
   0xd   : > { %p333_p10 = pnand %p2882_p6, %p332_p9 }
   0xf   : > { %336 = sbr.rel (%p333_p10) target bundleno = 1898 (0x76a), region = 56 }
  0x16   : > { %v564_v0 = vld [vmem:[%s4881_s5] sm:$0xff]  ;;  %v565_v1 = vld [vmem:[%s4881_s5 + $0x8] sm:$0xff]  ;;  %v566_v2 = vld [vmem:[%s4881_s5 + $0x10] sm:$0xff]  ;;  %v4889_v3 = vmov 0.0|0.0   ;;  %vm3459_vm0 = vmmov 0   ;;  %v4886_v6 = vmov 0.0  }
  0x17   : > { %3160 = vmatprep.subr.bf16.mxu1 %v4889_v3  ;;  %v3161_v4 = vpack.c.bf16 %v565_v1, %v564_v0  ;;  %v567_v5 = vld [vmem:[%s4881_s5 + $0x18] sm:$0xff]  ;;  %3062 = vmatprep.mubr.msk.f32.mxu1 %vm3459_vm0, %v4886_v6  ;;  %p382_p11 = scmp.lt.s32.totalorder %s3448_s12, 1  ;;  %v413_v7 = vld [vmem:[%s4879_s3] sm:$0xff]  ;;  %v414_v8 = vld [vmem:[%s4879_s3 + $0x8] sm:$0xff]  ;;  %v3461_v12 = vmov 1   ;;  %v3462_v15 = vmov 0  }
  0x18   : > { %v3152_v9 = vpack.c.bf16 %v414_v8, %v413_v7  ;;  %v415_v10 = vld [vmem:[%s4879_s3 + $0x10] sm:$0xff]  ;;  %v416_v11 = vld [vmem:[%s4879_s3 + $0x18] sm:$0xff]  ;;  %3301 = vset.pattern.permute.xlu0 %v3461_v12  ;;  %v3164_v13 = vpack.c.bf16 %v567_v5, %v566_v2  ;;  %3300 = vset.pattern.permute.xlu1 %v3462_v15  ;;  %vm4917_vm1 = vcmask 261120   ;;  %v2897_v24 = vld [vmem:[%s4882_s6] ss:$0 sm:$0xff]  ;;  %vm1713_vm2 = vcmask 359744  }
  0x19   : > { %3162 = vmatpush3.bf16.msra.mxu1 %v3161_v4  ;;  %s383_s28 = scalar_select %p382_p11, %s3448_s12, 1  ;;  %v3156_v14 = vpack.c.bf16 %v416_v11, %v415_v10  ;;  %vm657_vm3 = vcmask 294144   ;;  %v3652_v28 = vld [vmem:[%s4880_s4] ss:$0 sm:$0xff]  ;;  %vm2196_vm4 = vcmask 392544   ;;  %vm1222_vm5 = vcmask 326944  }
  0x1a   : > { %3163 = vmatprep.subr.bf16.mxu1 %v4889_v3  ;;  %3153 = vmatprep.subr.bf16.mxu0 %v3152_v9  ;;  %s3464_s23 = smov 112   ;;  %s3465_s24 = smov 16  }
  0x1b   : > { %s2884_s29 = sshll.u32 %s383_s28, 3  ;;  %s2975_s15 = sshll.u32 %s383_s28, 6  ;;  %3155 = vmatpush3.bf16.msra.mxu0 %v3152_v9 }
  0x1c   : > { %s388_s20 = scalar_lea.vmem %s4876_s0, %s2884_s29  ;;  %s3622_s25 = scalar_lea.vmem %s4877_s1, %s2975_s15  ;;  %3157 = vmatprep.subr.bf16.mxu0 %v3156_v14 }
  0x1d   : > { %3165 = vmatpush3.bf16.msra.mxu1 %v3164_v13  ;;  %v562_v16 = vld [vmem:[%s388_s20] sm:$0xff]  ;;  %s400_s28 = scalar_lea.vmem %s4878_s2, %s2884_s29  ;;  %v406_v19 = vld [vmem:[%s3622_s25 + $0x8] sm:$0xff]  ;;  %v407_v20 = vld [vmem:[%s3622_s25 + $0x10] sm:$0xff]  ;;  %s3463_s20 = smov 120  }
  0x1e   : > { %v405_v17 = vld [vmem:[%s3622_s25] sm:$0xff]  ;;  %3178 = vmatprep.subr.bf16.mxu1 %v4889_v3  ;;  %v408_v21 = vld [vmem:[%s3622_s25 + $0x18] sm:$0xff]  ;;  %v410_v23 = vld [vmem:[%s3622_s25 + $0x28] sm:$0xff]  ;;  %s3467_s26 = smov 116   ;;  %s3468_s27 = smov 104  }
  0x1f   : > { %3042 = vmatprep.mubr.msk.f32.mxu0 %vm4917_vm1, %v405_v17  ;;  %v563_v18 = vld [vmem:[%s400_s28] sm:$0xff]  ;;  %3159 = vmatpush3.bf16.msra.mxu0 %v3156_v14  ;;  %s3469_s28 = smov 100   ;;  %s3470_s29 = smov 124  }
  0x20   : > { %684 = vperm.xlu0 %3301, %v563_v18   ;;  %3063 = vmatmul.mubr.msk.f32.vlgmr.msra.gmra.mrb[0].mxu1 %vm4917_vm1, %v562_v16  ;;  %v409_v22 = vld [vmem:[%s3622_s25 + $0x20] sm:$0xff]  ;;  %s3471_s15 = smov 92   ;;  %s3472_s16 = smov 88  }
  0x21   : > { %677 = vperm.xlu1 %3300, %v563_v18   ;;  %3166 = vmatprep.subr.bf16.mxu0 %v4889_v3  ;;  %s3473_s18 = smov 96  }
  0x22   : > { %3100 = vmatprep.mubr.msk.f32.mxu1 %vm3459_vm0, %v4886_v6  ;;  %3043 = vmatmul.mubr.msk.f32.vlgmr.msra.gmra.mrb[0].mxu0 %vm4917_vm1, %v406_v19 }
  0x23   : > { %3045 = vmatprep.mubr.msk.f32.mxu0 %vm4917_vm1, %v407_v20  ;;  %v411_v20 = vld [vmem:[%s3622_s25 + $0x30] sm:$0xff] }
  0x26   : > { %3046 = vmatmul.mubr.msk.f32.gmra.mrb[2].mxu0 %vm4917_vm1, %v408_v21  ;;  %v412_v21 = vld [vmem:[%s3622_s25 + $0x38] sm:$0xff]  ;;  %s3466_s25 = smov 108  }
  0x27   : > { %3048 = vmatprep.mubr.msk.f32.mxu0 %vm4917_vm1, %v409_v22 }
  0x2a   : > { %3049 = vmatmul.mubr.msk.f32.gmra.mrb[4].mxu0 %vm4917_vm1, %v410_v23 }
  0x2b   : > { %3051 = vmatprep.mubr.msk.f32.mxu0 %vm4917_vm1, %v411_v20 }
  0x2e   : > { %3052 = vmatmul.mubr.msk.f32.gmra.mrb[6].mxu0 %vm4917_vm1, %v412_v21  ;;  %v4888_v21 = vlaneseq }
  0x2f   : > { %3081 = vmatprep.mubr.msk.f32.mxu0 %vm3459_vm0, %v4886_v6 }
  0x9f   : > { %v685_v31 = vpop.permute.xlu0 %684 }
  0xa0   : > { %v678_v29 = vpop.permute.xlu1 %677 }
  0xf3   : > { %v645_v25 = vpop.f32.mrb[0].mxu1 }
  0xf4   : > { %v3647_v26 = vadd.f32 %v2897_v24, %v645_v25  ;;  %v3064_v27 = vpop.f32.mrb[1].mxu1 }
  0xf5   : > { %v3044_v30 = vpop.f32.mrb[0].mxu0 }
  0xf6   : > { %v674_v32 = vmul.f32 0.125, %v3647_v26  ;;  %v1714_v33 = vsel %vm1713_vm2, %v3647_v26, -inf  ;;  %v658_v34 = vsel %vm657_vm3, %v3647_v26, -inf  ;;  %v515_v35 = vpop.f32.mrb[1].mxu0  ;;  %v521_v36 = vadd.f32 %v3044_v30, %v3652_v28 }
  0xf7   : > { %1715 = vmax.xlane.f32.xlu1 %v1714_v33  ;;  %659 = vmax.xlane.f32.xlu0 %v658_v34  ;;  %v516_v37 = vadd.f32 %v3652_v28, %v515_v35  ;;  %v2197_v42 = vsel %vm2196_vm4, %v3647_v26, -inf  ;;  %v1223_v43 = vsel %vm1222_vm5, %v3647_v26, -inf  ;;  %vm668_vm4 = vcmask 31744  }
  0xf8   : > { %v680_v38 = vadd.f32 %v678_v29, %v674_v32  ;;  %v687_v39 = vadd.f32 %v685_v31, %v674_v32  ;;  %555 = vst.msk [vmem:[#allocation2 + $0x8] sm:$0xff] %vm4917_vm1, %v521_v36  ;;  %vm4918_vm5 = vcmask 64512  }
  0xf9   : > { %554 = vst.msk [vmem:[#allocation2] sm:$0xff] %vm4917_vm1, %v516_v37  ;;  %v3047_v40 = vpop.f32.mrb[2].mxu0 }
  0xfa   : > { %v681_v41 = vmul.f32 8.0, %v680_v38  ;;  %v531_v44 = vadd.f32 %v3047_v40, %v3652_v28  ;;  %v525_v45 = vpop.f32.mrb[3].mxu0  ;;  %v688_v48 = vmul.f32 8.0, %v687_v39 }
  0xfb   : > { %2198 = vmax.xlane.f32.xlu1 %v2197_v42  ;;  %1224 = vmax.xlane.f32.xlu0 %v1223_v43  ;;  %v526_v46 = vadd.f32 %v3652_v28, %v525_v45 }
  0xfc   : > { %v2899_v47 = vadd.f32 -0.5, %v681_v41  ;;  %557 = vst.msk [vmem:[#allocation2 + $0x18] sm:$0xff] %vm4917_vm1, %v531_v44  ;;  %v2900_v53 = vadd.f32 -0.5, %v688_v48 }
  0xfd   : > { %556 = vst.msk [vmem:[#allocation2 + $0x10] sm:$0xff] %vm4917_vm1, %v526_v46  ;;  %v3050_v61 = vpop.f32.mrb[4].mxu0 }
  0xfe   : > { %v690_v49 = vfloor.f32 %v2899_v47  ;;  %v691_v56 = vfloor.f32 %v2900_v53  ;;  %v535_v62 = vpop.f32.mrb[5].mxu0  ;;  %v541_v0 = vadd.f32 %v3050_v61, %v3652_v28 }
  0xff   : > { %v650_v52 = vld [vmem:[#allocation2 + $0x8] sm:$0xff]  ;;  %v536_v1 = vadd.f32 %v3652_v28, %v535_v62 }
 0x100   : > { %v3667_v50 = vsub.f32 %v2899_v47, %v690_v49  ;;  %v649_v51 = vld [vmem:[#allocation2] sm:$0xff]  ;;  %v3222_v59 = vtrunc.f32 %v691_v56  ;;  %v3220_v4 = vtrunc.f32 %v690_v49  ;;  %v693_v5 = vsub.f32 %v2900_v53, %v691_v56  ;;  %559 = vst.msk [vmem:[#allocation2 + $0x28] sm:$0xff] %vm4917_vm1, %v541_v0 }
 0x101   : > { %v3167_v54 = vpack.c.bf16 %v650_v52, %v649_v51  ;;  %v3669_v55 = vpack.i.bf16 %v650_v52, %v649_v51  ;;  %558 = vst.msk [vmem:[#allocation2 + $0x20] sm:$0xff] %vm4917_vm1, %v536_v1 }
 0x102   : > { %v3679_v2 = vcvt.f32.s32 %v3222_v59  ;;  %v3687_v7 = vcvt.f32.s32 %v3220_v4  ;;  %v696_v10 = vsub.f32 1.0, %v693_v5 }
 0x103   : > { %3168 = vmatpush3.bf16.msra.mxu0 %v3167_v54  ;;  %v652_v58 = vld [vmem:[#allocation2 + $0x18] sm:$0xff] }
 0x104   : > { %3169 = vmatprep.subr.bf16.mxu0 %v4889_v3  ;;  %v651_v57 = vld [vmem:[#allocation2 + $0x10] sm:$0xff]  ;;  %vm701_vm6 = vcmp.ge.s32.totalorder %v3679_v2, 0  ;;  %vm707_vm7 = vcmp.lt.s32.totalorder %v3679_v2, 8  ;;  %v748_v9 = vadd.s32 1, %v3679_v2  ;;  %v3699_v12 = vadd.s32 1, %v3687_v7 }
 0x105   : > { %v3170_v60 = vpack.c.bf16 %v652_v58, %v651_v57  ;;  %v3672_v63 = vpack.i.bf16 %v652_v58, %v651_v57  ;;  %v702_v8 = vsel %vm701_vm6, 1, %v3462_v15  ;;  %v708_v11 = vsel %vm707_vm7, 1, %v3462_v15 }
 0x106   : > { %vm749_vm8 = vcmp.ge.s32.totalorder %v748_v9, 0  ;;  %vm755_vm9 = vcmp.lt.s32.totalorder %v748_v9, 8  ;;  %v724_v36 = vmul.u32 8, %v3679_v2  ;;  %v768_v37 = vmul.u32 8, %v748_v9 }
 0x107   : > { %3171 = vmatpush3.bf16.msra.mxu0 %v3170_v60  ;;  %v654_v14 = vld [vmem:[#allocation2 + $0x28] sm:$0xff]  ;;  %v750_v17 = vsel %vm749_vm8, 1, %v3462_v15  ;;  %v756_v19 = vsel %vm755_vm9, 1, %v3462_v15  ;;  %vm795_vm6 = vcmask 97280   ;;  %vm733_vm7 = vcmp.ge.s32.totalorder %v3699_v12, 0 }
 0x108   : > { %3172 = vmatprep.subr.bf16.mxu0 %v4889_v3  ;;  %v653_v13 = vld [vmem:[#allocation2 + $0x20] sm:$0xff]  ;;  %vm734_vm8 = vcmp.lt.s32.totalorder %v3699_v12, 8 }
 0x109   : > { %v3173_v16 = vpack.c.bf16 %v654_v14, %v653_v13  ;;  %v3705_v18 = vpack.i.bf16 %v654_v14, %v653_v13 }
 0x10b   : > { %3174 = vmatpush3.bf16.msra.mxu0 %v3173_v16 }
 0x10c   : > { %3303 = vrot.lane.b32.xlu1 %v3669_v55, %s3463_s20  ;;  %3175 = vmatprep.subr.bf16.mxu0 %v4889_v3 }
 0x110   : > { %762 = vrot.lane.b32.xlu1 %v693_v5, %s3464_s23 }
 0x111   : > { %3308 = vrot.lane.b32.xlu0 %v3672_v63, %s3463_s20 }
 0x114   : > { %725 = vrot.lane.b32.xlu1 %v3687_v7, %s3465_s24 }
 0x115   : > { %703 = vrot.lane.b32.xlu0 %v702_v8, %s3464_s23 }
 0x118   : > { %714 = vrot.lane.b32.xlu1 %v696_v10, %s3464_s23 }
 0x119   : > { %709 = vrot.lane.b32.xlu0 %v708_v11, %s3464_s23 }
 0x11c   : > { %741 = vrot.lane.b32.xlu1 %v3699_v12, %s3465_s24 }
 0x11d   : > { %751 = vrot.lane.b32.xlu0 %v750_v17, %s3464_s23 }
 0x120   : > { %757 = vrot.lane.b32.xlu1 %v756_v19, %s3464_s23 }
 0x124   : > { %3313 = vrot.lane.b32.xlu1 %v3705_v18, %s3463_s20 }
 0x184   : > { %v3718_v22 = vpop.xlane.xlu1 %1715  ;;  %v3720_v23 = vpop.xlane.xlu0 %659 }
 0x185   : > { %v1717_v60 = vsub.f32 %v3647_v26, %v3718_v22  ;;  %v661_v0 = vsub.f32 %v3647_v26, %v3720_v23 }
 0x187   : > { %v1718_v1 = vmul.f32 1.442695, %v1717_v60  ;;  %v662_v4 = vmul.f32 1.442695, %v661_v0 }
 0x188   : > { %v3722_v24 = vpop.xlane.xlu1 %2198  ;;  %v1225_v15 = vpop.xlane.xlu0 %1224 }
 0x189   : > { %v1226_v52 = vsub.f32 %v3647_v26, %v1225_v15  ;;  %v2200_v2 = vsub.f32 %v3647_v26, %v3722_v24  ;;  %v3780_v24 = vshrl.u32 %v4888_v21, 7 }
 0x18b   : > { %v1227_v61 = vmul.f32 1.442695, %v1226_v52  ;;  %v2201_v5 = vmul.f32 1.442695, %v2200_v2  ;;  %v3826_v0 = vsub.s32 6, %v3780_v24 }
 0x18c   : > { %v3304_v25 = vpop.permute.xlu1 %3303  ;;  %v3309_v27 = vpop.permute.xlu0 %3308 }
 0x18d   : > { %v3306_v29 = vunpack.i.h.bf16 %v3304_v25  ;;  %v3305_v30 = vunpack.i.l.bf16 %v3304_v25  ;;  %v3311_v31 = vunpack.i.h.bf16 %v3309_v27  ;;  %v3310_v32 = vunpack.i.l.bf16 %v3309_v27 }
 0x18e   : > { %3362 = vpow2.f32 %v1227_v61  ;;  %v3821_v61 = vsub.s32 5, %v3780_v24 }
 0x18f   : > { %v3179_v33 = vpack.c.bf16 %v3306_v29, %v3305_v30  ;;  %v3182_v35 = vpack.c.bf16 %v3311_v31, %v3310_v32  ;;  %3364 = vpow2.f32 %v1718_v1  ;;  %v3786_v29 = vsub.s32 0, %v3780_v24 }
 0x190   : > { %v3724_v34 = vpop.permute.xlu1 %762  ;;  %3366 = vpow2.f32 %v662_v4  ;;  %v3769_v11 = vpop.permute.xlu0 %703  ;;  %v3831_v4 = vsub.s32 7, %v3780_v24 }
 0x191   : > { %3180 = vmatpush3.bf16.msra.mxu1 %v3179_v33  ;;  %3368 = vpow2.f32 %v2201_v5  ;;  %vm705_vm9 = vcmp.ne.s32.totalorder %v3769_v11, 0 }
 0x192   : > { %3181 = vmatprep.subr.bf16.mxu1 %v4889_v3 }
 0x194   : > { %v726_v38 = vpop.permute.xlu1 %725  ;;  %v3771_v13 = vpop.permute.xlu0 %709 }
 0x195   : > { %v727_v39 = vadd.s32 %v726_v38, %v724_v36  ;;  %v769_v40 = vadd.s32 %v768_v37, %v726_v38  ;;  %3183 = vmatpush3.bf16.msra.mxu1 %v3182_v35 }
 0x196   : > { %3184 = vmatprep.subr.bf16.mxu1 %v4889_v3 }
 0x197   : > { %vm728_vm10 = vcmp.gt.s32.totalorder %v727_v39, 0  ;;  %vm770_vm11 = vcmp.gt.s32.totalorder %v769_v40, 0 }
 0x198   : > { %v3729_v41 = vpop.permute.xlu1 %714  ;;  %v729_v42 = vsel %vm728_vm10, %v727_v39, 0  ;;  %v771_v43 = vsel %vm770_vm11, %v769_v40, 0  ;;  %v3754_v8 = vpop.eup %3362  ;;  %v3799_v40 = vsub.s32 2, %v3780_v24  ;;  %vm711_vm10 = vcmp.ne.s32.totalorder %v3771_v13, 0  ;;  %vm735_vm11 = vmand %vm733_vm7, %vm734_vm8 }
 0x199   : > { %vm730_vm12 = vcmp.lt.s32.totalorder %v729_v42, 63  ;;  %vm772_vm13 = vcmp.lt.s32.totalorder %v771_v43, 63  ;;  %v3758_v26 = vpop.eup %3364  ;;  %v3773_v14 = vpop.permute.xlu0 %751  ;;  %v4040_v12 = vmul.f32 %v3729_v41, %v3667_v50 }
 0x19a   : > { %v731_v44 = vsel %vm730_vm12, %v729_v42, 63  ;;  %v773_v48 = vsel %vm772_vm13, %v771_v43, 63  ;;  %v3762_v9 = vpop.eup %3366  ;;  %vm753_vm12 = vcmp.ne.s32.totalorder %v3773_v14, 0  ;;  %vm736_vm13 = vmand %vm735_vm11, %vm705_vm9 }
 0x19b   : > { %784 = vrot.lane.b32.xlu1 %v731_v44, %s3464_s23  ;;  %1250 = vrot.lane.b32.xlu0 %v731_v44, %s3466_s25  ;;  %v3764_v10 = vpop.eup %3368  ;;  %vm774_vm7 = vmand %vm735_vm11, %vm753_vm12 }
 0x19c   : > { %v742_v45 = vpop.permute.xlu1 %741 }
 0x19d   : > { %v743_v46 = vadd.s32 %v742_v45, %v724_v36  ;;  %v779_v47 = vadd.s32 %v768_v37, %v742_v45  ;;  %v3794_v36 = vsub.s32 1, %v3780_v24 }
 0x19f   : > { %788 = vrot.lane.b32.xlu1 %v773_v48, %s3463_s20  ;;  %1254 = vrot.lane.b32.xlu0 %v773_v48, %s3467_s26  ;;  %vm744_vm14 = vcmp.gt.s32.totalorder %v743_v46, 0  ;;  %vm780_vm15 = vcmp.gt.s32.totalorder %v779_v47, 0 }
 0x1a0   : > { %v3735_v49 = vpop.permute.xlu1 %757  ;;  %v745_v51 = vsel %vm744_vm14, %v743_v46, 0  ;;  %v781_v53 = vsel %vm780_vm15, %v779_v47, 0  ;;  %vm698_vm15 = vcmp.ge.s32.totalorder %v3687_v7, 0 }
 0x1a1   : > { %vm746_vm2 = vcmp.lt.s32.totalorder %v745_v51, 63  ;;  %vm782_vm3 = vcmp.lt.s32.totalorder %v781_v53, 63  ;;  %vm759_vm14 = vcmp.ne.s32.totalorder %v3735_v49, 0 }
 0x1a2   : > { %v747_v58 = vsel %vm746_vm2, %v745_v51, 63  ;;  %v783_v62 = vsel %vm782_vm3, %v781_v53, 63  ;;  %v3812_v53 = vsub.s32 4, %v3780_v24  ;;  %vm4046_vm2 = vmand %vm736_vm13, %vm711_vm10  ;;  %vm699_vm3 = vcmp.lt.s32.totalorder %v3687_v7, 8 }
 0x1a3   : > { %1741 = vrot.lane.b32.xlu1 %v731_v44, %s3468_s27  ;;  %2224 = vrot.lane.b32.xlu0 %v731_v44, %s3469_s28  ;;  %vm4060_vm8 = vmand %vm774_vm7, %vm759_vm14  ;;  %s3475_s28 = smov 12  }
 0x1a4   : > { %v3314_v54 = vpop.permute.xlu1 %3313  ;;  %vm4069_vm13 = vmand %vm698_vm15, %vm699_vm3 }
 0x1a5   : > { %v3316_v56 = vunpack.i.h.bf16 %v3314_v54  ;;  %v3315_v57 = vunpack.i.l.bf16 %v3314_v54  ;;  %v3053_v54 = vpop.f32.mrb[6].mxu0  ;;  %vm754_vm11 = vmand %vm4069_vm13, %vm753_vm12 }
 0x1a6   : > { %vm4080_vm7 = vmand %vm754_vm11, %vm759_vm14 }
 0x1a7   : > { %1745 = vrot.lane.b32.xlu1 %v773_v48, %s3464_s23  ;;  %786 = vrot.lane.b32.xlu0 %v747_v58, %s3467_s26  ;;  %v3185_v59 = vpack.c.bf16 %v3316_v56, %v3315_v57  ;;  %v551_v56 = vadd.f32 %v3053_v54, %v3652_v28  ;;  %v545_v57 = vpop.f32.mrb[7].mxu0  ;;  %vm706_vm12 = vmand %vm4069_vm13, %vm705_vm9 }
 0x1a8   : > { %vm4101_vm14 = vmand %vm706_vm12, %vm711_vm10 }
 0x1a9   : > { %3186 = vmatpush3.bf16.msra.mxu1 %v3185_v59  ;;  %561 = vst.msk [vmem:[#allocation2 + $0x38] sm:$0xff] %vm4917_vm1, %v551_v56 }
 0x1aa   : > { %3187 = vmatprep.subr.bf16.mxu1 %v4889_v3 }
 0x1ab   : > { %2228 = vrot.lane.b32.xlu1 %v773_v48, %s3466_s25  ;;  %790 = vrot.lane.b32.xlu0 %v783_v62, %s3470_s29  ;;  %v3807_v48 = vsub.s32 3, %v3780_v24 }
 0x1af   : > { %1252 = vrot.lane.b32.xlu1 %v747_v58, %s3464_s23  ;;  %1256 = vrot.lane.b32.xlu0 %v783_v62, %s3463_s20 }
 0x1b3   : > { %2226 = vrot.lane.b32.xlu1 %v747_v58, %s3468_s27  ;;  %1743 = vrot.lane.b32.xlu0 %v747_v58, %s3466_s25  ;;  %s3474_s25 = smov 84   ;;  %v546_v58 = vadd.f32 %v3652_v28, %v545_v57 }
 0x1b5   : > { %560 = vst.msk [vmem:[#allocation2 + $0x30] sm:$0xff] %vm4917_vm1, %v546_v58 }
 0x1b7   : > { %1747 = vrot.lane.b32.xlu0 %v783_v62, %s3467_s26  ;;  %1230 = vrot.lane.b32.xlu1 %v3754_v8, %s3471_s15  ;;  %s3476_s15 = smov 4  }
 0x1bb   : > { %2230 = vrot.lane.b32.xlu0 %v783_v62, %s3464_s23  ;;  %1721 = vrot.lane.b32.xlu1 %v3758_v26, %s3472_s16  ;;  %s3477_s16 = smov 8  }
 0x1bf   : > { %665 = vrot.lane.b32.xlu0 %v3762_v9, %s3473_s18  ;;  %2204 = vrot.lane.b32.xlu1 %v3764_v10, %s3474_s25 }
 0x20d   : > { %v785_v16 = vpop.permute.xlu1 %784  ;;  %v1251_v17 = vpop.permute.xlu0 %1250 }
 0x211   : > { %v789_v19 = vpop.permute.xlu1 %788  ;;  %v1255_v20 = vpop.permute.xlu0 %1254 }
 0x215   : > { %v3775_v22 = vpop.permute.xlu1 %1741  ;;  %v3777_v23 = vpop.permute.xlu0 %2224 }
 0x219   : > { %v3782_v15 = vpop.permute.xlu1 %1745  ;;  %v787_v25 = vpop.permute.xlu0 %786 }
 0x21a   : > { %v792_v27 = vsel %vm668_vm4, %v785_v16, %v787_v25 }
 0x21b   : > { %v794_v31 = vsel %vm4918_vm5, %v792_v27, %v789_v19 }
 0x21d   : > { %v3788_v30 = vpop.permute.xlu1 %2228  ;;  %v791_v32 = vpop.permute.xlu0 %790 }
 0x21e   : > { %v796_v33 = vsel %vm795_vm6, %v794_v31, %v791_v32 }
 0x21f   : > { %v817_v35 = vrot.slane %v796_v33, %v3786_v29  ;;  %v828_v39 = vrot.slane %v796_v33, %v3794_v36  ;;  %v839_v44 = vrot.slane %v796_v33, %v3799_v40  ;;  %v850_v51 = vrot.slane %v796_v33, %v3807_v48 }
 0x220   : > { %v861_v59 = vrot.slane %v796_v33, %v3812_v53  ;;  %v872_v62 = vrot.slane %v796_v33, %v3821_v61  ;;  %v883_v1 = vrot.slane %v796_v33, %v3826_v0  ;;  %v894_v16 = vrot.slane %v796_v33, %v3831_v4 }
 0x221   : > { %v1253_v37 = vpop.permute.xlu1 %1252  ;;  %823 = vbcast.lane.b32.xlu0 %v817_v35, 264  ;;  %819 = vbcast.lane.b32.xlu1 %v817_v35, 256  ;;  %v1257_v43 = vpop.permute.xlu0 %1256 }
 0x222   : > { %v1258_v38 = vsel %vm668_vm4, %v1251_v17, %v1253_v37 }
 0x223   : > { %v1259_v42 = vsel %vm4918_vm5, %v1258_v38, %v1255_v20 }
 0x224   : > { %v1260_v45 = vsel %vm795_vm6, %v1259_v42, %v1257_v43 }
 0x225   : > { %834 = vbcast.lane.b32.xlu0 %v828_v39, 264  ;;  %830 = vbcast.lane.b32.xlu1 %v828_v39, 256  ;;  %v1279_v46 = vrot.slane %v1260_v45, %v3786_v29  ;;  %v1290_v47 = vrot.slane %v1260_v45, %v3794_v36  ;;  %v1301_v52 = vrot.slane %v1260_v45, %v3799_v40  ;;  %v1744_v5 = vpop.permute.xlu0 %1743  ;;  %v2227_v32 = vpop.permute.xlu1 %2226 }
 0x226   : > { %v1312_v60 = vrot.slane %v1260_v45, %v3807_v48  ;;  %v1323_v28 = vrot.slane %v1260_v45, %v3812_v53  ;;  %v1334_v2 = vrot.slane %v1260_v45, %v3821_v61  ;;  %v1345_v17 = vrot.slane %v1260_v45, %v3826_v0 }
 0x227   : > { %v1749_v19 = vsel %vm668_vm4, %v3775_v22, %v1744_v5  ;;  %v1356_v24 = vrot.slane %v1260_v45, %v3831_v4  ;;  %v2232_v33 = vsel %vm668_vm4, %v3777_v23, %v2227_v32 }
 0x228   : > { %v1750_v25 = vsel %vm4918_vm5, %v1749_v19, %v3782_v15  ;;  %v2233_v35 = vsel %vm4918_vm5, %v2232_v33, %v3788_v30 }
 0x229   : > { %845 = vbcast.lane.b32.xlu0 %v839_v44, 264  ;;  %841 = vbcast.lane.b32.xlu1 %v839_v44, 256  ;;  %v1748_v20 = vpop.permute.xlu0 %1747 }
 0x22a   : > { %v3841_v27 = vsel %vm795_vm6, %v1750_v25, %v1748_v20  ;;  %v655_v20 = vld [vmem:[#allocation2 + $0x30] sm:$0xff]  ;;  %v656_v25 = vld [vmem:[#allocation2 + $0x38] sm:$0xff] }
 0x22b   : > { %v1770_v31 = vrot.slane %v3841_v27, %v3786_v29  ;;  %v1781_v22 = vrot.slane %v3841_v27, %v3794_v36  ;;  %v1792_v37 = vrot.slane %v3841_v27, %v3799_v40  ;;  %v1803_v30 = vrot.slane %v3841_v27, %v3807_v48 }
 0x22c   : > { %v1814_v43 = vrot.slane %v3841_v27, %v3812_v53  ;;  %v1825_v45 = vrot.slane %v3841_v27, %v3821_v61 }
 0x22d   : > { %1285 = vbcast.lane.b32.xlu0 %v1279_v46, 264  ;;  %1281 = vbcast.lane.b32.xlu1 %v1279_v46, 256  ;;  %v2231_v15 = vpop.permute.xlu0 %2230 }
 0x22e   : > { %v3854_v38 = vsel %vm795_vm6, %v2233_v35, %v2231_v15  ;;  %v3905_v15 = vpack.i.bf16 %v656_v25, %v655_v20 }
 0x22f   : > { %v2253_v39 = vrot.slane %v3854_v38, %v3786_v29  ;;  %v2264_v23 = vrot.slane %v3854_v38, %v3794_v36  ;;  %v2275_v42 = vrot.slane %v3854_v38, %v3799_v40  ;;  %v2286_v44 = vrot.slane %v3854_v38, %v3807_v48 }
 0x230   : > { %v2297_v46 = vrot.slane %v3854_v38, %v3812_v53  ;;  %v2308_v33 = vrot.slane %v3854_v38, %v3821_v61  ;;  %4922 = vst [vmem:[#allocation7_spill] sm:$0xff] %v3905_v15 }
 0x231   : > { %1296 = vbcast.lane.b32.xlu0 %v1290_v47, 264  ;;  %1292 = vbcast.lane.b32.xlu1 %v1290_v47, 256  ;;  %v1231_v47 = vpop.permute.xlu1 %1230 }
 0x235   : > { %856 = vbcast.lane.b32.xlu0 %v850_v51, 264  ;;  %852 = vbcast.lane.b32.xlu1 %v850_v51, 256  ;;  %v666_v51 = vpop.permute.xlu0 %665  ;;  %v1722_v54 = vpop.permute.xlu1 %1721 }
 0x239   : > { %1307 = vbcast.lane.b32.xlu0 %v1301_v52, 264  ;;  %1303 = vbcast.lane.b32.xlu1 %v1301_v52, 256  ;;  %v669_v52 = vsel %vm668_vm4, %v666_v51, 0.0  ;;  %v2205_v56 = vpop.permute.xlu1 %2204 }
 0x23d   : > { %867 = vbcast.lane.b32.xlu0 %v861_v59, 264  ;;  %863 = vbcast.lane.b32.xlu1 %v861_v59, 256 }
 0x241   : > { %1318 = vbcast.lane.b32.xlu0 %v1312_v60, 264  ;;  %1314 = vbcast.lane.b32.xlu1 %v1312_v60, 256 }
 0x245   : > { %878 = vbcast.lane.b32.xlu0 %v872_v62, 264  ;;  %874 = vbcast.lane.b32.xlu1 %v872_v62, 256 }
 0x249   : > { %1329 = vbcast.lane.b32.xlu0 %v1323_v28, 264  ;;  %1325 = vbcast.lane.b32.xlu1 %v1323_v28, 256 }
 0x24d   : > { %889 = vbcast.lane.b32.xlu0 %v883_v1, 264  ;;  %885 = vbcast.lane.b32.xlu1 %v883_v1, 256  ;;  %v1233_v1 = vsel %vm668_vm4, %v1231_v47, 0.0 }
 0x251   : > { %1340 = vbcast.lane.b32.xlu0 %v1334_v2, 264  ;;  %1336 = vbcast.lane.b32.xlu1 %v1334_v2, 256 }
 0x255   : > { %900 = vbcast.lane.b32.xlu0 %v894_v16, 264  ;;  %896 = vbcast.lane.b32.xlu1 %v894_v16, 256 }
 0x259   : > { %1351 = vbcast.lane.b32.xlu0 %v1345_v17, 264  ;;  %1347 = vbcast.lane.b32.xlu1 %v1345_v17, 256 }
 0x25d   : > { %1362 = vbcast.lane.b32.xlu0 %v1356_v24, 264  ;;  %1358 = vbcast.lane.b32.xlu1 %v1356_v24, 256  ;;  %v3176_v24 = vpack.c.bf16 %v656_v25, %v655_v20 }
 0x25f   : > { %3177 = vmatpush3.bf16.msra.mxu0 %v3176_v24 }
 0x260   : > { %3190 = vmatprep.subr.bf16.mxu0 %v4889_v3 }
 0x261   : > { %1776 = vbcast.lane.b32.xlu0 %v1770_v31, 264  ;;  %1772 = vbcast.lane.b32.xlu1 %v1770_v31, 256  ;;  %v1836_v31 = vrot.slane %v3841_v27, %v3826_v0 }
 0x265   : > { %1787 = vbcast.lane.b32.xlu0 %v1781_v22, 264  ;;  %1783 = vbcast.lane.b32.xlu1 %v1781_v22, 256 }
 0x269   : > { %1798 = vbcast.lane.b32.xlu0 %v1792_v37, 264  ;;  %1794 = vbcast.lane.b32.xlu1 %v1792_v37, 256 }
 0x26d   : > { %2259 = vbcast.lane.b32.xlu0 %v2253_v39, 264  ;;  %2255 = vbcast.lane.b32.xlu1 %v2253_v39, 256  ;;  %v1847_v39 = vrot.slane %v3841_v27, %v3831_v4 }
 0x271   : > { %2270 = vbcast.lane.b32.xlu0 %v2264_v23, 264  ;;  %2266 = vbcast.lane.b32.xlu1 %v2264_v23, 256 }
 0x275   : > { %1809 = vbcast.lane.b32.xlu1 %v1803_v30, 264 }
 0x279   : > { %2281 = vbcast.lane.b32.xlu1 %v2275_v42, 264 }
 0x27d   : > { %1820 = vbcast.lane.b32.xlu1 %v1814_v43, 264 }
 0x281   : > { %2292 = vbcast.lane.b32.xlu1 %v2286_v44, 264 }
 0x285   : > { %1831 = vbcast.lane.b32.xlu1 %v1825_v45, 264 }
 0x289   : > { %2303 = vbcast.lane.b32.xlu1 %v2297_v46, 264 }
 0x290   : > { %670 = vadd.xlane.f32.xlu0 %v669_v52  ;;  %v1724_v52 = vsel %vm668_vm4, %v1722_v54, 0.0 }
 0x293   : > { %v3873_v57 = vpop.permute.xlu1 %819  ;;  %v3877_v59 = vpop.permute.xlu0 %823 }
 0x297   : > { %v3875_v58 = vpop.permute.xlu1 %830  ;;  %v3881_v62 = vpop.permute.xlu0 %834 }
 0x29b   : > { %v3879_v60 = vpop.permute.xlu1 %841  ;;  %v3886_v2 = vpop.permute.xlu0 %845 }
 0x29f   : > { %v3883_v28 = vpop.permute.xlu1 %1281  ;;  %v3890_v16 = vpop.permute.xlu0 %1285 }
 0x2a3   : > { %v3888_v5 = vpop.permute.xlu1 %1292  ;;  %v3894_v19 = vpop.permute.xlu0 %1296 }
 0x2a6   : > { %1805 = vbcast.lane.b32.xlu0 %v1803_v30, 256 }
 0x2a7   : > { %v3892_v17 = vpop.permute.xlu1 %852  ;;  %v3900_v22 = vpop.permute.xlu0 %856 }
 0x2aa   : > { %2277 = vbcast.lane.b32.xlu0 %v2275_v42, 256  ;;  %v2319_v42 = vrot.slane %v3854_v38, %v3826_v0 }
 0x2ab   : > { %v3898_v32 = vpop.permute.xlu1 %1303  ;;  %v3909_v37 = vpop.permute.xlu0 %1307 }
 0x2ad   : > { %1234 = vadd.xlane.f32.xlu1 %v1233_v1 }
 0x2ae   : > { %1816 = vbcast.lane.b32.xlu0 %v1814_v43, 256 }
 0x2af   : > { %v3907_v35 = vpop.permute.xlu1 %863  ;;  %v3917_v30 = vpop.permute.xlu0 %867 }
 0x2b2   : > { %2288 = vbcast.lane.b32.xlu0 %v2286_v44, 256  ;;  %v2330_v44 = vrot.slane %v3854_v38, %v3831_v4  ;;  %v2207_v38 = vsel %vm668_vm4, %v2205_v56, 0.0 }
 0x2b3   : > { %v3915_v23 = vpop.permute.xlu1 %1314 }
 0x2b6   : > { %1827 = vbcast.lane.b32.xlu0 %v1825_v45, 256  ;;  %v3925_v45 = vpop.permute.xlu0 %1318 }
 0x2b7   : > { %v3921_v43 = vpop.permute.xlu1 %874 }
 0x2ba   : > { %2299 = vbcast.lane.b32.xlu0 %v2297_v46, 256  ;;  %v3929_v27 = vpop.permute.xlu0 %878 }
 0x2bb   : > { %v3927_v46 = vpop.permute.xlu1 %1325 }
 0x2be   : > { %1842 = vbcast.lane.b32.xlu1 %v1836_v31, 264  ;;  %1838 = vbcast.lane.b32.xlu0 %v1836_v31, 256  ;;  %v3933_v51 = vpop.permute.xlu0 %1329 }
 0x2bf   : > { %v3931_v47 = vpop.permute.xlu1 %885 }
 0x2c2   : > { %2310 = vbcast.lane.b32.xlu0 %v2308_v33, 256  ;;  %v3938_v20 = vpop.permute.xlu0 %889 }
 0x2c3   : > { %v3936_v1 = vpop.permute.xlu1 %1336 }
 0x2c6   : > { %3318 = vrot.lane.b32.xlu0 %v3905_v15, %s3463_s20  ;;  %v3943_v24 = vpop.permute.xlu0 %1340 }
 0x2c7   : > { %v3941_v25 = vpop.permute.xlu1 %896 }
 0x2ca   : > { %1853 = vbcast.lane.b32.xlu0 %v1847_v39, 264  ;;  %v3947_v6 = vpop.permute.xlu0 %900 }
 0x2cb   : > { %v3945_v31 = vpop.permute.xlu1 %1347 }
 0x2cc   : > { %4923 = vst [vmem:[#allocation8_spill] sm:$0xff] %v3945_v31 }
 0x2ce   : > { %2325 = vbcast.lane.b32.xlu0 %v2319_v42, 264  ;;  %v3951_v3 = vpop.permute.xlu0 %1351 }
 0x2cf   : > { %v3949_v21 = vpop.permute.xlu1 %1358  ;;  %4925 = vst [vmem:[#allocation10_spill] sm:$0xff] %v3951_v3 }
 0x2d0   : > { %4924 = vst [vmem:[#allocation9_spill] sm:$0xff] %v3949_v21 }
 0x2d2   : > { %2336 = vbcast.lane.b32.xlu0 %v2330_v44, 264 }
 0x2d3   : > { %v3953_v54 = vpop.permute.xlu1 %1772 }
 0x2d4   : > { %4926 = vst [vmem:[#allocation11_spill] sm:$0xff] %v3953_v54 }
 0x2d7   : > { %v3957_v56 = vpop.permute.xlu1 %1783 }
 0x2d8   : > { %4928 = vst [vmem:[#allocation13_spill] sm:$0xff] %v3957_v56 }
 0x2db   : > { %v3961_v15 = vpop.permute.xlu1 %1794 }
 0x2dc   : > { %4930 = vst [vmem:[#allocation15_spill] sm:$0xff] %v3961_v15 }
 0x2df   : > { %v3967_v21 = vpop.permute.xlu1 %2255 }
 0x2e0   : > { %4932 = vst [vmem:[#allocation17_spill] sm:$0xff] %v3967_v21 }
 0x2e2   : > { %1725 = vadd.xlane.f32.xlu1 %v1724_v52  ;;  %v3955_v52 = vpop.permute.xlu0 %1362 }
 0x2e3   : > { %4927 = vst [vmem:[#allocation12_spill] sm:$0xff] %v3955_v52  ;;  %v3971_v54 = vpop.permute.xlu1 %2266 }
 0x2e4   : > { %4934 = vst [vmem:[#allocation19_spill] sm:$0xff] %v3971_v54 }
 0x2e6   : > { %2208 = vadd.xlane.f32.xlu1 %v2207_v38  ;;  %v3959_v38 = vpop.permute.xlu0 %1776 }
 0x2e7   : > { %4929 = vst [vmem:[#allocation14_spill] sm:$0xff] %v3959_v38 }
 0x2ea   : > { %v3963_v31 = vpop.permute.xlu0 %1787 }
 0x2eb   : > { %4931 = vst [vmem:[#allocation16_spill] sm:$0xff] %v3963_v31 }
 0x2f7   : > { %2314 = vbcast.lane.b32.xlu1 %v2308_v33, 264  ;;  %v3969_v33 = vpop.permute.xlu0 %1798 }
 0x2f8   : > { %4933 = vst [vmem:[#allocation18_spill] sm:$0xff] %v3969_v33 }
 0x2fb   : > { %1849 = vbcast.lane.b32.xlu1 %v1847_v39, 256  ;;  %v3973_v39 = vpop.permute.xlu0 %2259 }
 0x2fc   : > { %4935 = vst [vmem:[#allocation20_spill] sm:$0xff] %v3973_v39 }
 0x2ff   : > { %2321 = vbcast.lane.b32.xlu1 %v2319_v42, 256  ;;  %v3975_v42 = vpop.permute.xlu1 %1809  ;;  %v3977_v56 = vpop.permute.xlu0 %2270 }
 0x300   : > { %4936 = vst [vmem:[#allocation21_spill] sm:$0xff] %v3975_v42  ;;  %4937 = vst [vmem:[#allocation22_spill] sm:$0xff] %v3977_v56 }
 0x303   : > { %2332 = vbcast.lane.b32.xlu1 %v2330_v44, 256  ;;  %v3979_v38 = vpop.permute.xlu1 %2281 }
 0x304   : > { %4938 = vst [vmem:[#allocation23_spill] sm:$0xff] %v3979_v38 }
 0x307   : > { %3323 = vrot.lane.b32.xlu1 %v3669_v55, %s3464_s23  ;;  %v3983_v31 = vpop.permute.xlu1 %1820 }
 0x308   : > { %4940 = vst [vmem:[#allocation25_spill] sm:$0xff] %v3983_v31 }
 0x30b   : > { %v3990_v39 = vpop.permute.xlu1 %2292 }
 0x30c   : > { %4943 = vst [vmem:[#allocation28_spill] sm:$0xff] %v3990_v39 }
 0x30f   : > { %v3995_v56 = vpop.permute.xlu1 %1831 }
 0x310   : > { %4945 = vst [vmem:[#allocation30_spill] sm:$0xff] %v3995_v56  ;;  %v4951_v56 = vmov 0.0|0.0  }
 0x313   : > { %v4001_v31 = vpop.permute.xlu1 %2303 }
 0x314   : > { %4948 = vst [vmem:[#allocation33_spill] sm:$0xff] %v4001_v31 }
 0x31d   : > { %v671_v44 = vpop.xlane.xlu0 %670 }
 0x31e   : > { %3370 = vrcp.f32 %v671_v44 }
 0x321   : > { %v3981_v15 = vpop.permute.xlu0 %1805 }
 0x322   : > { %4939 = vst [vmem:[#allocation24_spill] sm:$0xff] %v3981_v15 }
 0x325   : > { %v3985_v52 = vpop.permute.xlu0 %2277 }
 0x326   : > { %4941 = vst [vmem:[#allocation26_spill] sm:$0xff] %v3985_v52 }
 0x328   : > { %v3371_v21 = vpop.eup %3370 }
 0x329   : > { %v3987_v33 = vpop.permute.xlu0 %1816  ;;  %v673_v54 = vmul.f32 %v3371_v21, %v3762_v9 }
 0x32a   : > { %4942 = vst [vmem:[#allocation27_spill] sm:$0xff] %v3987_v33 }
 0x32b   : > { %719 = vrot.lane.b32.xlu1 %v673_v54, %s3473_s18 }
 0x32d   : > { %v3993_v42 = vpop.permute.xlu0 %2288 }
 0x32e   : > { %4944 = vst [vmem:[#allocation29_spill] sm:$0xff] %v3993_v42 }
 0x331   : > { %v3997_v44 = vpop.permute.xlu0 %1827 }
 0x332   : > { %4946 = vst [vmem:[#allocation31_spill] sm:$0xff] %v3997_v44 }
 0x335   : > { %v3999_v15 = vpop.permute.xlu0 %2299 }
 0x336   : > { %4947 = vst [vmem:[#allocation32_spill] sm:$0xff] %v3999_v15 }
 0x339   : > { %v4003_v52 = vpop.permute.xlu0 %1838 }
 0x33a   : > { %4949 = vst [vmem:[#allocation34_spill] sm:$0xff] %v4003_v52  ;;  %v1235_v38 = vpop.xlane.xlu1 %1234 }
 0x33b   : > { %3372 = vrcp.f32 %v1235_v38 }
 0x33d   : > { %v4005_v33 = vpop.permute.xlu0 %2310 }
 0x33e   : > { %4950 = vst [vmem:[#allocation35_spill] sm:$0xff] %v4005_v33  ;;  %v4010_v15 = vpop.permute.xlu1 %1842 }
 0x33f   : > { %4952 = vst [vmem:[#allocation36_spill] sm:$0xff] %v4010_v15 }
 0x341   : > { %v3319_v9 = vpop.permute.xlu0 %3318 }
 0x342   : > { %v3321_v21 = vunpack.i.h.bf16 %v3319_v9  ;;  %v3320_v39 = vunpack.i.l.bf16 %v3319_v9 }
 0x344   : > { %v3188_v54 = vpack.c.bf16 %v3321_v21, %v3320_v39 }
 0x345   : > { %v3373_v3 = vpop.eup %3372 }
 0x346   : > { %v1237_v42 = vmul.f32 %v3373_v3, %v3754_v8  ;;  %3189 = vmatpush3.bf16.msra.mxu1 %v3188_v54 }
 0x347   : > { %3202 = vmatprep.subr.bf16.mxu1 %v4951_v56 }
 0x348   : > { %1239 = vrot.lane.b32.xlu0 %v1237_v42, %s3473_s18 }
 0x36f   : > { %v1726_v44 = vpop.xlane.xlu1 %1725 }
 0x370   : > { %3374 = vrcp.f32 %v1726_v44 }
 0x373   : > { %v2209_v52 = vpop.xlane.xlu1 %2208 }
 0x374   : > { %3376 = vrcp.f32 %v2209_v52  ;;  %v4034_v52 = vmul.f32 %v3724_v34, %v3667_v50 }
 0x377   : > { %v4015_v3 = vpop.permute.xlu1 %2314 }
 0x378   : > { %4953 = vst [vmem:[#allocation37_spill] sm:$0xff] %v4015_v3 }
 0x37a   : > { %v3375_v38 = vpop.eup %3374 }
 0x37b   : > { %v1728_v33 = vmul.f32 %v3375_v38, %v3758_v26  ;;  %v4018_v8 = vpop.permute.xlu1 %1849 }
 0x37c   : > { %4954 = vst [vmem:[#allocation38_spill] sm:$0xff] %v4018_v8 }
 0x37d   : > { %1730 = vrot.lane.b32.xlu1 %v1728_v33, %s3473_s18 }
 0x37e   : > { %v3377_v39 = vpop.eup %3376 }
 0x37f   : > { %v2211_v9 = vmul.f32 %v3377_v39, %v3764_v10  ;;  %v4020_v42 = vpop.permute.xlu1 %2321  ;;  %v697_v10 = vsub.f32 1.0, %v3667_v50 }
 0x380   : > { %4955 = vst [vmem:[#allocation39_spill] sm:$0xff] %v4020_v42 }
 0x381   : > { %2213 = vrot.lane.b32.xlu0 %v2211_v9, %s3473_s18  ;;  %v4051_v54 = vmul.f32 %v3724_v34, %v697_v10  ;;  %v717_v42 = vmul.f32 %v3729_v41, %v697_v10 }
 0x383   : > { %v4022_v21 = vpop.permute.xlu1 %2332 }
 0x384   : > { %4956 = vst [vmem:[#allocation40_spill] sm:$0xff] %v4022_v21 }
 0x387   : > { %v4027_v26 = vpop.permute.xlu1 %3323 }
 0x39d   : > { %v720_v44 = vpop.permute.xlu1 %719 }
 0x39e   : > { %v777_v50 = vmul.f32 %v4034_v52, %v720_v44  ;;  %v739_v38 = vmul.f32 %v4040_v12, %v720_v44  ;;  %v766_v7 = vmul.f32 %v4051_v54, %v720_v44 }
 0x3a0   : > { %v778_v9 = vsel %vm4060_vm8, %v777_v50, 0.0  ;;  %v740_v34 = vsel %vm4046_vm2, %v739_v38, 0.0  ;;  %v767_v38 = vsel %vm4080_vm7, %v766_v7, 0.0 }
 0x3a1   : > { %806 = vrot.lane.b32.xlu0 %v778_v9, %s3475_s28  ;;  %798 = vrot.lane.b32.xlu1 %v740_v34, %s3476_s15  ;;  %v4087_v9 = vpop.permute.xlu0 %1853 }
 0x3a2   : > { %4965 = vst [vmem:[#allocation41_spill] sm:$0xff] %v4087_v9 }
 0x3a5   : > { %802 = vrot.lane.b32.xlu1 %v767_v38, %s3477_s16  ;;  %v4089_v34 = vpop.permute.xlu0 %2325 }
 0x3a6   : > { %4966 = vst [vmem:[#allocation42_spill] sm:$0xff] %v4089_v34 }
 0x3a9   : > { %v4091_v14 = vpop.permute.xlu0 %2336 }
 0x3aa   : > { %4967 = vst [vmem:[#allocation43_spill] sm:$0xff] %v4091_v14 }
 0x3ba   : > { %v1240_v8 = vpop.permute.xlu0 %1239 }
 0x3bb   : > { %v1248_v49 = vmul.f32 %v1240_v8, %v4034_v52  ;;  %v1242_v7 = vmul.f32 %v1240_v8, %v717_v42  ;;  %v1246_v11 = vmul.f32 %v1240_v8, %v4051_v54 }
 0x3bd   : > { %v1249_v3 = vsel %vm4060_vm8, %v1248_v49, 0.0  ;;  %v1243_v41 = vsel %vm4101_vm14, %v1242_v7, 0.0  ;;  %v1247_v21 = vsel %vm4080_vm7, %v1246_v11, 0.0 }
 0x3be   : > { %1270 = vrot.lane.b32.xlu0 %v1249_v3, %s3477_s16  ;;  %1262 = vrot.lane.b32.xlu1 %v1243_v41, %s3470_s29 }
 0x3c2   : > { %1266 = vrot.lane.b32.xlu1 %v1247_v21, %s3476_s15 }
 0x3ef   : > { %v4115_v13 = vpop.permute.xlu1 %1730 }
 0x3f0   : > { %v1735_v10 = vmul.f32 %v4115_v13, %v4040_v12  ;;  %v1733_v49 = vmul.f32 %v4115_v13, %v717_v42 }
 0x3f2   : > { %v1736_v7 = vsel %vm4046_vm2, %v1735_v10, 0.0  ;;  %v1734_v3 = vsel %vm4101_vm14, %v1733_v49, 0.0 }
 0x3f3   : > { %1757 = vrot.lane.b32.xlu0 %v1736_v7, %s3470_s29  ;;  %1753 = vrot.lane.b32.xlu1 %v1734_v3, %s3463_s20  ;;  %v4126_v41 = vpop.permute.xlu0 %2213  ;;  %v1739_v7 = vmul.f32 %v4115_v13, %v4034_v52 }
 0x3f4   : > { %v2218_v11 = vmul.f32 %v4126_v41, %v4040_v12  ;;  %v2216_v21 = vmul.f32 %v4126_v41, %v717_v42  ;;  %v2220_v49 = vmul.f32 %v4126_v41, %v4051_v54 }
 0x3f5   : > { %v1740_v34 = vsel %vm4060_vm8, %v1739_v7, 0.0 }
 0x3f6   : > { %v2219_v14 = vsel %vm4046_vm2, %v2218_v11, 0.0  ;;  %v2217_v10 = vsel %vm4101_vm14, %v2216_v21, 0.0  ;;  %v2221_v3 = vsel %vm4080_vm7, %v2220_v49, 0.0  ;;  %v722_v11 = vmul.f32 %v720_v44, %v717_v42 }
 0x3f7   : > { %2240 = vrot.lane.b32.xlu0 %v2219_v14, %s3463_s20  ;;  %2236 = vrot.lane.b32.xlu1 %v2217_v10, %s3467_s26  ;;  %v1244_v44 = vmul.f32 %v1240_v8, %v4040_v12  ;;  %s2972_s26 = sshll.u32 %s3448_s12, 7  ;;  %s3479_s12 = smov [#allocation4]  }
 0x3f8   : > { %v723_v9 = vsel %vm4101_vm14, %v722_v11, 0.0  ;;  %vm1054_vm14 = vcmask 523264   ;;  %s4828_s28 = scalar_lea.hbm %s4885_s9, %s2972_s26 }
 0x3fb   : > { %2244 = vrot.lane.b32.xlu0 %v2221_v3, %s3470_s29  ;;  %1761 = vrot.lane.b32.xlu1 %v1740_v34, %s3476_s15  ;;  %s3478_s15 = smov 24  }
 0x413   : > { %v799_v21 = vpop.permute.xlu1 %798  ;;  %v807_v31 = vpop.permute.xlu0 %806 }
 0x414   : > { %v809_v15 = vsel %vm668_vm4, %v723_v9, %v799_v21 }
 0x417   : > { %v803_v14 = vpop.permute.xlu1 %802 }
 0x418   : > { %v810_v10 = vsel %vm4918_vm5, %v809_v15, %v803_v14  ;;  %v1245_v15 = vsel %vm4046_vm2, %v1244_v44, 0.0 }
 0x419   : > { %v811_v49 = vsel %vm795_vm6, %v810_v10, %v807_v31 }
 0x41a   : > { %v953_v56 = vrot.slane %v811_v49, %v3786_v29  ;;  %v964_v7 = vrot.slane %v811_v49, %v3794_v36  ;;  %v975_v42 = vrot.slane %v811_v49, %v3799_v40  ;;  %v986_v8 = vrot.slane %v811_v49, %v3807_v48 }
 0x41b   : > { %v997_v33 = vrot.slane %v811_v49, %v3812_v53  ;;  %v1008_v10 = vrot.slane %v811_v49, %v3821_v61 }
 0x41c   : > { %959 = vbcast.lane.b32.xlu0 %v953_v56, 264  ;;  %955 = vbcast.lane.b32.xlu1 %v953_v56, 256 }
 0x420   : > { %970 = vbcast.lane.b32.xlu0 %v964_v7, 264  ;;  %966 = vbcast.lane.b32.xlu1 %v964_v7, 256 }
 0x424   : > { %981 = vbcast.lane.b32.xlu0 %v975_v42, 264  ;;  %977 = vbcast.lane.b32.xlu1 %v975_v42, 256  ;;  %v1019_v42 = vrot.slane %v811_v49, %v3826_v0 }
 0x430   : > { %v1263_v9 = vpop.permute.xlu1 %1262  ;;  %v1271_v38 = vpop.permute.xlu0 %1270 }
 0x431   : > { %v1273_v31 = vsel %vm668_vm4, %v1263_v9, %v1245_v15  ;;  %v1030_v9 = vrot.slane %v811_v49, %v3831_v4 }
 0x434   : > { %v1267_v34 = vpop.permute.xlu1 %1266 }
 0x435   : > { %v1274_v56 = vsel %vm4918_vm5, %v1273_v31, %v1267_v34 }
 0x436   : > { %v1275_v3 = vsel %vm795_vm6, %v1274_v56, %v1271_v38  ;;  %v1737_v56 = vmul.f32 %v4115_v13, %v4051_v54  ;;  %v2222_v54 = vmul.f32 %v4126_v41, %v4034_v52 }
 0x437   : > { %v1415_v11 = vrot.slane %v1275_v3, %v3786_v29  ;;  %v1426_v21 = vrot.slane %v1275_v3, %v3794_v36  ;;  %v1437_v12 = vrot.slane %v1275_v3, %v3799_v40  ;;  %v1448_v14 = vrot.slane %v1275_v3, %v3807_v48 }
 0x438   : > { %v1459_v7 = vrot.slane %v1275_v3, %v3812_v53  ;;  %v1470_v44 = vrot.slane %v1275_v3, %v3821_v61  ;;  %v1481_v15 = vrot.slane %v1275_v3, %v3826_v0  ;;  %v1492_v38 = vrot.slane %v1275_v3, %v3831_v4 }
 0x439   : > { %1421 = vbcast.lane.b32.xlu0 %v1415_v11, 264  ;;  %1417 = vbcast.lane.b32.xlu1 %v1415_v11, 256  ;;  %v1738_v49 = vsel %vm4080_vm7, %v1737_v56, 0.0 }
 0x43d   : > { %1432 = vbcast.lane.b32.xlu0 %v1426_v21, 264  ;;  %1428 = vbcast.lane.b32.xlu1 %v1426_v21, 256 }
 0x441   : > { %992 = vbcast.lane.b32.xlu0 %v986_v8, 264  ;;  %988 = vbcast.lane.b32.xlu1 %v986_v8, 256 }
 0x445   : > { %1443 = vbcast.lane.b32.xlu0 %v1437_v12, 264  ;;  %1439 = vbcast.lane.b32.xlu1 %v1437_v12, 256 }
 0x449   : > { %1003 = vbcast.lane.b32.xlu0 %v997_v33, 264  ;;  %999 = vbcast.lane.b32.xlu1 %v997_v33, 256 }
 0x44d   : > { %1454 = vbcast.lane.b32.xlu0 %v1448_v14, 264  ;;  %1450 = vbcast.lane.b32.xlu1 %v1448_v14, 256 }
 0x451   : > { %1014 = vbcast.lane.b32.xlu0 %v1008_v10, 264  ;;  %1010 = vbcast.lane.b32.xlu1 %v1008_v10, 256 }
 0x455   : > { %1465 = vbcast.lane.b32.xlu0 %v1459_v7, 264  ;;  %1461 = vbcast.lane.b32.xlu1 %v1459_v7, 256 }
 0x459   : > { %1025 = vbcast.lane.b32.xlu0 %v1019_v42, 264  ;;  %1021 = vbcast.lane.b32.xlu1 %v1019_v42, 256  ;;  %v2223_v42 = vsel %vm4060_vm8, %v2222_v54, 0.0 }
 0x45d   : > { %1476 = vbcast.lane.b32.xlu0 %v1470_v44, 264  ;;  %1472 = vbcast.lane.b32.xlu1 %v1470_v44, 256 }
 0x461   : > { %1036 = vbcast.lane.b32.xlu0 %v1030_v9, 264  ;;  %1032 = vbcast.lane.b32.xlu1 %v1030_v9, 256 }
 0x465   : > { %v1754_v31 = vpop.permute.xlu1 %1753  ;;  %1487 = vbcast.lane.b32.xlu0 %v1481_v15, 264  ;;  %1483 = vbcast.lane.b32.xlu1 %v1481_v15, 256  ;;  %v1758_v34 = vpop.permute.xlu0 %1757 }
 0x466   : > { %v1764_v21 = vsel %vm668_vm4, %v1754_v31, %v1758_v34 }
 0x467   : > { %v1765_v33 = vsel %vm4918_vm5, %v1764_v21, %v1738_v49 }
 0x469   : > { %v2237_v11 = vpop.permute.xlu1 %2236  ;;  %1498 = vbcast.lane.b32.xlu0 %v1492_v38, 264  ;;  %1494 = vbcast.lane.b32.xlu1 %v1492_v38, 256  ;;  %v2241_v8 = vpop.permute.xlu0 %2240 }
 0x46a   : > { %v2247_v7 = vsel %vm668_vm4, %v2237_v11, %v2241_v8  ;;  %v4970_v8 = vlaneseq }
 0x46c   : > { %v4210_v49 = vand.u32 127, %v4970_v8 }
 0x46d   : > { %v1762_v12 = vpop.permute.xlu1 %1761  ;;  %v2245_v3 = vpop.permute.xlu0 %2244 }
 0x46e   : > { %v1766_v14 = vsel %vm795_vm6, %v1765_v33, %v1762_v12  ;;  %v2248_v50 = vsel %vm4918_vm5, %v2247_v7, %v2245_v3  ;;  %vm904_vm4 = vcmp.eq.s32.totalorder %v4210_v49, %v3875_v58  ;;  %vm902_vm9 = vcmp.eq.s32.totalorder %v4210_v49, %v3873_v57 }
 0x46f   : > { %v1906_v10 = vrot.slane %v1766_v14, %v3786_v29  ;;  %v1917_v13 = vrot.slane %v1766_v14, %v3794_v36  ;;  %v1928_v44 = vrot.slane %v1766_v14, %v3799_v40  ;;  %v4191_v9 = vsel %vm795_vm6, %v2248_v50, %v2223_v42 }
 0x470   : > { %v2389_v52 = vrot.slane %v4191_v9, %v3786_v29  ;;  %v2400_v41 = vrot.slane %v4191_v9, %v3794_v36  ;;  %v1939_v39 = vrot.slane %v1766_v14, %v3807_v48  ;;  %v2411_v15 = vrot.slane %v4191_v9, %v3799_v40 }
 0x471   : > { %1912 = vbcast.lane.b32.xlu1 %v1906_v10, 264  ;;  %1908 = vbcast.lane.b32.xlu0 %v1906_v10, 256  ;;  %v1950_v31 = vrot.slane %v1766_v14, %v3812_v53  ;;  %v2422_v29 = vrot.slane %v4191_v9, %v3807_v48  ;;  %v1961_v36 = vrot.slane %v1766_v14, %v3821_v61 }
 0x472   : > { %v2433_v34 = vrot.slane %v4191_v9, %v3812_v53  ;;  %v1972_v56 = vrot.slane %v1766_v14, %v3826_v0  ;;  %v2444_v48 = vrot.slane %v4191_v9, %v3821_v61  ;;  %v1983_v53 = vrot.slane %v1766_v14, %v3831_v4 }
 0x473   : > { %vm905_vm6 = vcmp.eq.s32.totalorder %v4210_v49, %v3881_v62  ;;  %vm903_vm10 = vcmp.eq.s32.totalorder %v4210_v49, %v3877_v59  ;;  %vm906_vm15 = vcmp.eq.s32.totalorder %v4210_v49, %v3879_v60  ;;  %vm907_vm2 = vcmp.eq.s32.totalorder %v4210_v49, %v3886_v2 }
 0x474   : > { %v2455_v58 = vrot.slane %v4191_v9, %v3826_v0  ;;  %v4971_v62 = vmov 0.0   ;;  %vm1364_vm3 = vcmp.eq.s32.totalorder %v4210_v49, %v3883_v28  ;;  %vm1365_vm8 = vcmp.eq.s32.totalorder %v4210_v49, %v3890_v16 }
 0x475   : > { %1923 = vbcast.lane.b32.xlu1 %v1917_v13, 264  ;;  %1919 = vbcast.lane.b32.xlu0 %v1917_v13, 256  ;;  %v2903_v33 = vsel %vm904_vm4, 1.0, %v4971_v62  ;;  %v2904_v14 = vsel %vm905_vm6, 1.0, %v4971_v62  ;;  %v2901_v59 = vsel %vm902_vm9, 1.0, %v4971_v62  ;;  %v2902_v60 = vsel %vm903_vm10, 1.0, %v4971_v62 }
 0x476   : > { %v2905_v3 = vsel %vm906_vm15, 1.0, %v4971_v62  ;;  %v2906_v2 = vsel %vm907_vm2, 1.0, %v4971_v62  ;;  %vm1366_vm13 = vcmp.eq.s32.totalorder %v4210_v49, %v3888_v5  ;;  %v2466_v13 = vrot.slane %v4191_v9, %v3831_v4 }
 0x477   : > { %vm1367_vm11 = vcmp.eq.s32.totalorder %v4210_v49, %v3894_v19  ;;  %vm908_vm7 = vcmp.eq.s32.totalorder %v4210_v49, %v3892_v17  ;;  %vm909_vm12 = vcmp.eq.s32.totalorder %v4210_v49, %v3900_v22  ;;  %v4257_v9 = vsel %vm1364_vm3, 1.0, %v4971_v62 }
 0x478   : > { %v4277_v28 = vsel %vm1367_vm11, 1.0, %v4971_v62  ;;  %v2907_v16 = vsel %vm908_vm7, 1.0, %v4971_v62  ;;  %v2908_v5 = vsel %vm909_vm12, 1.0, %v4971_v62  ;;  %vm1368_vm4 = vcmp.eq.s32.totalorder %v4210_v49, %v3898_v32 }
 0x479   : > { %1934 = vbcast.lane.b32.xlu1 %v1928_v44, 264  ;;  %1930 = vbcast.lane.b32.xlu0 %v1928_v44, 256  ;;  %vm1369_vm6 = vcmp.eq.s32.totalorder %v4210_v49, %v3909_v37  ;;  %vm910_vm9 = vcmp.eq.s32.totalorder %v4210_v49, %v3907_v35  ;;  %vm911_vm10 = vcmp.eq.s32.totalorder %v4210_v49, %v3917_v30 }
 0x47a   : > { %vm1370_vm15 = vcmp.eq.s32.totalorder %v4210_v49, %v3915_v23  ;;  %vm1371_vm2 = vcmp.eq.s32.totalorder %v4210_v49, %v3925_v45  ;;  %vm912_vm3 = vcmp.eq.s32.totalorder %v4210_v49, %v3921_v43  ;;  %v2910_v32 = vsel %vm911_vm10, 1.0, %v4971_v62 }
 0x47b   : > { %v4343_v35 = vsel %vm1370_vm15, 1.0, %v4971_v62  ;;  %v4349_v37 = vsel %vm1371_vm2, 1.0, %v4971_v62  ;;  %v4355_v30 = vsel %vm912_vm3, 1.0, %v4971_v62  ;;  %vm1373_vm11 = vcmp.eq.s32.totalorder %v4210_v49, %v3933_v51 }
 0x47c   : > { %vm914_vm7 = vcmp.eq.s32.totalorder %v4210_v49, %v3931_v47  ;;  %vm915_vm12 = vcmp.eq.s32.totalorder %v4210_v49, %v3938_v20  ;;  %v4972_v20 = vld [vmem:[#allocation7_spill] sm:$0xff]  ;;  %v4386_v8 = vsel %vm1373_vm11, 1.0, %v4971_v62  ;;  %vm917_vm10 = vcmp.eq.s32.totalorder %v4210_v49, %v3947_v6  ;;  %v4976_v6 = vld [vmem:[#allocation12_spill] sm:$0xff] }
 0x47d   : > { %2395 = vbcast.lane.b32.xlu1 %v2389_v52, 264  ;;  %2391 = vbcast.lane.b32.xlu0 %v2389_v52, 256  ;;  %vm1137_vm11 = vcmask 1042434  }
 0x481   : > { %2406 = vbcast.lane.b32.xlu1 %v2400_v41, 264  ;;  %2402 = vbcast.lane.b32.xlu0 %v2400_v41, 256  ;;  %v4263_v41 = vsel %vm1365_vm8, 1.0, %v4971_v62  ;;  %vm913_vm8 = vcmp.eq.s32.totalorder %v4210_v49, %v3929_v27 }
 0x485   : > { %1945 = vbcast.lane.b32.xlu1 %v1939_v39, 264  ;;  %1941 = vbcast.lane.b32.xlu0 %v1939_v39, 256  ;;  %v4269_v39 = vsel %vm1366_vm13, 1.0, %v4971_v62  ;;  %vm1372_vm13 = vcmp.eq.s32.totalorder %v4210_v49, %v3927_v46  ;;  %v4389_v46 = vsel %vm914_vm7, 1.0, %v4971_v62  ;;  %vm1139_vm7 = vcmask 1043459  }
 0x486   : > { %v4375_v45 = vsel %vm1372_vm13, 1.0, %v4971_v62  ;;  %vm1135_vm13 = vcmask 1041409  }
 0x489   : > { %2417 = vbcast.lane.b32.xlu1 %v2411_v15, 264  ;;  %2413 = vbcast.lane.b32.xlu0 %v2411_v15, 256 }
 0x48d   : > { %1956 = vbcast.lane.b32.xlu1 %v1950_v31, 264  ;;  %1952 = vbcast.lane.b32.xlu0 %v1950_v31, 256 }
 0x48e   : > { %v956_v40 = vpop.permute.xlu1 %955  ;;  %v960_v38 = vpop.permute.xlu0 %959 }
 0x48f   : > { %v1038_v7 = vmul.f32 %v2901_v59, %v956_v40  ;;  %v1039_v50 = vmul.f32 %v2902_v60, %v960_v38  ;;  %v4323_v38 = vsel %vm1369_vm6, 1.0, %v4971_v62  ;;  %vm1375_vm6 = vcmp.eq.s32.totalorder %v4210_v49, %v3943_v24 }
 0x491   : > { %2428 = vbcast.lane.b32.xlu1 %v2422_v29, 264  ;;  %2424 = vbcast.lane.b32.xlu0 %v2422_v29, 256  ;;  %v1055_v17 = vsel %vm1054_vm14, %v1038_v7, 0.0  ;;  %v1056_v22 = vsel %vm1054_vm14, %v1039_v50, 0.0 }
 0x492   : > { %v967_v11 = vpop.permute.xlu1 %966  ;;  %v971_v21 = vpop.permute.xlu0 %970 }
 0x493   : > { %v1040_v10 = vmul.f32 %v2903_v33, %v967_v11  ;;  %v1041_v57 = vmul.f32 %v2904_v14, %v971_v21  ;;  %v4974_v33 = vld [vmem:[#allocation10_spill] sm:$0xff] }
 0x494   : > { %vm1377_vm2 = vcmp.eq.s32.totalorder %v4210_v49, %v4974_v33 }
 0x495   : > { %1963 = vbcast.lane.b32.xlu1 %v1961_v36, 256  ;;  %1967 = vbcast.lane.b32.xlu0 %v1961_v36, 264  ;;  %v1064_v42 = vsel %vm1054_vm14, %v1040_v10, 0.0  ;;  %v1065_v44 = vsel %vm1054_vm14, %v1041_v57, 0.0  ;;  %v4410_v57 = vsel %vm1375_vm6, 1.0, %v4971_v62  ;;  %vm1145_vm6 = vcmask 1046534  }
 0x496   : > { %v978_v61 = vpop.permute.xlu1 %977  ;;  %v982_v12 = vpop.permute.xlu0 %981  ;;  %v1066_v19 = vadd.f32 %v1065_v44, %v1064_v42 }
 0x497   : > { %v1042_v52 = vmul.f32 %v2905_v3, %v978_v61  ;;  %v1043_v4 = vmul.f32 %v2906_v2, %v982_v12 }
 0x498   : > { %v1067_v11 = vrot.slane %v1066_v19, 4 }
 0x499   : > { %2435 = vbcast.lane.b32.xlu1 %v2433_v34, 256  ;;  %2439 = vbcast.lane.b32.xlu0 %v2433_v34, 264  ;;  %v1073_v29 = vsel %vm1054_vm14, %v1042_v52, 0.0  ;;  %v1074_v36 = vsel %vm1054_vm14, %v1043_v4, 0.0  ;;  %v4442_v52 = vsel %vm1377_vm2, 1.0, %v4971_v62  ;;  %v4975_v4 = vld [vmem:[#allocation9_spill] sm:$0xff] }
 0x49a   : > { %v1075_v21 = vadd.f32 %v1074_v36, %v1073_v29  ;;  %v1068_v47 = vadd.f32 %v1067_v11, %v1066_v19  ;;  %vm1378_vm3 = vcmp.eq.s32.totalorder %v4210_v49, %v4975_v4 }
 0x49c   : > { %v1076_v51 = vrot.slane %v1075_v21, 4  ;;  %v1069_v60 = vrot.slane %v1068_v47, 2 }
 0x49d   : > { %1974 = vbcast.lane.b32.xlu1 %v1972_v56, 256  ;;  %1978 = vbcast.lane.b32.xlu0 %v1972_v56, 264  ;;  %v2909_v56 = vsel %vm910_vm9, 1.0, %v4971_v62  ;;  %vm916_vm9 = vcmp.eq.s32.totalorder %v4210_v49, %v3941_v25  ;;  %v4428_v25 = vsel %vm917_vm10, 1.0, %v4971_v62 }
 0x4a1   : > { %2446 = vbcast.lane.b32.xlu1 %v2444_v48, 256  ;;  %2450 = vbcast.lane.b32.xlu0 %v2444_v48, 264  ;;  %v1057_v48 = vadd.f32 %v1056_v22, %v1055_v17 }
 0x4a3   : > { %v1058_v27 = vrot.slane %v1057_v48, 4 }
 0x4a5   : > { %1985 = vbcast.lane.b32.xlu1 %v1983_v53, 256  ;;  %1989 = vbcast.lane.b32.xlu0 %v1983_v53, 264  ;;  %v4392_v53 = vsel %vm915_vm12, 1.0, %v4971_v62  ;;  %v1059_v59 = vadd.f32 %v1058_v27, %v1057_v48  ;;  %vm4919_vm12 = vcmask 1044484  }
 0x4a9   : > { %2457 = vbcast.lane.b32.xlu1 %v2455_v58, 256  ;;  %2461 = vbcast.lane.b32.xlu0 %v2455_v58, 264 }
 0x4ab   : > { %v4239_v0 = vpop.permute.xlu1 %1417  ;;  %v4241_v54 = vpop.permute.xlu0 %1421 }
 0x4ad   : > { %2472 = vbcast.lane.b32.xlu1 %v2466_v13, 264  ;;  %2468 = vbcast.lane.b32.xlu0 %v2466_v13, 256  ;;  %v1077_v13 = vadd.f32 %v1076_v51, %v1075_v21 }
 0x4af   : > { %v4271_v15 = vpop.permute.xlu1 %1428  ;;  %v4279_v31 = vpop.permute.xlu0 %1432  ;;  %v1078_v22 = vrot.slane %v1077_v13, 2 }
 0x4b0   : > { %v1502_v3 = vmul.f32 %v4269_v39, %v4271_v15  ;;  %v1503_v2 = vmul.f32 %v4277_v28, %v4279_v31  ;;  %v1500_v39 = vmul.f32 %v4257_v9, %v4239_v0  ;;  %v1501_v15 = vmul.f32 %v4263_v41, %v4241_v54 }
 0x4b1   : > { %3333 = vrot.lane.b32.xlu1 %v3672_v63, %s3464_s23  ;;  %3328 = vrot.lane.b32.xlu0 %v3669_v55, %s3468_s27  ;;  %v4317_v55 = vsel %vm1368_vm4, 1.0, %v4971_v62  ;;  %vm1374_vm4 = vcmp.eq.s32.totalorder %v4210_v49, %v3936_v1  ;;  %v4416_v1 = vsel %vm916_vm9, 1.0, %v4971_v62  ;;  %v3325_v0 = vunpack.i.l.bf16 %v4027_v26 }
 0x4b2   : > { %v4400_v58 = vsel %vm1374_vm4, 1.0, %v4971_v62  ;;  %v1525_v19 = vsel %vm1054_vm14, %v1502_v3, 0.0  ;;  %v1526_v17 = vsel %vm1054_vm14, %v1503_v2, 0.0  ;;  %v4462_v54 = vsel %vm1378_vm3, 1.0, %v4971_v62 }
 0x4b3   : > { %v989_v34 = vpop.permute.xlu1 %988  ;;  %v993_v40 = vpop.permute.xlu0 %992  ;;  %v1516_v41 = vsel %vm1054_vm14, %v1500_v39, 0.0  ;;  %v1527_v48 = vadd.f32 %v1526_v17, %v1525_v19  ;;  %vm1143_vm4 = vcmask 1045509   ;;  %vm1147_vm9 = vcmask 1047559  }
 0x4b4   : > { %v1044_v61 = vmul.f32 %v2907_v16, %v989_v34  ;;  %v1045_v12 = vmul.f32 %v2908_v5, %v993_v40  ;;  %v1060_v16 = vrot.slane %v1059_v59, 2  ;;  %v1070_v5 = vadd.f32 %v1069_v60, %v1068_v47 }
 0x4b5   : > { %3343 = vrot.lane.b32.xlu1 %v3705_v18, %s3464_s23  ;;  %3338 = vrot.lane.b32.xlu0 %v3672_v63, %s3468_s27  ;;  %v4367_v63 = vsel %vm913_vm8, 1.0, %v4971_v62  ;;  %vm1379_vm8 = vcmp.eq.s32.totalorder %v4210_v49, %v4976_v6  ;;  %v3326_v40 = vunpack.i.h.bf16 %v4027_v26  ;;  %v1528_v3 = vrot.slane %v1527_v48, 4 }
 0x4b6   : > { %v1082_v24 = vsel %vm1054_vm14, %v1044_v61, 0.0  ;;  %v1083_v42 = vsel %vm1054_vm14, %v1045_v12, 0.0  ;;  %v4468_v9 = vsel %vm1379_vm8, 1.0, %v4971_v62  ;;  %v1061_v61 = vadd.f32 %v1060_v16, %v1059_v59 }
 0x4b7   : > { %v1440_v23 = vpop.permute.xlu1 %1439  ;;  %v1444_v43 = vpop.permute.xlu0 %1443  ;;  %v1084_v29 = vadd.f32 %v1083_v42, %v1082_v24  ;;  %v1071_v12 = vrot.slane %v1070_v5, 1  ;;  %v1529_v19 = vadd.f32 %v1528_v3, %v1527_v48 }
 0x4b8   : > { %v1504_v11 = vmul.f32 %v4317_v55, %v1440_v23  ;;  %v1505_v27 = vmul.f32 %v4323_v38, %v1444_v43 }
 0x4b9   : > { %3353 = vrot.lane.b32.xlu1 %v4972_v20, %s3464_s23  ;;  %3348 = vrot.lane.b32.xlu0 %v3705_v18, %s3468_s27  ;;  %v4973_v18 = vld [vmem:[#allocation8_spill] sm:$0xff]  ;;  %v1085_v33 = vrot.slane %v1084_v29, 4  ;;  %v1072_v24 = vadd.f32 %v1071_v12, %v1070_v5 }
 0x4ba   : > { %vm1376_vm15 = vcmp.eq.s32.totalorder %v4210_v49, %v4973_v18  ;;  %v1079_v18 = vadd.f32 %v1078_v22, %v1077_v13  ;;  %v1534_v38 = vsel %vm1054_vm14, %v1504_v11, 0.0 }
 0x4bb   : > { %v1000_v14 = vpop.permute.xlu1 %999  ;;  %v1004_v10 = vpop.permute.xlu0 %1003  ;;  %v4436_v44 = vsel %vm1376_vm15, 1.0, %v4971_v62 }
 0x4bc   : > { %v1046_v7 = vmul.f32 %v2909_v56, %v1000_v14  ;;  %v1047_v50 = vmul.f32 %v2910_v32, %v1004_v10  ;;  %v1517_v56 = vsel %vm1054_vm14, %v1501_v15, 0.0 }
 0x4bd   : > { %3358 = vrot.lane.b32.xlu0 %v4972_v20, %s3468_s27  ;;  %v1518_v60 = vadd.f32 %v1517_v56, %v1516_v41 }
 0x4be   : > { %v1091_v36 = vsel %vm1054_vm14, %v1046_v7, 0.0  ;;  %v1092_v34 = vsel %vm1054_vm14, %v1047_v50, 0.0  ;;  %v1062_v7 = vrot.slane %v1061_v61, 1  ;;  %v1086_v50 = vadd.f32 %v1085_v33, %v1084_v29 }
 0x4bf   : > { %v1451_v28 = vpop.permute.xlu1 %1450  ;;  %v1455_v31 = vpop.permute.xlu0 %1454  ;;  %v1093_v47 = vadd.f32 %v1092_v34, %v1091_v36  ;;  %v1519_v39 = vrot.slane %v1518_v60, 4 }
 0x4c0   : > { %v1506_v14 = vmul.f32 %v4343_v35, %v1451_v28  ;;  %v1507_v10 = vmul.f32 %v4349_v37, %v1455_v31  ;;  %v1080_v37 = vrot.slane %v1079_v18, 1  ;;  %v1063_v5 = vadd.f32 %v1062_v7, %v1061_v61 }
 0x4c1   : > { %v1094_v59 = vrot.slane %v1093_v47, 4  ;;  %v1087_v36 = vrot.slane %v1086_v50, 2 }
 0x4c2   : > { %v1543_v42 = vsel %vm1054_vm14, %v1506_v14, 0.0  ;;  %v1544_v4 = vsel %vm1054_vm14, %v1507_v10, 0.0  ;;  %v1081_v29 = vadd.f32 %v1080_v37, %v1079_v18 }
 0x4c3   : > { %v1011_v32 = vpop.permute.xlu1 %1010  ;;  %v1015_v21 = vpop.permute.xlu0 %1014  ;;  %v1545_v34 = vadd.f32 %v1544_v4, %v1543_v42  ;;  %v1088_v33 = vadd.f32 %v1087_v36, %v1086_v50 }
 0x4c4   : > { %v1048_v51 = vmul.f32 %v4355_v30, %v1011_v32  ;;  %v1049_v20 = vmul.f32 %v4367_v63, %v1015_v21  ;;  %v1535_v63 = vsel %vm1054_vm14, %v1505_v27, 0.0  ;;  %v1136_v21 = vsel %vm1135_vm13, %v1072_v24, %v1063_v5 }
 0x4c5   : > { %v1536_v15 = vadd.f32 %v1535_v63, %v1534_v38  ;;  %v1520_v27 = vadd.f32 %v1519_v39, %v1518_v60  ;;  %v1138_v18 = vsel %vm1137_vm11, %v1081_v29, %v1136_v21  ;;  %v1546_v14 = vrot.slane %v1545_v34, 4 }
 0x4c6   : > { %v1100_v55 = vsel %vm1054_vm14, %v1048_v51, 0.0  ;;  %v1101_v23 = vsel %vm1054_vm14, %v1049_v20, 0.0  ;;  %v1089_v7 = vrot.slane %v1088_v33, 1 }
 0x4c7   : > { %v1102_v43 = vadd.f32 %v1101_v23, %v1100_v55  ;;  %v1462_v30 = vpop.permute.xlu1 %1461  ;;  %v1466_v2 = vpop.permute.xlu0 %1465  ;;  %v1537_v51 = vrot.slane %v1536_v15, 4  ;;  %v1521_v38 = vrot.slane %v1520_v27, 2  ;;  %v1547_v37 = vadd.f32 %v1546_v14, %v1545_v34 }
 0x4c8   : > { %v1508_v13 = vmul.f32 %v4375_v45, %v1462_v30  ;;  %v1509_v35 = vmul.f32 %v4386_v8, %v1466_v2  ;;  %v1095_v8 = vadd.f32 %v1094_v59, %v1093_v47  ;;  %v1090_v5 = vadd.f32 %v1089_v7, %v1088_v33 }
 0x4c9   : > { %v1103_v6 = vrot.slane %v1102_v43, 4  ;;  %v1548_v29 = vrot.slane %v1547_v37, 2 }
 0x4ca   : > { %v1552_v28 = vsel %vm1054_vm14, %v1508_v13, 0.0  ;;  %v1553_v31 = vsel %vm1054_vm14, %v1509_v35, 0.0  ;;  %v1096_v12 = vrot.slane %v1095_v8, 2 }
 0x4cb   : > { %v1022_v16 = vpop.permute.xlu1 %1021  ;;  %v1026_v45 = vpop.permute.xlu0 %1025  ;;  %v1104_v41 = vadd.f32 %v1103_v6, %v1102_v43  ;;  %v1554_v56 = vadd.f32 %v1553_v31, %v1552_v28  ;;  %v1538_v43 = vadd.f32 %v1537_v51, %v1536_v15  ;;  %v1522_v15 = vadd.f32 %v1521_v38, %v1520_v27 }
 0x4cc   : > { %v1050_v17 = vmul.f32 %v4389_v46, %v1022_v16  ;;  %v1051_v22 = vmul.f32 %v4392_v53, %v1026_v45  ;;  %v1530_v46 = vrot.slane %v1529_v19, 2 }
 0x4cd   : > { %v1105_v55 = vrot.slane %v1104_v41, 2  ;;  %v1555_v23 = vrot.slane %v1554_v56, 4  ;;  %v1539_v28 = vrot.slane %v1538_v43, 2 }
 0x4ce   : > { %v1109_v11 = vsel %vm1054_vm14, %v1050_v17, 0.0  ;;  %v1110_v32 = vsel %vm1054_vm14, %v1051_v22, 0.0  ;;  %v4498_v59 = vadd.f32 %v1530_v46, %v1529_v19 }
 0x4cf   : > { %v1111_v48 = vadd.f32 %v1110_v32, %v1109_v11  ;;  %v1473_v47 = vpop.permute.xlu1 %1472  ;;  %v1477_v20 = vpop.permute.xlu0 %1476  ;;  %v1106_v42 = vadd.f32 %v1105_v55, %v1104_v41  ;;  %v1556_v4 = vadd.f32 %v1555_v23, %v1554_v56  ;;  %v1540_v32 = vadd.f32 %v1539_v28, %v1538_v43 }
 0x4d0   : > { %v1510_v53 = vmul.f32 %v4400_v58, %v1473_v47  ;;  %v1511_v61 = vmul.f32 %v4410_v57, %v1477_v20  ;;  %v1097_v57 = vadd.f32 %v1096_v12, %v1095_v8  ;;  %v1532_v22 = vrot.slane %v4498_v59, 1 }
 0x4d1   : > { %v1112_v10 = vrot.slane %v1111_v48, 4  ;;  %v1107_v34 = vrot.slane %v1106_v42, 1  ;;  %v1557_v41 = vrot.slane %v1556_v4, 2  ;;  %v1140_v12 = vsel %vm1139_vm7, %v1090_v5, %v1138_v18 }
 0x4d2   : > { %v1561_v60 = vsel %vm1054_vm14, %v1510_v53, 0.0  ;;  %v1562_v3 = vsel %vm1054_vm14, %v1511_v61, 0.0  ;;  %v1549_v53 = vadd.f32 %v1548_v29, %v1547_v37 }
 0x4d3   : > { %v1113_v30 = vadd.f32 %v1112_v10, %v1111_v48  ;;  %v1563_v2 = vadd.f32 %v1562_v3, %v1561_v60  ;;  %v1033_v63 = vpop.permute.xlu1 %1032  ;;  %v1037_v58 = vpop.permute.xlu0 %1036  ;;  %v1108_v14 = vadd.f32 %v1107_v34, %v1106_v42  ;;  %v1558_v10 = vadd.f32 %v1557_v41, %v1556_v4  ;;  %v4978_v34 = vld [vmem:[#allocation11_spill] sm:$0xff] }
 0x4d4   : > { %v1052_v13 = vmul.f32 %v4416_v1, %v1033_v63  ;;  %v1053_v35 = vmul.f32 %v4428_v25, %v1037_v58  ;;  %v1098_v1 = vrot.slane %v1097_v57, 1  ;;  %v1550_v63 = vrot.slane %v1549_v53, 1 }
 0x4d5   : > { %v1114_v50 = vrot.slane %v1113_v30, 2  ;;  %v1564_v24 = vrot.slane %v1563_v2, 4  ;;  %vm1855_vm10 = vcmp.eq.s32.totalorder %v4210_v49, %v4978_v34 }
 0x4d6   : > { %v1118_v6 = vsel %vm1054_vm14, %v1052_v13, 0.0  ;;  %v1119_v39 = vsel %vm1054_vm14, %v1053_v35, 0.0  ;;  %v1099_v47 = vadd.f32 %v1098_v1, %v1097_v57  ;;  %v1533_v13 = vadd.f32 %v1532_v22, %v4498_v59 }
 0x4d7   : > { %v1565_v31 = vadd.f32 %v1564_v24, %v1563_v2  ;;  %v1120_v16 = vadd.f32 %v1119_v39, %v1118_v6  ;;  %v1484_v45 = vpop.permute.xlu1 %1483  ;;  %v1488_v19 = vpop.permute.xlu0 %1487  ;;  %v1115_v25 = vadd.f32 %v1114_v50, %v1113_v30  ;;  %v1523_v30 = vrot.slane %v1522_v15, 1 }
 0x4d8   : > { %v1512_v8 = vmul.f32 %v4436_v44, %v1484_v45  ;;  %v1513_v17 = vmul.f32 %v4442_v52, %v1488_v19  ;;  %v1541_v2 = vrot.slane %v1540_v32, 1  ;;  %v1559_v35 = vrot.slane %v1558_v10, 1 }
 0x4d9   : > { %v1121_v36 = vrot.slane %v1120_v16, 4  ;;  %v1566_v21 = vrot.slane %v1565_v31, 2  ;;  %v1116_v52 = vrot.slane %v1115_v25, 1  ;;  %v3191_v39 = vpack.c.bf16 %v3326_v40, %v3325_v0 }
 0x4da   : > { %v1570_v56 = vsel %vm1054_vm14, %v1512_v8, 0.0  ;;  %v1571_v11 = vsel %vm1054_vm14, %v1513_v17, 0.0  ;;  %v1524_v28 = vadd.f32 %v1523_v30, %v1522_v15  ;;  %v1551_v59 = vadd.f32 %v1550_v63, %v1549_v53  ;;  %v4989_v30 = vld [vmem:[#allocation23_spill] sm:$0xff] }
 0x4db   : > { %v1122_v27 = vadd.f32 %v1121_v36, %v1120_v16  ;;  %v1572_v51 = vadd.f32 %v1571_v11, %v1570_v56  ;;  %v1495_v48 = vpop.permute.xlu1 %1494  ;;  %v1499_v44 = vpop.permute.xlu0 %1498  ;;  %v1567_v60 = vadd.f32 %v1566_v21, %v1565_v31  ;;  %v1542_v31 = vadd.f32 %v1541_v2, %v1540_v32  ;;  %v4979_v56 = vld [vmem:[#allocation14_spill] sm:$0xff]  ;;  %v4980_v11 = vld [vmem:[#allocation13_spill] sm:$0xff] }
 0x4dc   : > { %v1514_v20 = vmul.f32 %v4462_v54, %v1495_v48  ;;  %v1515_v46 = vmul.f32 %v4468_v9, %v1499_v44  ;;  %v1142_v54 = vsel %vm4919_vm12, %v1099_v47, %v1140_v12  ;;  %v1117_v9 = vadd.f32 %v1116_v52, %v1115_v25  ;;  %v4981_v48 = vld [vmem:[#allocation16_spill] sm:$0xff]  ;;  %v4982_v44 = vld [vmem:[#allocation15_spill] sm:$0xff]  ;;  %v4983_v47 = vld [vmem:[#allocation18_spill] sm:$0xff] }
 0x4dd   : > { %v1123_v61 = vrot.slane %v1122_v27, 2  ;;  %v1573_v33 = vrot.slane %v1572_v51, 4  ;;  %v1144_v7 = vsel %vm1143_vm4, %v1108_v14, %v1142_v54  ;;  %v1568_v37 = vrot.slane %v1567_v60, 1  ;;  %v4985_v12 = vld [vmem:[#allocation20_spill] sm:$0xff]  ;;  %v4990_v2 = vld [vmem:[#allocation25_spill] sm:$0xff] }
 0x4de   : > { %v1579_v55 = vsel %vm1054_vm14, %v1514_v20, 0.0  ;;  %v1580_v23 = vsel %vm1054_vm14, %v1515_v46, 0.0  ;;  %v1146_v16 = vsel %vm1145_vm6, %v1117_v9, %v1144_v7  ;;  %v1560_v25 = vadd.f32 %v1559_v35, %v1558_v10  ;;  %v4984_v46 = vld [vmem:[#allocation17_spill] sm:$0xff]  ;;  %v4991_v54 = vld [vmem:[#allocation28_spill] sm:$0xff] }
 0x4df   : > { %v1124_v3 = vadd.f32 %v1123_v61, %v1122_v27  ;;  %v1574_v38 = vadd.f32 %v1573_v33, %v1572_v51  ;;  %v1581_v43 = vadd.f32 %v1580_v23, %v1579_v55  ;;  %v1596_v8 = vsel %vm1135_vm13, %v1533_v13, %v1524_v28  ;;  %v4993_v28 = vld [vmem:[#allocation33_spill] sm:$0xff] }
 0x4e0   : > { %v1569_v17 = vadd.f32 %v1568_v37, %v1567_v60  ;;  %v1597_v40 = vsel %vm1137_vm11, %v1542_v31, %v1596_v8  ;;  %v4977_v15 = vmov 0.0|0.0   ;;  %vm1856_vm15 = vcmp.eq.s32.totalorder %v4210_v49, %v4979_v56  ;;  %v4994_v31 = vld [vmem:[#allocation24_spill] sm:$0xff]  ;;  %v4998_v56 = vld [vmem:[#allocation31_spill] sm:$0xff] }
 0x4e1   : > { %v1125_v18 = vrot.slane %v1124_v3, 1  ;;  %v1575_v58 = vrot.slane %v1574_v38, 2  ;;  %v1582_v57 = vrot.slane %v1581_v43, 4  ;;  %v1598_v29 = vsel %vm1139_vm7, %v1551_v59, %v1597_v40  ;;  %v4996_v59 = vld [vmem:[#allocation27_spill] sm:$0xff] }
 0x4e2   : > { %v1599_v41 = vsel %vm4919_vm12, %v1560_v25, %v1598_v29  ;;  %vm1857_vm2 = vcmp.eq.s32.totalorder %v4210_v49, %v4980_v11  ;;  %vm1858_vm3 = vcmp.eq.s32.totalorder %v4210_v49, %v4981_v48  ;;  %vm1859_vm8 = vcmp.eq.s32.totalorder %v4210_v49, %v4982_v44  ;;  %v4999_v11 = vld [vmem:[#allocation32_spill] sm:$0xff] }
 0x4e3   : > { %v1126_v50 = vadd.f32 %v1125_v18, %v1124_v3  ;;  %v1576_v24 = vadd.f32 %v1575_v58, %v1574_v38  ;;  %v1583_v42 = vadd.f32 %v1582_v57, %v1581_v43  ;;  %v1913_v4 = vpop.permute.xlu1 %1912  ;;  %v1909_v6 = vpop.permute.xlu0 %1908  ;;  %v1600_v51 = vsel %vm1143_vm4, %v1569_v17, %v1599_v41  ;;  %v4986_v3 = vld [vmem:[#allocation19_spill] sm:$0xff]  ;;  %v4987_v38 = vld [vmem:[#allocation22_spill] sm:$0xff]  ;;  %v4988_v43 = vld [vmem:[#allocation21_spill] sm:$0xff] }
 0x4e4   : > { %vm1860_vm1 = vcmp.eq.s32.totalorder %v4210_v49, %v4983_v47  ;;  %vm2338_vm5 = vcmp.eq.s32.totalorder %v4210_v49, %v4984_v46  ;;  %vm2339_vm12 = vcmp.eq.s32.totalorder %v4210_v49, %v4985_v12  ;;  %v2936_v53 = vsel %vm1856_vm15, 1.0, %v4971_v62 }
 0x4e5   : > { %v1577_v45 = vrot.slane %v1576_v24, 1  ;;  %v1584_v19 = vrot.slane %v1583_v42, 2  ;;  %v1148_v1 = vsel %vm1147_vm9, %v1126_v50, %v1146_v16  ;;  %v2935_v61 = vsel %vm1855_vm10, 1.0, %v4971_v62  ;;  %v4995_v16 = vld [vmem:[#allocation26_spill] sm:$0xff] }
 0x4e6   : > { %3082 = vmatmul.mubr.msk.f32.vlgmr.msra.gmra.mrb[8].mxu0 %vm1054_vm14, %v1148_v1  ;;  %v2938_v33 = vsel %vm1858_vm3, 1.0, %v4971_v62  ;;  %v2937_v14 = vsel %vm1857_vm2, 1.0, %v4971_v62  ;;  %v2940_v10 = vsel %vm1860_vm1, 1.0, %v4971_v62  ;;  %v2939_v55 = vsel %vm1859_vm8, 1.0, %v4971_v62 }
 0x4e7   : > { %v1585_v22 = vadd.f32 %v1584_v19, %v1583_v42  ;;  %3192 = vmatpush3.bf16.msra.mxu0 %v3191_v39  ;;  %v1924_v5 = vpop.permute.xlu1 %1923  ;;  %v1920_v26 = vpop.permute.xlu0 %1919  ;;  %3119 = vmatprep.mubr.msk.f32.mxu0 %vm3459_vm0, %v4971_v62  ;;  %v1578_v0 = vadd.f32 %v1577_v45, %v1576_v24  ;;  %vm2340_vm10 = vcmp.eq.s32.totalorder %v4210_v49, %v4986_v3  ;;  %v2953_v9 = vsel %vm2339_vm12, 1.0, %v4971_v62  ;;  %v4992_v39 = vld [vmem:[#allocation30_spill] sm:$0xff]  ;;  %v4997_v45 = vld [vmem:[#allocation29_spill] sm:$0xff] }
 0x4e8   : > { %3193 = vmatprep.subr.bf16.mxu0 %v4977_v15  ;;  %vm2341_vm15 = vcmp.eq.s32.totalorder %v4210_v49, %v4987_v38  ;;  %vm1862_vm3 = vcmp.eq.s32.totalorder %v4210_v49, %v4988_v43  ;;  %vm2343_vm2 = vcmp.eq.s32.totalorder %v4210_v49, %v4989_v30  ;;  %vm1864_vm1 = vcmp.eq.s32.totalorder %v4210_v49, %v4990_v2 }
 0x4e9   : > { %v1586_v36 = vrot.slane %v1585_v22, 1  ;;  %v1601_v52 = vsel %vm1145_vm6, %v1578_v0, %v1600_v51  ;;  %vm2345_vm8 = vcmp.eq.s32.totalorder %v4210_v49, %v4991_v54  ;;  %v2952_v63 = vsel %vm2338_vm5, 1.0, %v4971_v62  ;;  %v5001_v51 = vld [vmem:[#allocation35_spill] sm:$0xff] }
 0x4ea   : > { %v1992_v18 = vmul.f32 %v2936_v53, %v1913_v4  ;;  %v1991_v58 = vmul.f32 %v2935_v61, %v1909_v6  ;;  %v1994_v57 = vmul.f32 %v2938_v33, %v1924_v5  ;;  %v1993_v13 = vmul.f32 %v2937_v14, %v1920_v26 }
 0x4eb   : > { %v1587_v32 = vadd.f32 %v1586_v36, %v1585_v22  ;;  %v1935_v21 = vpop.permute.xlu1 %1934  ;;  %v1931_v27 = vpop.permute.xlu0 %1930  ;;  %v2955_v35 = vsel %vm2341_vm15, 1.0, %v4971_v62  ;;  %v2954_v37 = vsel %vm2340_vm10, 1.0, %v4971_v62  ;;  %v2942_v24 = vsel %vm1862_vm3, 1.0, %v4971_v62 }
 0x4ec   : > { %v2957_v42 = vsel %vm2343_vm2, 1.0, %v4971_v62  ;;  %vm1866_vm12 = vcmp.eq.s32.totalorder %v4210_v49, %v4992_v39  ;;  %vm2347_vm5 = vcmp.eq.s32.totalorder %v4210_v49, %v4993_v28  ;;  %v2944_v4 = vsel %vm1864_vm1, 1.0, %v4971_v62 }
 0x4ed   : > { %v1602_v20 = vsel %vm1147_vm9, %v1587_v32, %v1601_v52  ;;  %v4601_v6 = vsel %vm2345_vm8, 1.0, %v4971_v62  ;;  %vm1861_vm10 = vcmp.eq.s32.totalorder %v4210_v49, %v4994_v31  ;;  %vm2342_vm15 = vcmp.eq.s32.totalorder %v4210_v49, %v4995_v16  ;;  %v5003_v31 = vld [vmem:[#allocation41_spill] sm:$0xff] }
 0x4ee   : > { %3101 = vmatmul.mubr.msk.f32.vlgmr.msra.gmra.mrb[2].mxu1 %vm1054_vm14, %v1602_v20  ;;  %vm1863_vm3 = vcmp.eq.s32.totalorder %v4210_v49, %v4996_v59  ;;  %vm2344_vm2 = vcmp.eq.s32.totalorder %v4210_v49, %v4997_v45  ;;  %v2008_v19 = vsel %vm1054_vm14, %v1992_v18, 0.0  ;;  %v2007_v1 = vsel %vm1054_vm14, %v1991_v58, 0.0  ;;  %v5005_v45 = vld [vmem:[#allocation43_spill] sm:$0xff] }
 0x4ef   : > { %v2396_v23 = vpop.permute.xlu1 %2395  ;;  %v2392_v60 = vpop.permute.xlu0 %2391  ;;  %3138 = vmatprep.mubr.msk.f32.mxu1 %vm3459_vm0, %v4971_v62  ;;  %v2017_v25 = vsel %vm1054_vm14, %v1994_v57, 0.0  ;;  %v2016_v8 = vsel %vm1054_vm14, %v1993_v13, 0.0  ;;  %v1996_v17 = vmul.f32 %v2940_v10, %v1935_v21  ;;  %v1995_v22 = vmul.f32 %v2939_v55, %v1931_v27  ;;  %v5000_v27 = vld [vmem:[#allocation34_spill] sm:$0xff]  ;;  %v5002_v55 = vld [vmem:[#allocation36_spill] sm:$0xff] }
 0x4f0   : > { %v4619_v40 = vsel %vm1866_vm12, 1.0, %v4971_v62  ;;  %v4625_v0 = vsel %vm2347_vm5, 1.0, %v4971_v62  ;;  %v2941_v29 = vsel %vm1861_vm10, 1.0, %v4971_v62  ;;  %v2956_v36 = vsel %vm2342_vm15, 1.0, %v4971_v62 }
 0x4f1   : > { %v2943_v34 = vsel %vm1863_vm3, 1.0, %v4971_v62  ;;  %v2958_v41 = vsel %vm2344_vm2, 1.0, %v4971_v62  ;;  %vm1865_vm1 = vcmp.eq.s32.totalorder %v4210_v49, %v4998_v56  ;;  %vm2346_vm8 = vcmp.eq.s32.totalorder %v4210_v49, %v4999_v11 }
 0x4f2   : > { %v2009_v32 = vadd.f32 %v2008_v19, %v2007_v1  ;;  %v2018_v21 = vadd.f32 %v2017_v25, %v2016_v8  ;;  %vm1867_vm12 = vcmp.eq.s32.totalorder %v4210_v49, %v5000_v27  ;;  %vm2348_vm5 = vcmp.eq.s32.totalorder %v4210_v49, %v5001_v51  ;;  %v5007_v19 = vld [vmem:[#allocation38_spill] sm:$0xff] }
 0x4f3   : > { %v2407_v7 = vpop.permute.xlu1 %2406  ;;  %v2403_v50 = vpop.permute.xlu0 %2402  ;;  %v2475_v48 = vmul.f32 %v2953_v9, %v2396_v23  ;;  %v2474_v44 = vmul.f32 %v2952_v63, %v2392_v60  ;;  %v2026_v47 = vsel %vm1054_vm14, %v1996_v17, 0.0  ;;  %v2025_v52 = vsel %vm1054_vm14, %v1995_v22, 0.0 }
 0x4f4   : > { %v2477_v20 = vmul.f32 %v2955_v35, %v2407_v7  ;;  %v2476_v46 = vmul.f32 %v2954_v37, %v2403_v50  ;;  %v4645_v14 = vsel %vm1865_vm1, 1.0, %v4971_v62  ;;  %v4651_v10 = vsel %vm2346_vm8, 1.0, %v4971_v62 }
 0x4f5   : > { %vm1868_vm10 = vcmp.eq.s32.totalorder %v4210_v49, %v5002_v55  ;;  %v2010_v23 = vrot.slane %v2009_v32, 4  ;;  %v2019_v60 = vrot.slane %v2018_v21, 4  ;;  %v4659_v3 = vsel %vm1867_vm12, 1.0, %v4971_v62 }
 0x4f6   : > { %v2027_v38 = vadd.f32 %v2026_v47, %v2025_v52  ;;  %v2491_v43 = vsel %vm1054_vm14, %v2475_v48, 0.0  ;;  %v2490_v30 = vsel %vm1054_vm14, %v2474_v44, 0.0  ;;  %v4667_v2 = vsel %vm2348_vm5, 1.0, %v4971_v62 }
 0x4f7   : > { %v1946_v5 = vpop.permute.xlu1 %1945  ;;  %v1942_v26 = vpop.permute.xlu0 %1941  ;;  %v2500_v54 = vsel %vm1054_vm14, %v2477_v20, 0.0  ;;  %v2499_v9 = vsel %vm1054_vm14, %v2476_v46, 0.0  ;;  %v2011_v50 = vadd.f32 %v2010_v23, %v2009_v32  ;;  %v2492_v39 = vadd.f32 %v2491_v43, %v2490_v30  ;;  %v5009_v30 = vld [vmem:[#allocation40_spill] sm:$0xff] }
 0x4f8   : > { %v1998_v63 = vmul.f32 %v2942_v24, %v1946_v5  ;;  %v1997_v18 = vmul.f32 %v2941_v29, %v1942_v26  ;;  %v4677_v28 = vsel %vm1868_vm10, 1.0, %v4971_v62  ;;  %vm1870_vm15 = vcmp.eq.s32.totalorder %v4210_v49, %v5003_v31  ;;  %v5004_v24 = vld [vmem:[#allocation42_spill] sm:$0xff]  ;;  %v5008_v29 = vld [vmem:[#allocation39_spill] sm:$0xff] }
 0x4f9   : > { %vm2351_vm3 = vcmp.eq.s32.totalorder %v4210_v49, %v5004_v24  ;;  %v2028_v16 = vrot.slane %v2027_v38, 4  ;;  %v2501_v59 = vadd.f32 %v2500_v54, %v2499_v9  ;;  %vm2353_vm2 = vcmp.eq.s32.totalorder %v4210_v49, %v5005_v45 }
 0x4fa   : > { %vm1869_vm8 = vcmp.eq.s32.totalorder %v4210_v49, %v5007_v19  ;;  %v2035_v17 = vsel %vm1054_vm14, %v1998_v63, 0.0  ;;  %v2034_v22 = vsel %vm1054_vm14, %v1997_v18, 0.0  ;;  %vm2350_vm12 = vcmp.eq.s32.totalorder %v4210_v49, %v5008_v29 }
 0x4fb   : > { %v2418_v12 = vpop.permute.xlu1 %2417  ;;  %v2414_v53 = vpop.permute.xlu0 %2413  ;;  %v2493_v56 = vrot.slane %v2492_v39, 4  ;;  %v2029_v11 = vadd.f32 %v2028_v16, %v2027_v38  ;;  %v2502_v32 = vrot.slane %v2501_v59, 4  ;;  %v2036_v51 = vadd.f32 %v2035_v17, %v2034_v22 }
 0x4fc   : > { %v2479_v61 = vmul.f32 %v2957_v42, %v2418_v12  ;;  %v2478_v33 = vmul.f32 %v2956_v36, %v2414_v53  ;;  %v2020_v42 = vadd.f32 %v2019_v60, %v2018_v21  ;;  %v2012_v36 = vrot.slane %v2011_v50, 2 }
 0x4fd   : > { %v4700_v20 = vsel %vm1870_vm15, 1.0, %v4971_v62  ;;  %v4722_v12 = vsel %vm2353_vm2, 1.0, %v4971_v62  ;;  %v4728_v55 = vsel %vm2350_vm12, 1.0, %v4971_v62  ;;  %v2030_v23 = vrot.slane %v2029_v11, 2 }
 0x4fe   : > { %v2509_v13 = vsel %vm1054_vm14, %v2479_v61, 0.0  ;;  %v2508_v35 = vsel %vm1054_vm14, %v2478_v33, 0.0  ;;  %v2013_v53 = vadd.f32 %v2012_v36, %v2011_v50  ;;  %v2494_v33 = vadd.f32 %v2493_v56, %v2492_v39 }
 0x4ff   : > { %v1957_v58 = vpop.permute.xlu1 %1956  ;;  %v1953_v57 = vpop.permute.xlu0 %1952  ;;  %v2510_v1 = vadd.f32 %v2509_v13, %v2508_v35  ;;  %v2503_v60 = vadd.f32 %v2502_v32, %v2501_v59  ;;  %vm2352_vm5 = vcmp.eq.s32.totalorder %v4210_v49, %v5009_v30  ;;  %v2037_v54 = vrot.slane %v2036_v51, 4 }
 0x500   : > { %v2000_v7 = vmul.f32 %v2944_v4, %v1957_v58  ;;  %v1999_v37 = vmul.f32 %v2943_v34, %v1953_v57  ;;  %v5006_v4 = vld [vmem:[#allocation37_spill] sm:$0xff]  ;;  %v2021_v34 = vrot.slane %v2020_v42, 2  ;;  %v2031_v31 = vadd.f32 %v2030_v23, %v2029_v11 }
 0x501   : > { %vm2349_vm1 = vcmp.eq.s32.totalorder %v4210_v49, %v5006_v4  ;;  %v2511_v48 = vrot.slane %v2510_v1, 4  ;;  %v2504_v24 = vrot.slane %v2503_v60, 2  ;;  %v2038_v45 = vadd.f32 %v2037_v54, %v2036_v51 }
 0x502   : > { %v2044_v5 = vsel %vm1054_vm14, %v2000_v7, 0.0  ;;  %v2043_v26 = vsel %vm1054_vm14, %v1999_v37, 0.0  ;;  %v2963_v46 = vsel %vm2349_vm1, 1.0, %v4971_v62  ;;  %v2022_v61 = vadd.f32 %v2021_v34, %v2020_v42 }
 0x503   : > { %v2429_v25 = vpop.permute.xlu1 %2428  ;;  %v2425_v8 = vpop.permute.xlu0 %2424  ;;  %v2045_v44 = vadd.f32 %v2044_v5, %v2043_v26  ;;  %v2512_v9 = vadd.f32 %v2511_v48, %v2510_v1  ;;  %v2014_v37 = vrot.slane %v2013_v53, 1  ;;  %v2495_v42 = vrot.slane %v2494_v33, 2 }
 0x504   : > { %v2481_v21 = vmul.f32 %v4601_v6, %v2429_v25  ;;  %v2480_v27 = vmul.f32 %v2958_v41, %v2425_v8  ;;  %v4710_v6 = vsel %vm1869_vm8, 1.0, %v4971_v62  ;;  %v4716_v41 = vsel %vm2351_vm3, 1.0, %v4971_v62 }
 0x505   : > { %v2046_v63 = vrot.slane %v2045_v44, 4  ;;  %v2023_v50 = vrot.slane %v2022_v61, 1  ;;  %v2513_v4 = vrot.slane %v2512_v9, 2  ;;  %v2496_v22 = vadd.f32 %v2495_v42, %v2494_v33 }
 0x506   : > { %v2518_v38 = vsel %vm1054_vm14, %v2481_v21, 0.0  ;;  %v2517_v43 = vsel %vm1054_vm14, %v2480_v27, 0.0  ;;  %v4748_v26 = vsel %vm2352_vm5, 1.0, %v4971_v62  ;;  %v2505_v29 = vadd.f32 %v2504_v24, %v2503_v60 }
 0x507   : > { %v1964_v47 = vpop.permute.xlu1 %1963  ;;  %v1968_v52 = vpop.permute.xlu0 %1967  ;;  %v2519_v39 = vadd.f32 %v2518_v38, %v2517_v43  ;;  %v2047_v19 = vadd.f32 %v2046_v63, %v2045_v44  ;;  %v2024_v17 = vadd.f32 %v2023_v50, %v2022_v61  ;;  %v2015_v11 = vadd.f32 %v2014_v37, %v2013_v53 }
 0x508   : > { %v2001_v57 = vmul.f32 %v4645_v14, %v1964_v47  ;;  %v2002_v13 = vmul.f32 %v4619_v40, %v1968_v52  ;;  %v2032_v32 = vrot.slane %v2031_v31, 1  ;;  %v2514_v51 = vadd.f32 %v2513_v4, %v2512_v9 }
 0x509   : > { %v2520_v5 = vrot.slane %v2519_v39, 4  ;;  %v2048_v48 = vrot.slane %v2047_v19, 2  ;;  %v4754_v49 = vsel %vm1135_vm13, %v2024_v17, %v2015_v11  ;;  %v2497_v52 = vrot.slane %v2496_v22, 1 }
 0x50a   : > { %v2506_v23 = vrot.slane %v2505_v29, 1  ;;  %v4758_v43 = vadd.f32 %v2032_v32, %v2031_v31 }
 0x50b   : > { %v2436_v18 = vpop.permute.xlu1 %2435  ;;  %v2440_v58 = vpop.permute.xlu0 %2439  ;;  %v2521_v61 = vadd.f32 %v2520_v5, %v2519_v39 }
 0x50c   : > { %v2482_v35 = vmul.f32 %v4651_v10, %v2436_v18  ;;  %v2483_v7 = vmul.f32 %v4625_v0, %v2440_v58  ;;  %v2052_v10 = vsel %vm1054_vm14, %v2001_v57, 0.0  ;;  %v2053_v0 = vsel %vm1054_vm14, %v2002_v13, 0.0 }
 0x50d   : > { %v2054_v21 = vadd.f32 %v2053_v0, %v2052_v10  ;;  %v2049_v18 = vadd.f32 %v2048_v48, %v2047_v19  ;;  %v2498_v13 = vadd.f32 %v2497_v52, %v2496_v22  ;;  %v2507_v50 = vadd.f32 %v2506_v23, %v2505_v29 }
 0x50e   : > { %v2526_v16 = vsel %vm1054_vm14, %v2482_v35, 0.0  ;;  %v2527_v59 = vsel %vm1054_vm14, %v2483_v7, 0.0  ;;  %v2522_v35 = vrot.slane %v2521_v61, 2 }
 0x50f   : > { %v2528_v14 = vadd.f32 %v2527_v59, %v2526_v16  ;;  %v1975_v1 = vpop.permute.xlu1 %1974  ;;  %v1979_v40 = vpop.permute.xlu0 %1978  ;;  %v2055_v54 = vrot.slane %v2054_v21, 4 }
 0x510   : > { %v2003_v25 = vmul.f32 %v4659_v3, %v1975_v1  ;;  %v2004_v8 = vmul.f32 %v4677_v28, %v1979_v40  ;;  %v2039_v3 = vrot.slane %v2038_v45, 2  ;;  %v2523_v40 = vadd.f32 %v2522_v35, %v2521_v61 }
 0x511   : > { %v2529_v36 = vrot.slane %v2528_v14, 4  ;;  %v2056_v16 = vadd.f32 %v2055_v54, %v2054_v21 }
 0x512   : > { %v2061_v34 = vsel %vm1054_vm14, %v2003_v25, 0.0  ;;  %v2062_v56 = vsel %vm1054_vm14, %v2004_v8, 0.0  ;;  %v2040_v30 = vadd.f32 %v2039_v3, %v2038_v45  ;;  %v2570_v8 = vsel %vm1135_vm13, %v2507_v50, %v2498_v13 }
 0x513   : > { %v2447_v28 = vpop.permute.xlu1 %2446  ;;  %v2451_v27 = vpop.permute.xlu0 %2450  ;;  %v2063_v33 = vadd.f32 %v2062_v56, %v2061_v34  ;;  %v2530_v60 = vadd.f32 %v2529_v36, %v2528_v14  ;;  %v2057_v29 = vrot.slane %v2056_v16, 2  ;;  %vm5010_vm13 = vcmask 1044484  }
 0x514   : > { %v2484_v44 = vmul.f32 %v4667_v2, %v2447_v28  ;;  %v2485_v47 = vmul.f32 %v2963_v46, %v2451_v27  ;;  %v2515_v46 = vrot.slane %v2514_v51, 1  ;;  %v2041_v24 = vrot.slane %v2040_v30, 1  ;;  %vm5011_vm10 = vmmov %vm5010_vm13 }
 0x515   : > { %v2064_v7 = vrot.slane %v2063_v33, 4  ;;  %v2531_v42 = vrot.slane %v2530_v60, 2  ;;  %v2524_v27 = vrot.slane %v2523_v40, 1 }
 0x516   : > { %v2535_v53 = vsel %vm1054_vm14, %v2484_v44, 0.0  ;;  %v2536_v38 = vsel %vm1054_vm14, %v2485_v47, 0.0  ;;  %v2516_v14 = vadd.f32 %v2515_v46, %v2514_v51 }
 0x517   : > { %v2537_v9 = vadd.f32 %v2536_v38, %v2535_v53  ;;  %v1986_v63 = vpop.permute.xlu1 %1985  ;;  %v1990_v2 = vpop.permute.xlu0 %1989  ;;  %v2065_v10 = vadd.f32 %v2064_v7, %v2063_v33  ;;  %v2532_v17 = vadd.f32 %v2531_v42, %v2530_v60  ;;  %v2058_v33 = vadd.f32 %v2057_v29, %v2056_v16 }
 0x518   : > { %v2005_v58 = vmul.f32 %v4710_v6, %v1986_v63  ;;  %v2006_v57 = vmul.f32 %v4700_v20, %v1990_v2  ;;  %v2050_v6 = vrot.slane %v2049_v18, 1  ;;  %v2525_v63 = vadd.f32 %v2524_v27, %v2523_v40 }
 0x519   : > { %v2538_v37 = vrot.slane %v2537_v9, 4  ;;  %v2066_v51 = vrot.slane %v2065_v10, 2  ;;  %v2533_v44 = vrot.slane %v2532_v17, 1  ;;  %v2059_v7 = vrot.slane %v2058_v33, 1 }
 0x51a   : > { %v2070_v39 = vsel %vm1054_vm14, %v2005_v58, 0.0  ;;  %v2071_v31 = vsel %vm1054_vm14, %v2006_v57, 0.0  ;;  %v4774_v28 = vadd.f32 %v2050_v6, %v2049_v18 }
 0x51b   : > { %v2539_v59 = vadd.f32 %v2538_v37, %v2537_v9  ;;  %v2072_v45 = vadd.f32 %v2071_v31, %v2070_v39  ;;  %v2458_v4 = vpop.permute.xlu1 %2457  ;;  %v2462_v19 = vpop.permute.xlu0 %2461  ;;  %v2067_v2 = vadd.f32 %v2066_v51, %v2065_v10  ;;  %v2534_v58 = vadd.f32 %v2533_v44, %v2532_v17 }
 0x51c   : > { %v2486_v20 = vmul.f32 %v4728_v55, %v2458_v4  ;;  %v2487_v1 = vmul.f32 %v4716_v41, %v2462_v19  ;;  %v4769_v55 = vadd.f32 %v2041_v24, %v2040_v30  ;;  %v2571_v41 = vsel %vm1137_vm11, %v2516_v14, %v2570_v8 }
 0x51d   : > { %v2540_v0 = vrot.slane %v2539_v59, 2  ;;  %v2073_v25 = vrot.slane %v2072_v45, 4  ;;  %v2572_v4 = vsel %vm1139_vm7, %v2525_v63, %v2571_v41  ;;  %v2068_v19 = vrot.slane %v2067_v2, 1 }
 0x51e   : > { %v2544_v22 = vsel %vm1054_vm14, %v2486_v20, 0.0  ;;  %v2545_v5 = vsel %vm1054_vm14, %v2487_v1, 0.0  ;;  %v2573_v10 = vsel %vm5010_vm13, %v2534_v58, %v2572_v4 }
 0x51f   : > { %v2541_v36 = vadd.f32 %v2540_v0, %v2539_v59  ;;  %v2074_v34 = vadd.f32 %v2073_v25, %v2072_v45  ;;  %v2546_v56 = vadd.f32 %v2545_v5, %v2544_v22  ;;  %v2473_v11 = vpop.permute.xlu1 %2472  ;;  %v2469_v32 = vpop.permute.xlu0 %2468  ;;  %v2060_v0 = vadd.f32 %v2059_v7, %v2058_v33  ;;  %v2969_v7 = vld [vmem:[%s4884_s8] ss:$0 sm:$0xff] }
 0x520   : > { %v2489_v3 = vmul.f32 %v4722_v12, %v2473_v11  ;;  %v2488_v21 = vmul.f32 %v4748_v26, %v2469_v32  ;;  %v2088_v11 = vsel %vm1137_vm11, %v4758_v43, %v4754_v49  ;;  %v2069_v32 = vadd.f32 %v2068_v19, %v2067_v2 }
 0x521   : > { %v2547_v48 = vrot.slane %v2546_v56, 4  ;;  %v2075_v47 = vrot.slane %v2074_v34, 2  ;;  %v2542_v23 = vrot.slane %v2541_v36, 1  ;;  %vm5012_vm11 = vcmask 64512  }
 0x522   : > { %v2554_v52 = vsel %vm1054_vm14, %v2489_v3, 0.0  ;;  %v2553_v61 = vsel %vm1054_vm14, %v2488_v21, 0.0  ;;  %v2089_v21 = vsel %vm1139_vm7, %v4769_v55, %v2088_v11  ;;  %vm2677_vm7 = vcmask 261312  }
 0x523   : > { %v2548_v60 = vadd.f32 %v2547_v48, %v2546_v56  ;;  %v2555_v53 = vadd.f32 %v2554_v52, %v2553_v61  ;;  %v3334_v38 = vpop.permute.xlu1 %3333  ;;  %v3329_v30 = vpop.permute.xlu0 %3328  ;;  %v2076_v57 = vadd.f32 %v2075_v47, %v2074_v34  ;;  %v2543_v37 = vadd.f32 %v2542_v23, %v2541_v36 }
 0x524   : > { %v3336_v12 = vunpack.i.h.bf16 %v3334_v38  ;;  %v3335_v54 = vunpack.i.l.bf16 %v3334_v38  ;;  %v3331_v26 = vunpack.i.h.bf16 %v3329_v30  ;;  %v3330_v9 = vunpack.i.l.bf16 %v3329_v30 }
 0x525   : > { %v2549_v46 = vrot.slane %v2548_v60, 2  ;;  %v2556_v18 = vrot.slane %v2555_v53, 4  ;;  %v2077_v20 = vrot.slane %v2076_v57, 1  ;;  %v2574_v5 = vsel %vm1143_vm4, %v2543_v37, %v2573_v10 }
 0x526   : > { %v3194_v13 = vpack.c.bf16 %v3336_v12, %v3335_v54  ;;  %v3203_v35 = vpack.c.bf16 %v3331_v26, %v3330_v9  ;;  %v2090_v52 = vsel %vm5011_vm10, %v4774_v28, %v2089_v21  ;;  %v2680_v12 = vld [vmem:[%s4883_s7] sm:$0xff]  ;;  %v2681_v54 = vld [vmem:[%s4883_s7 + $0x8] sm:$0xff]  ;;  %v2683_v9 = vld [vmem:[%s4883_s7 + $0x18] sm:$0xff] }
 0x527   : > { %v2550_v50 = vadd.f32 %v2549_v46, %v2548_v60  ;;  %v2557_v42 = vadd.f32 %v2556_v18, %v2555_v53  ;;  %v3344_v39 = vpop.permute.xlu1 %3343  ;;  %v3339_v31 = vpop.permute.xlu0 %3338  ;;  %v2078_v27 = vadd.f32 %v2077_v20, %v2076_v57  ;;  %v2091_v61 = vsel %vm1143_vm4, %v2060_v0, %v2090_v52 }
 0x528   : > { %v3346_v24 = vunpack.i.h.bf16 %v3344_v39  ;;  %v3345_v16 = vunpack.i.l.bf16 %v3344_v39  ;;  %v3341_v59 = vunpack.i.h.bf16 %v3339_v31  ;;  %v3340_v45 = vunpack.i.l.bf16 %v3339_v31  ;;  %3195 = vmatpush3.bf16.msra.mxu0 %v3194_v13  ;;  %3204 = vmatpush3.bf16.msra.mxu1 %v3203_v35 }
 0x529   : > { %v2551_v14 = vrot.slane %v2550_v50, 1  ;;  %v2558_v6 = vrot.slane %v2557_v42, 2  ;;  %3196 = vmatprep.subr.bf16.mxu0 %v4977_v15  ;;  %3205 = vmatprep.subr.bf16.mxu1 %v4977_v15  ;;  %v2092_v33 = vsel %vm1145_vm6, %v2069_v32, %v2091_v61  ;;  %v3215_v26 = vpack.c.bf16 %v2681_v54, %v2680_v12 }
 0x52a   : > { %v3197_v1 = vpack.c.bf16 %v3346_v24, %v3345_v16  ;;  %v3206_v40 = vpack.c.bf16 %v3341_v59, %v3340_v45  ;;  %v2093_v60 = vsel %vm1147_vm9, %v2078_v27, %v2092_v33  ;;  %vm5013_vm4 = vcmask 261120  }
 0x52b   : > { %v2552_v25 = vadd.f32 %v2551_v14, %v2550_v50  ;;  %v2559_v8 = vadd.f32 %v2558_v6, %v2557_v42  ;;  %v3354_v17 = vpop.permute.xlu1 %3353  ;;  %v3349_v22 = vpop.permute.xlu0 %3348 }
 0x52c   : > { %v3356_v29 = vunpack.i.h.bf16 %v3354_v17  ;;  %v3355_v36 = vunpack.i.l.bf16 %v3354_v17  ;;  %v3351_v34 = vunpack.i.h.bf16 %v3349_v22  ;;  %v3350_v56 = vunpack.i.l.bf16 %v3349_v22  ;;  %3198 = vmatpush3.bf16.msra.mxu0 %v3197_v1  ;;  %3207 = vmatpush3.bf16.msra.mxu1 %v3206_v40 }
 0x52d   : > { %v2560_v41 = vrot.slane %v2559_v8, 1  ;;  %3199 = vmatprep.subr.bf16.mxu0 %v4977_v15  ;;  %3208 = vmatprep.subr.bf16.mxu1 %v4977_v15  ;;  %v2575_v3 = vsel %vm1145_vm6, %v2552_v25, %v2574_v5  ;;  %vm5014_vm6 = vmmov %vm5013_vm4 }
 0x52e   : > { %v3200_v51 = vpack.c.bf16 %v3356_v29, %v3355_v36  ;;  %v3209_v48 = vpack.c.bf16 %v3351_v34, %v3350_v56 }
 0x52f   : > { %v2561_v44 = vadd.f32 %v2560_v41, %v2559_v8  ;;  %v3359_v47 = vpop.permute.xlu0 %3358 }
 0x530   : > { %v3361_v49 = vunpack.i.h.bf16 %v3359_v47  ;;  %v3360_v43 = vunpack.i.l.bf16 %v3359_v47  ;;  %3201 = vmatpush3.bf16.msra.mxu0 %v3200_v51  ;;  %3210 = vmatpush3.bf16.msra.mxu1 %v3209_v48 }
 0x531   : > { %3211 = vmatprep.subr.bf16.mxu1 %v4977_v15  ;;  %v2576_v55 = vsel %vm1147_vm9, %v2561_v44, %v2575_v3  ;;  %3214 = vmatprep.subr.bf16.mxu0 %v4977_v15 }
 0x532   : > { %v3212_v23 = vpack.c.bf16 %v3361_v49, %v3360_v43 }
 0x533   : > { %3120 = vmatmul.mubr.msk.f32.vlgmr.msra.gmra.mrb[10].mxu0 %vm1054_vm14, %v2093_v60 }
 0x534   : > { %3213 = vmatpush3.bf16.msra.mxu1 %v3212_v23  ;;  %3149 = vmatprep.mubr.msk.f32.mxu0 %vm3459_vm0, %v4971_v62  ;;  %v2682_v62 = vld [vmem:[%s4883_s7 + $0x10] sm:$0xff]  ;;  %vm1711_vm0 = vcmask 130112  }
 0x535   : > { %3216 = vmatpush3.bf16.msra.mxu0 %v3215_v26  ;;  %v3218_v63 = vpack.c.bf16 %v2683_v9, %v2682_v62 }
 0x536   : > { %3217 = vmatprep.subr.bf16.mxu0 %v4977_v15 }
 0x537   : > { %3139 = vmatmul.mubr.msk.f32.vlgmr.msra.gmra.mrb[4].mxu1 %vm1054_vm14, %v2576_v55  ;;  %vm2194_vm14 = vcmask 195712  }
 0x539   : > { %3219 = vmatpush3.bf16.msra.mxu0 %v3218_v63 }
 0x5b9   : > { %v1217_v28 = vpop.f32.mrb[8].mxu0 }
 0x5ba   : > { %1221 = vst.msk [vmem:[#allocation3] sm:$0xff] %vm5012_vm11, %v1217_v28  ;;  %v3083_v53 = vpop.f32.mrb[9].mxu0 }
 0x5c1   : > { %v1703_v38 = vpop.f32.mrb[2].mxu1 }
 0x5c2   : > { %1708 = vrot.lane.b32.xlu1 %v1703_v38, %s3477_s16  ;;  %v3102_v30 = vpop.f32.mrb[3].mxu1 }
 0x606   : > { %v2186_v2 = vpop.f32.mrb[10].mxu0 }
 0x607   : > { %2191 = vrot.lane.b32.xlu0 %v2186_v2, %s3465_s24  ;;  %v3121_v46 = vpop.f32.mrb[11].mxu0  ;;  %s379_s24 = sand.u32 1, %s3440_s10  }
 0x608   : > { %s2883_s16 = sshll.u32 %s379_s24, 3 }
 0x609   : > { %s381_s27 = scalar_lea.vmem [#allocation4], %s2883_s16  ;;  %s3382_s16 = sshll.u32 %s3479_s12, 4  ;;  %s3383_s16 = int_to_ptr.vmem [resolvable:$false] %s3382_s16 }
 0x60a   : > { %v2669_v18 = vpop.f32.mrb[4].mxu1  ;;  %s2780_s29 = sshll.u32 %s381_s27, 4  ;;  %s3384_s23 = scalar_lea.vmem %s3383_s16, 256  ;;  %s4830_s29 = int_to_ptr.vmem [resolvable:$true] %s2780_s29 }
 0x60b   : > { %2674 = vrot.lane.b32.xlu1 %v2669_v18, %s3478_s15  ;;  %v3140_v58 = vpop.f32.mrb[5].mxu1  ;;  %s2766_s15 = scalar_lea.sflag [#allocation5], %s379_s24  ;;  %s3378_s20 = scalar_lea.vmem %s4830_s29, 128 }
 0x60c   : > { %p3379_p12 = scmp.ne.s32.totalorder %s4830_s29, %s3378_s20  ;;  %p3385_p1 = scmp.lt.s32.totalorder %s4830_s29, %s3383_s16 }
 0x60d   : > { %p3386_p2 = scmp.lt.s32.totalorder %s3384_s23, %s3378_s20 }
 0x60e   : > { %p3380_p13 = pnand %p3379_p12, %p3570_p4 }
 0x60f   : > { %p3387_p3 = por %p3386_p2, %p3385_p1 }
 0x610   : > { %p3381_p0 = pneg %p3380_p13 }
 0x612   : > { %p3388_p5 = pnand %p3387_p3, %p3381_p0 }
 0x634   : > { %v1709_v57 = vpop.permute.xlu1 %1708 }
 0x635   : > { %1712 = vst.msk [vmem:[#allocation3] sm:$0xff] %vm1711_vm0, %v1709_v57 }
 0x679   : > { %v2192_v13 = vpop.permute.xlu0 %2191 }
 0x67a   : > { %2195 = vst.msk [vmem:[#allocation3] sm:$0xff] %vm2194_vm14, %v2192_v13 }
 0x67d   : > { %v2675_v35 = vpop.permute.xlu1 %2674 }
 0x67e   : > { %2678 = vst.msk [vmem:[#allocation3] sm:$0xff] %vm2677_vm7, %v2675_v35 }
 0x685   : > { %v2679_v15 = vld [vmem:[#allocation3] sm:$0xff] }
 0x686   : > { %3150 = vmatmul.mubr.msk.f32.vlgmr.msra.gmra.mrb[12].mxu0 %vm5013_vm4, %v2679_v15 }
 0x759   : > { %v2760_v37 = vpop.f32.mrb[12].mxu0 }
 0x75a   : > { %v2761_v50 = vadd.f32 %v2969_v7, %v2760_v37  ;;  %v3151_v42 = vpop.f32.mrb[13].mxu0 }
 0x75c   : > { %2764 = vst.msk [vmem:[%s381_s27] sm:$0xff] %vm5014_vm6, %v2761_v50 }
 0x75d   : > { %3391 = shalt.err (!%p3388_p5)
}
 0x75e   : > { %s3392_s24 = scalar_lea.hbm %s4828_s28, 128  ;;  %s3396_s18 = scalar_lea.hbm %s4885_s9, 256 }
 0x75f   : > { %p3393_p6 = scmp.ne.s32.totalorder %s4828_s28, %s3392_s24  ;;  %p3397_p10 = scmp.lt.u32.totalorder %s4828_s28, %s4885_s9 }
 0x760   : > { %p3398_p11 = scmp.lt.u32.totalorder %s3396_s18, %s3392_s24  ;;  %p3400_p13 = scmp.lt.u32.totalorder %s3392_s24, %s4828_s28 }
 0x761   : > { %p3394_p7 = pnand %p3393_p6, %p3570_p4 }
 0x762   : > { %p3399_p12 = por %p3398_p11, %p3397_p10 }
 0x763   : > { %p3395_p9 = pneg %p3394_p7 }
 0x764   : > { %p3401_p0 = por %p3400_p13, %p3399_p12 }
 0x766   : > { %p3402_p1 = pnand %p3401_p0, %p3395_p9 }
 0x768   : > { %3405 = shalt.err (!%p3402_p1)
}
 0x769   : > { %3224 = dma.vmem_to_hbm [thread:$0]  (%p3570_p4), %s4830_s29, 128, %s4828_s28, %s2766_s15  }
 0x76a PF: > { %p3230_p2 = scmp.ge.s32.totalorder %s3456_s14, 2  ;;  %s2792_s20 = sand.u32 1, %s3436_s30  }
 0x76b   : > { %s2793_s16 = scalar_lea.sflag [#allocation5], %s2792_s20 }
 0x76c   : > { %p3227_p3 = pnand %p3230_p2, %p3577_p8 }
 0x76e   : > { %3431 = dma.done.wait (!%p3227_p3), %s2793_s16, 128  }
 0x76f   : > { %3433 = vsyncadd (!%p3227_p3), %s2793_s16, 4294967168  ;;  %s22_s14 = sadd.s32 1, %s3456_s14   ;;  %s5015_s30 = smov %s3440_s10 }
 0x770   : > { %p19_p5 = scmp.ge.s32.totalorder %s22_s14, 4   ;;  %s5016_s10 = smov %s3444_s11 }
 0x771   : > { %s5017_s11 = smov %s3583_s22  ;;  %s5018_s12 = smov %s3452_s13 }
 0x772   : > { %s5019_s13 = smov %s5021_s17  ;;  %21 = sbr.rel (!%p19_p5) target bundleno = 4 (0x4), region = 101 }
 0x779   :  { %2798 = vsyncpa [#allocation5], 1 }
 0x77a   :  { %2800 = vsyncpa [#allocation5 + $0x1], 1 }

</bundles_post_ra>
